<compile_context>
chip_gen: v6e
topology: v6e:2x2x1
jax: 0.10.0
libtpu: 0.0.40
codegen_flags: <defaults>
</compile_context>

<pallas_src>
import functools

import jax
import jax.numpy as jnp
from jax.experimental import pallas as pl
from jax.experimental.pallas import tpu as pltpu

C_PAD = 128  # lane-dense channel padding for intermediate activations


def _round_up(x, m):
    return (x + m - 1) // m * m


# ------------------------------ Pallas kernel ------------------------------ #
def _zero_pad_rows(ref, valid_rows):
    """Zero the sublane-padding rows of a patch scratch (static, tiny)."""
    pad = ref.shape[0] - valid_rows
    if pad > 0:
        ref[pl.ds(valid_rows, pad), :] = jnp.zeros((pad, ref.shape[1]), jnp.float32)


def _build_patches_3x3(y_ref, p_ref, n, s_in, s_out, c):
    """In-VMEM im2col for a 3x3 VALID conv.

    y_ref: [n*s_in*s_in (padded), c]   rows ordered (img, h, w)
    p_ref: [n*s_out*s_out (padded), 9*c]
      p[(img*s_out+oh)*s_out+ow, (di*3+dj)*c + k] = y[img*s_in^2 + (oh+di)*s_in + (ow+dj), k]
    All indices are static Python ints -> unrolled block copies (data is tiny).
    """
    for img in range(n):
        for oh in range(s_out):
            dst0 = (img * s_out + oh) * s_out
            for di in range(3):
                src0 = img * s_in * s_in + (oh + di) * s_in
                for dj in range(3):
                    p_ref[pl.ds(dst0, s_out), pl.ds((di * 3 + dj) * c, c)] = (
                        y_ref[pl.ds(src0 + dj, s_out), :]
                    )


def _mapcnn_kernel(p1, w1, b1, w2, b2, w3, b3, w4, b4, out,
                   y1, pb2, y2, pb3, y3, pb4, *, n, s1, s2, s3):
    c = C_PAD

    # Layer 1: Conv2d(1, 32, 5, stride=5) + ReLU.  Patches prebuilt (stride==kernel).
    y1[...] = jnp.maximum(
        jnp.dot(p1[...], w1[...], preferred_element_type=jnp.float32) + b1[...], 0.0)

    # Layer 2: Conv2d(32, 64, 3) + ReLU   (s1 x s1 -> s2 x s2), im2col in VMEM.
    _zero_pad_rows(pb2, n * s2 * s2)
    _build_patches_3x3(y1, pb2, n, s1, s2, c)
    y2[...] = jnp.maximum(
        jnp.dot(pb2[...], w2[...], preferred_element_type=jnp.float32) + b2[...], 0.0)

    # Layer 3: Conv2d(64, 128, 3) + ReLU  (s2 x s2 -> s3 x s3).
    _zero_pad_rows(pb3, n * s3 * s3)
    _build_patches_3x3(y2, pb3, n, s2, s3, c)
    y3[...] = jnp.maximum(
        jnp.dot(pb3[...], w3[...], preferred_element_type=jnp.float32) + b3[...], 0.0)

    # Dropout(p=0) is the identity -> nothing to do.
    # Layer 4: Conv2d(128, 256, 3), no activation (s3 x s3 -> 1 x 1).
    _zero_pad_rows(pb4, n)
    _build_patches_3x3(y3, pb4, n, s3, 1, c)
    a4 = jnp.dot(pb4[...], w4[...], preferred_element_type=jnp.float32) + b4[...]
    out[...] = a4[:n, :]


# ------------------------------- JAX wrapper -------------------------------- #
def map_cnn_forward(m, prepped):
    """m: [N, 1, 35, 35] float32; prepped: pre-transposed/padded weights & biases."""
    w1p, b1p, w2p, b2p, w3p, b3p, w4p, b4p = prepped
    n = m.shape[0]
    assert m.shape[1] == 1 and m.shape[2] == m.shape[3]
    s0 = m.shape[2]                       # 35
    s1 = (s0 - 5) // 5 + 1                # 7
    s2, s3, s4 = s1 - 2, s1 - 4, s1 - 6   # 5, 3, 1
    assert s4 == 1, "MapCNN requires 35x35 input so the final feature map is 1x1"

    # Layer-1 im2col: stride == kernel -> non-overlapping 5x5 blocks = reshape+transpose.
    patches = (m.reshape(n, s1, 5, s1, 5)
                .transpose(0, 1, 3, 2, 4)
                .reshape(n * s1 * s1, 25))
    m1p = _round_up(n * s1 * s1, 8)
    p1 = jnp.zeros((m1p, 32), jnp.float32).at[:n * s1 * s1, :25].set(patches)

    m2p = _round_up(n * s2 * s2, 8)
    m3p = _round_up(n * s3 * s3, 8)
    m4p = _round_up(n, 8)

    kernel = functools.partial(_mapcnn_kernel, n=n, s1=s1, s2=s2, s3=s3)

    return pl.pallas_call(
        kernel,
        out_shape=jax.ShapeDtypeStruct((n, 256), jnp.float32),
        in_specs=[pl.BlockSpec(memory_space=pltpu.MemorySpace.VMEM)] * 9,
        out_specs=pl.BlockSpec(memory_space=pltpu.MemorySpace.VMEM),
        scratch_shapes=[
            pltpu.VMEM((m1p, C_PAD), jnp.float32),      # y1 : conv1 activations
            pltpu.VMEM((m2p, 9 * C_PAD), jnp.float32),  # pb2: conv2 im2col patches
            pltpu.VMEM((m2p, C_PAD), jnp.float32),      # y2
            pltpu.VMEM((m3p, 9 * C_PAD), jnp.float32),  # pb3
            pltpu.VMEM((m3p, C_PAD), jnp.float32),      # y3
            pltpu.VMEM((m4p, 9 * C_PAD), jnp.float32),  # pb4
        ],
    )(p1, w1p, b1p, w2p, b2p, w3p, b3p, w4p, b4p)


# -------------------- one-time parameter prep (outside jit) ----------------- #
def prep_conv_first(w, b, k_pad=32, cout_pad=C_PAD):
    """Conv2d(1,32,5,5): OIHW -> [K=25 (pad 32), Cout=32 (pad 128)], torch flatten order."""
    cout, cin, kh, kw = w.shape
    wt = w.reshape(cout, cin * kh * kw).T
    wp = jnp.zeros((k_pad, cout_pad), jnp.float32).at[:cin * kh * kw, :cout].set(wt)
    bp = jnp.zeros((1, cout_pad), jnp.float32).at[0, :cout].set(b)
    return wp, bp


def prep_conv_3x3(w, b, cin_pad=C_PAD):
    """Conv2d(Cin,Cout,3): OIHW -> [K = 9*cin_pad, Cout padded to 128] matching the
    in-kernel patch layout (tap-major, padded-channel minor)."""
    cout, cin, kh, kw = w.shape
    cout_pad = _round_up(cout, C_PAD)
    wt = jnp.transpose(w, (2, 3, 1, 0)).reshape(kh * kw, cin, cout)   # [9, Cin, Cout]
    wp = jnp.zeros((kh * kw, cin_pad, cout_pad), jnp.float32)
    wp = wp.at[:, :cin, :cout].set(wt).reshape(kh * kw * cin_pad, cout_pad)
    bp = jnp.zeros((1, cout_pad), jnp.float32).at[0, :cout].set(b)
    return wp, bp


def prep_params(raw):
    (w1, b1), (w2, b2), (w3, b3), (w4, b4) = raw
    w1p, b1p = prep_conv_first(w1, b1)
    w2p, b2p = prep_conv_3x3(w2, b2)
    w3p, b3p = prep_conv_3x3(w3, b3)
    w4p, b4p = prep_conv_3x3(w4, b4)
    return (w1p, b1p, w2p, b2p, w3p, b3p, w4p, b4p)


def init_conv_params(key, cout, cin, k):
    # Deterministic synthetic init (PyTorch-style uniform bounds), no checkpoint.
    wkey, bkey = jax.random.split(key)
    fan_in = cin * k * k
    bound = 1.0 / float(fan_in) ** 0.5
    w = jax.random.uniform(wkey, (cout, cin, k, k), jnp.float32, -bound, bound)
    b = jax.random.uniform(bkey, (cout,), jnp.float32, -bound, bound)
    return w, b


# --------------------------- pure-JAX reference ---------------------------- #
def _conv_ref(x, w, b, stride):
    out = jax.lax.conv_general_dilated(
        x, w, (stride, stride), "VALID",
        dimension_numbers=("NCHW", "OIHW", "NCHW"))
    return out + b.reshape(1, -1, 1, 1)


def map_cnn_reference(m, raw):
    (w1, b1), (w2, b2), (w3, b3), (w4, b4) = raw
    x = jnp.maximum(_conv_ref(m, w1, b1, 5), 0.0)
    x = jnp.maximum(_conv_ref(x, w2, b2, 1), 0.0)
    x = jnp.maximum(_conv_ref(x, w3, b3, 1), 0.0)
    x = _conv_ref(x, w4, b4, 1)
    return x.reshape(x.shape[0], -1)


# ---------------------------------- main ----------------------------------- #
if __name__ == "__main__":
    key = jax.random.PRNGKey(0)
    k0, k1, k2, k3, k4 = jax.random.split(key, 5)

    # Smallest spatial size consistent with the conv stack:
    # 35 --(5x5, stride 5)--> 7 --(3x3)--> 5 --(3x3)--> 3 --(3x3)--> 1
    N, H, W = 2, 35, 35
    m = jax.random.normal(k0, (N, 1, H, W), jnp.float32)

    raw_params = (
        init_conv_params(k1, 32, 1, 5),
        init_conv_params(k2, 64, 32, 3),
        init_conv_params(k3, 128, 64, 3),
        init_conv_params(k4, 256, 128, 3),
    )
    prepped = prep_params(raw_params)     # one-time weight transpose/pad, outside jit

    fwd = jax.jit(map_cnn_forward)
    out = jax.block_until_ready(fwd(m, prepped))

    ref = jax.block_until_ready(map_cnn_reference(m, raw_params))
    assert out.shape == (N, 256), out.shape
    assert jnp.allclose(out, ref, atol=1e-4, rtol=1e-4), "mismatch vs reference"

    print("KERNEL_OK")
</pallas_src>

<mosaic_0001>
module attributes {stable_mosaic.version = 11 : i64} {
  func.func @_mapcnn_kernel(%arg0: memref<104x32xf32, #tpu.memory_space<vmem>>, %arg1: memref<32x128xf32, #tpu.memory_space<vmem>>, %arg2: memref<1x128xf32, #tpu.memory_space<vmem>>, %arg3: memref<1152x128xf32, #tpu.memory_space<vmem>>, %arg4: memref<1x128xf32, #tpu.memory_space<vmem>>, %arg5: memref<1152x128xf32, #tpu.memory_space<vmem>>, %arg6: memref<1x128xf32, #tpu.memory_space<vmem>>, %arg7: memref<1152x256xf32, #tpu.memory_space<vmem>>, %arg8: memref<1x256xf32, #tpu.memory_space<vmem>>, %arg9: memref<2x256xf32, #tpu.memory_space<vmem>>, %arg10: memref<104x128xf32, #tpu.memory_space<vmem>>, %arg11: memref<56x1152xf32, #tpu.memory_space<vmem>>, %arg12: memref<56x128xf32, #tpu.memory_space<vmem>>, %arg13: memref<24x1152xf32, #tpu.memory_space<vmem>>, %arg14: memref<24x128xf32, #tpu.memory_space<vmem>>, %arg15: memref<8x1152xf32, #tpu.memory_space<vmem>>) attributes {dimension_semantics = [], scalar_prefetch = 0 : i64, scratch_operands = 6 : i64, tpu.core_type = #tpu.core_type<tc>} {
    %c0 = arith.constant 0 : index
    %c0_0 = arith.constant 0 : index
    %0 = vector.load %arg0[%c0, %c0_0] : memref<104x32xf32, #tpu.memory_space<vmem>>, vector<104x32xf32>
    %c0_1 = arith.constant 0 : index
    %c0_2 = arith.constant 0 : index
    %1 = vector.load %arg1[%c0_1, %c0_2] : memref<32x128xf32, #tpu.memory_space<vmem>>, vector<32x128xf32>
    %cst = arith.constant dense<0.000000e+00> : vector<104x128xf32>
    %2 = tpu.matmul %0, %1, %cst {dimension_numbers = #tpu.dot_dimension_numbers<[1], [0], [0], [1], [0, 0, 1, 1], [], []>} : vector<104x32xf32>, vector<32x128xf32>, vector<104x128xf32> -> vector<104x128xf32>
    %c0_3 = arith.constant 0 : index
    %c0_4 = arith.constant 0 : index
    %3 = vector.load %arg2[%c0_3, %c0_4] : memref<1x128xf32, #tpu.memory_space<vmem>>, vector<1x128xf32>
    %4 = vector.broadcast %3 : vector<1x128xf32> to vector<104x128xf32>
    %5 = arith.addf %2, %4 : vector<104x128xf32>
    %cst_5 = arith.constant 0.000000e+00 : f32
    %6 = vector.broadcast %cst_5 : f32 to vector<104x128xf32>
    %7 = arith.maximumf %5, %6 : vector<104x128xf32>
    %c0_6 = arith.constant 0 : index
    %c0_7 = arith.constant 0 : index
    %8 = vector.load %arg10[%c0_6, %c0_7] : memref<104x128xf32, #tpu.memory_space<vmem>>, vector<104x128xf32>
    tpu.vector_store %arg10[%c0_6, %c0_7], %7 {strides = array<i32>} : memref<104x128xf32, #tpu.memory_space<vmem>>, vector<104x128xf32>,
    %cst_8 = arith.constant 0.000000e+00 : f32
    %9 = vector.broadcast %cst_8 : f32 to vector<6x1152xf32>
    %c50 = arith.constant 50 : index
    %c0_9 = arith.constant 0 : index
    %10 = vector.load %arg11[%c50, %c0_9] : memref<56x1152xf32, #tpu.memory_space<vmem>>, vector<6x1152xf32>
    tpu.vector_store %arg11[%c50, %c0_9], %9 {strides = array<i32>} : memref<56x1152xf32, #tpu.memory_space<vmem>>, vector<6x1152xf32>,
    %c0_10 = arith.constant 0 : index
    %c0_11 = arith.constant 0 : index
    %11 = vector.load %arg10[%c0_10, %c0_11] : memref<104x128xf32, #tpu.memory_space<vmem>>, vector<5x128xf32>
    %c0_12 = arith.constant 0 : index
    %c0_13 = arith.constant 0 : index
    %12 = vector.load %arg11[%c0_12, %c0_13] : memref<56x1152xf32, #tpu.memory_space<vmem>>, vector<5x128xf32>
    tpu.vector_store %arg11[%c0_12, %c0_13], %11 {strides = array<i32>} : memref<56x1152xf32, #tpu.memory_space<vmem>>, vector<5x128xf32>,
    %c1 = arith.constant 1 : index
    %c0_14 = arith.constant 0 : index
    %13 = vector.load %arg10[%c1, %c0_14] : memref<104x128xf32, #tpu.memory_space<vmem>>, vector<5x128xf32>
    %c0_15 = arith.constant 0 : index
    %c128 = arith.constant 128 : index
    %14 = vector.load %arg11[%c0_15, %c128] : memref<56x1152xf32, #tpu.memory_space<vmem>>, vector<5x128xf32>
    tpu.vector_store %arg11[%c0_15, %c128], %13 {strides = array<i32>} : memref<56x1152xf32, #tpu.memory_space<vmem>>, vector<5x128xf32>,
    %c2 = arith.constant 2 : index
    %c0_16 = arith.constant 0 : index
    %15 = vector.load %arg10[%c2, %c0_16] : memref<104x128xf32, #tpu.memory_space<vmem>>, vector<5x128xf32>
    %c0_17 = arith.constant 0 : index
    %c256 = arith.constant 256 : index
    %16 = vector.load %arg11[%c0_17, %c256] : memref<56x1152xf32, #tpu.memory_space<vmem>>, vector<5x128xf32>
    tpu.vector_store %arg11[%c0_17, %c256], %15 {strides = array<i32>} : memref<56x1152xf32, #tpu.memory_space<vmem>>, vector<5x128xf32>,
    %c7 = arith.constant 7 : index
    %c0_18 = arith.constant 0 : index
    %17 = vector.load %arg10[%c7, %c0_18] : memref<104x128xf32, #tpu.memory_space<vmem>>, vector<5x128xf32>
    %c0_19 = arith.constant 0 : index
    %c384 = arith.constant 384 : index
    %18 = vector.load %arg11[%c0_19, %c384] : memref<56x1152xf32, #tpu.memory_space<vmem>>, vector<5x128xf32>
    tpu.vector_store %arg11[%c0_19, %c384], %17 {strides = array<i32>} : memref<56x1152xf32, #tpu.memory_space<vmem>>, vector<5x128xf32>,
    %c8 = arith.constant 8 : index
    %c0_20 = arith.constant 0 : index
    %19 = vector.load %arg10[%c8, %c0_20] : memref<104x128xf32, #tpu.memory_space<vmem>>, vector<5x128xf32>
    %c0_21 = arith.constant 0 : index
    %c512 = arith.constant 512 : index
    %20 = vector.load %arg11[%c0_21, %c512] : memref<56x1152xf32, #tpu.memory_space<vmem>>, vector<5x128xf32>
    tpu.vector_store %arg11[%c0_21, %c512], %19 {strides = array<i32>} : memref<56x1152xf32, #tpu.memory_space<vmem>>, vector<5x128xf32>,
    %c9 = arith.constant 9 : index
    %c0_22 = arith.constant 0 : index
    %21 = vector.load %arg10[%c9, %c0_22] : memref<104x128xf32, #tpu.memory_space<vmem>>, vector<5x128xf32>
    %c0_23 = arith.constant 0 : index
    %c640 = arith.constant 640 : index
    %22 = vector.load %arg11[%c0_23, %c640] : memref<56x1152xf32, #tpu.memory_space<vmem>>, vector<5x128xf32>
    tpu.vector_store %arg11[%c0_23, %c640], %21 {strides = array<i32>} : memref<56x1152xf32, #tpu.memory_space<vmem>>, vector<5x128xf32>,
    %c14 = arith.constant 14 : index
    %c0_24 = arith.constant 0 : index
    %23 = vector.load %arg10[%c14, %c0_24] : memref<104x128xf32, #tpu.memory_space<vmem>>, vector<5x128xf32>
    %c0_25 = arith.constant 0 : index
    %c768 = arith.constant 768 : index
    %24 = vector.load %arg11[%c0_25, %c768] : memref<56x1152xf32, #tpu.memory_space<vmem>>, vector<5x128xf32>
    tpu.vector_store %arg11[%c0_25, %c768], %23 {strides = array<i32>} : memref<56x1152xf32, #tpu.memory_space<vmem>>, vector<5x128xf32>,
    %c15 = arith.constant 15 : index
    %c0_26 = arith.constant 0 : index
    %25 = vector.load %arg10[%c15, %c0_26] : memref<104x128xf32, #tpu.memory_space<vmem>>, vector<5x128xf32>
    %c0_27 = arith.constant 0 : index
    %c896 = arith.constant 896 : index
    %26 = vector.load %arg11[%c0_27, %c896] : memref<56x1152xf32, #tpu.memory_space<vmem>>, vector<5x128xf32>
    tpu.vector_store %arg11[%c0_27, %c896], %25 {strides = array<i32>} : memref<56x1152xf32, #tpu.memory_space<vmem>>, vector<5x128xf32>,
    %c16 = arith.constant 16 : index
    %c0_28 = arith.constant 0 : index
    %27 = vector.load %arg10[%c16, %c0_28] : memref<104x128xf32, #tpu.memory_space<vmem>>, vector<5x128xf32>
    %c0_29 = arith.constant 0 : index
    %c1024 = arith.constant 1024 : index
    %28 = vector.load %arg11[%c0_29, %c1024] : memref<56x1152xf32, #tpu.memory_space<vmem>>, vector<5x128xf32>
    tpu.vector_store %arg11[%c0_29, %c1024], %27 {strides = array<i32>} : memref<56x1152xf32, #tpu.memory_space<vmem>>, vector<5x128xf32>,
    %c7_30 = arith.constant 7 : index
    %c0_31 = arith.constant 0 : index
    %29 = vector.load %arg10[%c7_30, %c0_31] : memref<104x128xf32, #tpu.memory_space<vmem>>, vector<5x128xf32>
    %c5 = arith.constant 5 : index
    %c0_32 = arith.constant 0 : index
    %30 = vector.load %arg11[%c5, %c0_32] : memref<56x1152xf32, #tpu.memory_space<vmem>>, vector<5x128xf32>
    tpu.vector_store %arg11[%c5, %c0_32], %29 {strides = array<i32>} : memref<56x1152xf32, #tpu.memory_space<vmem>>, vector<5x128xf32>,
    %c8_33 = arith.constant 8 : index
    %c0_34 = arith.constant 0 : index
    %31 = vector.load %arg10[%c8_33, %c0_34] : memref<104x128xf32, #tpu.memory_space<vmem>>, vector<5x128xf32>
    %c5_35 = arith.constant 5 : index
    %c128_36 = arith.constant 128 : index
    %32 = vector.load %arg11[%c5_35, %c128_36] : memref<56x1152xf32, #tpu.memory_space<vmem>>, vector<5x128xf32>
    tpu.vector_store %arg11[%c5_35, %c128_36], %31 {strides = array<i32>} : memref<56x1152xf32, #tpu.memory_space<vmem>>, vector<5x128xf32>,
    %c9_37 = arith.constant 9 : index
    %c0_38 = arith.constant 0 : index
    %33 = vector.load %arg10[%c9_37, %c0_38] : memref<104x128xf32, #tpu.memory_space<vmem>>, vector<5x128xf32>
    %c5_39 = arith.constant 5 : index
    %c256_40 = arith.constant 256 : index
    %34 = vector.load %arg11[%c5_39, %c256_40] : memref<56x1152xf32, #tpu.memory_space<vmem>>, vector<5x128xf32>
    tpu.vector_store %arg11[%c5_39, %c256_40], %33 {strides = array<i32>} : memref<56x1152xf32, #tpu.memory_space<vmem>>, vector<5x128xf32>,
    %c14_41 = arith.constant 14 : index
    %c0_42 = arith.constant 0 : index
    %35 = vector.load %arg10[%c14_41, %c0_42] : memref<104x128xf32, #tpu.memory_space<vmem>>, vector<5x128xf32>
    %c5_43 = arith.constant 5 : index
    %c384_44 = arith.constant 384 : index
    %36 = vector.load %arg11[%c5_43, %c384_44] : memref<56x1152xf32, #tpu.memory_space<vmem>>, vector<5x128xf32>
    tpu.vector_store %arg11[%c5_43, %c384_44], %35 {strides = array<i32>} : memref<56x1152xf32, #tpu.memory_space<vmem>>, vector<5x128xf32>,
    %c15_45 = arith.constant 15 : index
    %c0_46 = arith.constant 0 : index
    %37 = vector.load %arg10[%c15_45, %c0_46] : memref<104x128xf32, #tpu.memory_space<vmem>>, vector<5x128xf32>
    %c5_47 = arith.constant 5 : index
    %c512_48 = arith.constant 512 : index
    %38 = vector.load %arg11[%c5_47, %c512_48] : memref<56x1152xf32, #tpu.memory_space<vmem>>, vector<5x128xf32>
    tpu.vector_store %arg11[%c5_47, %c512_48], %37 {strides = array<i32>} : memref<56x1152xf32, #tpu.memory_space<vmem>>, vector<5x128xf32>,
    %c16_49 = arith.constant 16 : index
    %c0_50 = arith.constant 0 : index
    %39 = vector.load %arg10[%c16_49, %c0_50] : memref<104x128xf32, #tpu.memory_space<vmem>>, vector<5x128xf32>
    %c5_51 = arith.constant 5 : index
    %c640_52 = arith.constant 640 : index
    %40 = vector.load %arg11[%c5_51, %c640_52] : memref<56x1152xf32, #tpu.memory_space<vmem>>, vector<5x128xf32>
    tpu.vector_store %arg11[%c5_51, %c640_52], %39 {strides = array<i32>} : memref<56x1152xf32, #tpu.memory_space<vmem>>, vector<5x128xf32>,
    %c21 = arith.constant 21 : index
    %c0_53 = arith.constant 0 : index
    %41 = vector.load %arg10[%c21, %c0_53] : memref<104x128xf32, #tpu.memory_space<vmem>>, vector<5x128xf32>
    %c5_54 = arith.constant 5 : index
    %c768_55 = arith.constant 768 : index
    %42 = vector.load %arg11[%c5_54, %c768_55] : memref<56x1152xf32, #tpu.memory_space<vmem>>, vector<5x128xf32>
    tpu.vector_store %arg11[%c5_54, %c768_55], %41 {strides = array<i32>} : memref<56x1152xf32, #tpu.memory_space<vmem>>, vector<5x128xf32>,
    %c22 = arith.constant 22 : index
    %c0_56 = arith.constant 0 : index
    %43 = vector.load %arg10[%c22, %c0_56] : memref<104x128xf32, #tpu.memory_space<vmem>>, vector<5x128xf32>
    %c5_57 = arith.constant 5 : index
    %c896_58 = arith.constant 896 : index
    %44 = vector.load %arg11[%c5_57, %c896_58] : memref<56x1152xf32, #tpu.memory_space<vmem>>, vector<5x128xf32>
    tpu.vector_store %arg11[%c5_57, %c896_58], %43 {strides = array<i32>} : memref<56x1152xf32, #tpu.memory_space<vmem>>, vector<5x128xf32>,
    %c23 = arith.constant 23 : index
    %c0_59 = arith.constant 0 : index
    %45 = vector.load %arg10[%c23, %c0_59] : memref<104x128xf32, #tpu.memory_space<vmem>>, vector<5x128xf32>
    %c5_60 = arith.constant 5 : index
    %c1024_61 = arith.constant 1024 : index
    %46 = vector.load %arg11[%c5_60, %c1024_61] : memref<56x1152xf32, #tpu.memory_space<vmem>>, vector<5x128xf32>
    tpu.vector_store %arg11[%c5_60, %c1024_61], %45 {strides = array<i32>} : memref<56x1152xf32, #tpu.memory_space<vmem>>, vector<5x128xf32>,
    %c14_62 = arith.constant 14 : index
    %c0_63 = arith.constant 0 : index
    %47 = vector.load %arg10[%c14_62, %c0_63] : memref<104x128xf32, #tpu.memory_space<vmem>>, vector<5x128xf32>
    %c10 = arith.constant 10 : index
    %c0_64 = arith.constant 0 : index
    %48 = vector.load %arg11[%c10, %c0_64] : memref<56x1152xf32, #tpu.memory_space<vmem>>, vector<5x128xf32>
    tpu.vector_store %arg11[%c10, %c0_64], %47 {strides = array<i32>} : memref<56x1152xf32, #tpu.memory_space<vmem>>, vector<5x128xf32>,
    %c15_65 = arith.constant 15 : index
    %c0_66 = arith.constant 0 : index
    %49 = vector.load %arg10[%c15_65, %c0_66] : memref<104x128xf32, #tpu.memory_space<vmem>>, vector<5x128xf32>
    %c10_67 = arith.constant 10 : index
    %c128_68 = arith.constant 128 : index
    %50 = vector.load %arg11[%c10_67, %c128_68] : memref<56x1152xf32, #tpu.memory_space<vmem>>, vector<5x128xf32>
    tpu.vector_store %arg11[%c10_67, %c128_68], %49 {strides = array<i32>} : memref<56x1152xf32, #tpu.memory_space<vmem>>, vector<5x128xf32>,
    %c16_69 = arith.constant 16 : index
    %c0_70 = arith.constant 0 : index
    %51 = vector.load %arg10[%c16_69, %c0_70] : memref<104x128xf32, #tpu.memory_space<vmem>>, vector<5x128xf32>
    %c10_71 = arith.constant 10 : index
    %c256_72 = arith.constant 256 : index
    %52 = vector.load %arg11[%c10_71, %c256_72] : memref<56x1152xf32, #tpu.memory_space<vmem>>, vector<5x128xf32>
    tpu.vector_store %arg11[%c10_71, %c256_72], %51 {strides = array<i32>} : memref<56x1152xf32, #tpu.memory_space<vmem>>, vector<5x128xf32>,
    %c21_73 = arith.constant 21 : index
    %c0_74 = arith.constant 0 : index
    %53 = vector.load %arg10[%c21_73, %c0_74] : memref<104x128xf32, #tpu.memory_space<vmem>>, vector<5x128xf32>
    %c10_75 = arith.constant 10 : index
    %c384_76 = arith.constant 384 : index
    %54 = vector.load %arg11[%c10_75, %c384_76] : memref<56x1152xf32, #tpu.memory_space<vmem>>, vector<5x128xf32>
    tpu.vector_store %arg11[%c10_75, %c384_76], %53 {strides = array<i32>} : memref<56x1152xf32, #tpu.memory_space<vmem>>, vector<5x128xf32>,
    %c22_77 = arith.constant 22 : index
    %c0_78 = arith.constant 0 : index
    %55 = vector.load %arg10[%c22_77, %c0_78] : memref<104x128xf32, #tpu.memory_space<vmem>>, vector<5x128xf32>
    %c10_79 = arith.constant 10 : index
    %c512_80 = arith.constant 512 : index
    %56 = vector.load %arg11[%c10_79, %c512_80] : memref<56x1152xf32, #tpu.memory_space<vmem>>, vector<5x128xf32>
    tpu.vector_store %arg11[%c10_79, %c512_80], %55 {strides = array<i32>} : memref<56x1152xf32, #tpu.memory_space<vmem>>, vector<5x128xf32>,
    %c23_81 = arith.constant 23 : index
    %c0_82 = arith.constant 0 : index
    %57 = vector.load %arg10[%c23_81, %c0_82] : memref<104x128xf32, #tpu.memory_space<vmem>>, vector<5x128xf32>
    %c10_83 = arith.constant 10 : index
    %c640_84 = arith.constant 640 : index
    %58 = vector.load %arg11[%c10_83, %c640_84] : memref<56x1152xf32, #tpu.memory_space<vmem>>, vector<5x128xf32>
    tpu.vector_store %arg11[%c10_83, %c640_84], %57 {strides = array<i32>} : memref<56x1152xf32, #tpu.memory_space<vmem>>, vector<5x128xf32>,
    %c28 = arith.constant 28 : index
    %c0_85 = arith.constant 0 : index
    %59 = vector.load %arg10[%c28, %c0_85] : memref<104x128xf32, #tpu.memory_space<vmem>>, vector<5x128xf32>
    %c10_86 = arith.constant 10 : index
    %c768_87 = arith.constant 768 : index
    %60 = vector.load %arg11[%c10_86, %c768_87] : memref<56x1152xf32, #tpu.memory_space<vmem>>, vector<5x128xf32>
    tpu.vector_store %arg11[%c10_86, %c768_87], %59 {strides = array<i32>} : memref<56x1152xf32, #tpu.memory_space<vmem>>, vector<5x128xf32>,
    %c29 = arith.constant 29 : index
    %c0_88 = arith.constant 0 : index
    %61 = vector.load %arg10[%c29, %c0_88] : memref<104x128xf32, #tpu.memory_space<vmem>>, vector<5x128xf32>
    %c10_89 = arith.constant 10 : index
    %c896_90 = arith.constant 896 : index
    %62 = vector.load %arg11[%c10_89, %c896_90] : memref<56x1152xf32, #tpu.memory_space<vmem>>, vector<5x128xf32>
    tpu.vector_store %arg11[%c10_89, %c896_90], %61 {strides = array<i32>} : memref<56x1152xf32, #tpu.memory_space<vmem>>, vector<5x128xf32>,
    %c30 = arith.constant 30 : index
    %c0_91 = arith.constant 0 : index
    %63 = vector.load %arg10[%c30, %c0_91] : memref<104x128xf32, #tpu.memory_space<vmem>>, vector<5x128xf32>
    %c10_92 = arith.constant 10 : index
    %c1024_93 = arith.constant 1024 : index
    %64 = vector.load %arg11[%c10_92, %c1024_93] : memref<56x1152xf32, #tpu.memory_space<vmem>>, vector<5x128xf32>
    tpu.vector_store %arg11[%c10_92, %c1024_93], %63 {strides = array<i32>} : memref<56x1152xf32, #tpu.memory_space<vmem>>, vector<5x128xf32>,
    %c21_94 = arith.constant 21 : index
    %c0_95 = arith.constant 0 : index
    %65 = vector.load %arg10[%c21_94, %c0_95] : memref<104x128xf32, #tpu.memory_space<vmem>>, vector<5x128xf32>
    %c15_96 = arith.constant 15 : index
    %c0_97 = arith.constant 0 : index
    %66 = vector.load %arg11[%c15_96, %c0_97] : memref<56x1152xf32, #tpu.memory_space<vmem>>, vector<5x128xf32>
    tpu.vector_store %arg11[%c15_96, %c0_97], %65 {strides = array<i32>} : memref<56x1152xf32, #tpu.memory_space<vmem>>, vector<5x128xf32>,
    %c22_98 = arith.constant 22 : index
    %c0_99 = arith.constant 0 : index
    %67 = vector.load %arg10[%c22_98, %c0_99] : memref<104x128xf32, #tpu.memory_space<vmem>>, vector<5x128xf32>
    %c15_100 = arith.constant 15 : index
    %c128_101 = arith.constant 128 : index
    %68 = vector.load %arg11[%c15_100, %c128_101] : memref<56x1152xf32, #tpu.memory_space<vmem>>, vector<5x128xf32>
    tpu.vector_store %arg11[%c15_100, %c128_101], %67 {strides = array<i32>} : memref<56x1152xf32, #tpu.memory_space<vmem>>, vector<5x128xf32>,
    %c23_102 = arith.constant 23 : index
    %c0_103 = arith.constant 0 : index
    %69 = vector.load %arg10[%c23_102, %c0_103] : memref<104x128xf32, #tpu.memory_space<vmem>>, vector<5x128xf32>
    %c15_104 = arith.constant 15 : index
    %c256_105 = arith.constant 256 : index
    %70 = vector.load %arg11[%c15_104, %c256_105] : memref<56x1152xf32, #tpu.memory_space<vmem>>, vector<5x128xf32>
    tpu.vector_store %arg11[%c15_104, %c256_105], %69 {strides = array<i32>} : memref<56x1152xf32, #tpu.memory_space<vmem>>, vector<5x128xf32>,
    %c28_106 = arith.constant 28 : index
    %c0_107 = arith.constant 0 : index
    %71 = vector.load %arg10[%c28_106, %c0_107] : memref<104x128xf32, #tpu.memory_space<vmem>>, vector<5x128xf32>
    %c15_108 = arith.constant 15 : index
    %c384_109 = arith.constant 384 : index
    %72 = vector.load %arg11[%c15_108, %c384_109] : memref<56x1152xf32, #tpu.memory_space<vmem>>, vector<5x128xf32>
    tpu.vector_store %arg11[%c15_108, %c384_109], %71 {strides = array<i32>} : memref<56x1152xf32, #tpu.memory_space<vmem>>, vector<5x128xf32>,
    %c29_110 = arith.constant 29 : index
    %c0_111 = arith.constant 0 : index
    %73 = vector.load %arg10[%c29_110, %c0_111] : memref<104x128xf32, #tpu.memory_space<vmem>>, vector<5x128xf32>
    %c15_112 = arith.constant 15 : index
    %c512_113 = arith.constant 512 : index
    %74 = vector.load %arg11[%c15_112, %c512_113] : memref<56x1152xf32, #tpu.memory_space<vmem>>, vector<5x128xf32>
    tpu.vector_store %arg11[%c15_112, %c512_113], %73 {strides = array<i32>} : memref<56x1152xf32, #tpu.memory_space<vmem>>, vector<5x128xf32>,
    %c30_114 = arith.constant 30 : index
    %c0_115 = arith.constant 0 : index
    %75 = vector.load %arg10[%c30_114, %c0_115] : memref<104x128xf32, #tpu.memory_space<vmem>>, vector<5x128xf32>
    %c15_116 = arith.constant 15 : index
    %c640_117 = arith.constant 640 : index
    %76 = vector.load %arg11[%c15_116, %c640_117] : memref<56x1152xf32, #tpu.memory_space<vmem>>, vector<5x128xf32>
    tpu.vector_store %arg11[%c15_116, %c640_117], %75 {strides = array<i32>} : memref<56x1152xf32, #tpu.memory_space<vmem>>, vector<5x128xf32>,
    %c35 = arith.constant 35 : index
    %c0_118 = arith.constant 0 : index
    %77 = vector.load %arg10[%c35, %c0_118] : memref<104x128xf32, #tpu.memory_space<vmem>>, vector<5x128xf32>
    %c15_119 = arith.constant 15 : index
    %c768_120 = arith.constant 768 : index
    %78 = vector.load %arg11[%c15_119, %c768_120] : memref<56x1152xf32, #tpu.memory_space<vmem>>, vector<5x128xf32>
    tpu.vector_store %arg11[%c15_119, %c768_120], %77 {strides = array<i32>} : memref<56x1152xf32, #tpu.memory_space<vmem>>, vector<5x128xf32>,
    %c36 = arith.constant 36 : index
    %c0_121 = arith.constant 0 : index
    %79 = vector.load %arg10[%c36, %c0_121] : memref<104x128xf32, #tpu.memory_space<vmem>>, vector<5x128xf32>
    %c15_122 = arith.constant 15 : index
    %c896_123 = arith.constant 896 : index
    %80 = vector.load %arg11[%c15_122, %c896_123] : memref<56x1152xf32, #tpu.memory_space<vmem>>, vector<5x128xf32>
    tpu.vector_store %arg11[%c15_122, %c896_123], %79 {strides = array<i32>} : memref<56x1152xf32, #tpu.memory_space<vmem>>, vector<5x128xf32>,
    %c37 = arith.constant 37 : index
    %c0_124 = arith.constant 0 : index
    %81 = vector.load %arg10[%c37, %c0_124] : memref<104x128xf32, #tpu.memory_space<vmem>>, vector<5x128xf32>
    %c15_125 = arith.constant 15 : index
    %c1024_126 = arith.constant 1024 : index
    %82 = vector.load %arg11[%c15_125, %c1024_126] : memref<56x1152xf32, #tpu.memory_space<vmem>>, vector<5x128xf32>
    tpu.vector_store %arg11[%c15_125, %c1024_126], %81 {strides = array<i32>} : memref<56x1152xf32, #tpu.memory_space<vmem>>, vector<5x128xf32>,
    %c28_127 = arith.constant 28 : index
    %c0_128 = arith.constant 0 : index
    %83 = vector.load %arg10[%c28_127, %c0_128] : memref<104x128xf32, #tpu.memory_space<vmem>>, vector<5x128xf32>
    %c20 = arith.constant 20 : index
    %c0_129 = arith.constant 0 : index
    %84 = vector.load %arg11[%c20, %c0_129] : memref<56x1152xf32, #tpu.memory_space<vmem>>, vector<5x128xf32>
    tpu.vector_store %arg11[%c20, %c0_129], %83 {strides = array<i32>} : memref<56x1152xf32, #tpu.memory_space<vmem>>, vector<5x128xf32>,
    %c29_130 = arith.constant 29 : index
    %c0_131 = arith.constant 0 : index
    %85 = vector.load %arg10[%c29_130, %c0_131] : memref<104x128xf32, #tpu.memory_space<vmem>>, vector<5x128xf32>
    %c20_132 = arith.constant 20 : index
    %c128_133 = arith.constant 128 : index
    %86 = vector.load %arg11[%c20_132, %c128_133] : memref<56x1152xf32, #tpu.memory_space<vmem>>, vector<5x128xf32>
    tpu.vector_store %arg11[%c20_132, %c128_133], %85 {strides = array<i32>} : memref<56x1152xf32, #tpu.memory_space<vmem>>, vector<5x128xf32>,
    %c30_134 = arith.constant 30 : index
    %c0_135 = arith.constant 0 : index
    %87 = vector.load %arg10[%c30_134, %c0_135] : memref<104x128xf32, #tpu.memory_space<vmem>>, vector<5x128xf32>
    %c20_136 = arith.constant 20 : index
    %c256_137 = arith.constant 256 : index
    %88 = vector.load %arg11[%c20_136, %c256_137] : memref<56x1152xf32, #tpu.memory_space<vmem>>, vector<5x128xf32>
    tpu.vector_store %arg11[%c20_136, %c256_137], %87 {strides = array<i32>} : memref<56x1152xf32, #tpu.memory_space<vmem>>, vector<5x128xf32>,
    %c35_138 = arith.constant 35 : index
    %c0_139 = arith.constant 0 : index
    %89 = vector.load %arg10[%c35_138, %c0_139] : memref<104x128xf32, #tpu.memory_space<vmem>>, vector<5x128xf32>
    %c20_140 = arith.constant 20 : index
    %c384_141 = arith.constant 384 : index
    %90 = vector.load %arg11[%c20_140, %c384_141] : memref<56x1152xf32, #tpu.memory_space<vmem>>, vector<5x128xf32>
    tpu.vector_store %arg11[%c20_140, %c384_141], %89 {strides = array<i32>} : memref<56x1152xf32, #tpu.memory_space<vmem>>, vector<5x128xf32>,
    %c36_142 = arith.constant 36 : index
    %c0_143 = arith.constant 0 : index
    %91 = vector.load %arg10[%c36_142, %c0_143] : memref<104x128xf32, #tpu.memory_space<vmem>>, vector<5x128xf32>
    %c20_144 = arith.constant 20 : index
    %c512_145 = arith.constant 512 : index
    %92 = vector.load %arg11[%c20_144, %c512_145] : memref<56x1152xf32, #tpu.memory_space<vmem>>, vector<5x128xf32>
    tpu.vector_store %arg11[%c20_144, %c512_145], %91 {strides = array<i32>} : memref<56x1152xf32, #tpu.memory_space<vmem>>, vector<5x128xf32>,
    %c37_146 = arith.constant 37 : index
    %c0_147 = arith.constant 0 : index
    %93 = vector.load %arg10[%c37_146, %c0_147] : memref<104x128xf32, #tpu.memory_space<vmem>>, vector<5x128xf32>
    %c20_148 = arith.constant 20 : index
    %c640_149 = arith.constant 640 : index
    %94 = vector.load %arg11[%c20_148, %c640_149] : memref<56x1152xf32, #tpu.memory_space<vmem>>, vector<5x128xf32>
    tpu.vector_store %arg11[%c20_148, %c640_149], %93 {strides = array<i32>} : memref<56x1152xf32, #tpu.memory_space<vmem>>, vector<5x128xf32>,
    %c42 = arith.constant 42 : index
    %c0_150 = arith.constant 0 : index
    %95 = vector.load %arg10[%c42, %c0_150] : memref<104x128xf32, #tpu.memory_space<vmem>>, vector<5x128xf32>
    %c20_151 = arith.constant 20 : index
    %c768_152 = arith.constant 768 : index
    %96 = vector.load %arg11[%c20_151, %c768_152] : memref<56x1152xf32, #tpu.memory_space<vmem>>, vector<5x128xf32>
    tpu.vector_store %arg11[%c20_151, %c768_152], %95 {strides = array<i32>} : memref<56x1152xf32, #tpu.memory_space<vmem>>, vector<5x128xf32>,
    %c43 = arith.constant 43 : index
    %c0_153 = arith.constant 0 : index
    %97 = vector.load %arg10[%c43, %c0_153] : memref<104x128xf32, #tpu.memory_space<vmem>>, vector<5x128xf32>
    %c20_154 = arith.constant 20 : index
    %c896_155 = arith.constant 896 : index
    %98 = vector.load %arg11[%c20_154, %c896_155] : memref<56x1152xf32, #tpu.memory_space<vmem>>, vector<5x128xf32>
    tpu.vector_store %arg11[%c20_154, %c896_155], %97 {strides = array<i32>} : memref<56x1152xf32, #tpu.memory_space<vmem>>, vector<5x128xf32>,
    %c44 = arith.constant 44 : index
    %c0_156 = arith.constant 0 : index
    %99 = vector.load %arg10[%c44, %c0_156] : memref<104x128xf32, #tpu.memory_space<vmem>>, vector<5x128xf32>
    %c20_157 = arith.constant 20 : index
    %c1024_158 = arith.constant 1024 : index
    %100 = vector.load %arg11[%c20_157, %c1024_158] : memref<56x1152xf32, #tpu.memory_space<vmem>>, vector<5x128xf32>
    tpu.vector_store %arg11[%c20_157, %c1024_158], %99 {strides = array<i32>} : memref<56x1152xf32, #tpu.memory_space<vmem>>, vector<5x128xf32>,
    %c49 = arith.constant 49 : index
    %c0_159 = arith.constant 0 : index
    %101 = vector.load %arg10[%c49, %c0_159] : memref<104x128xf32, #tpu.memory_space<vmem>>, vector<5x128xf32>
    %c25 = arith.constant 25 : index
    %c0_160 = arith.constant 0 : index
    %102 = vector.load %arg11[%c25, %c0_160] : memref<56x1152xf32, #tpu.memory_space<vmem>>, vector<5x128xf32>
    tpu.vector_store %arg11[%c25, %c0_160], %101 {strides = array<i32>} : memref<56x1152xf32, #tpu.memory_space<vmem>>, vector<5x128xf32>,
    %c50_161 = arith.constant 50 : index
    %c0_162 = arith.constant 0 : index
    %103 = vector.load %arg10[%c50_161, %c0_162] : memref<104x128xf32, #tpu.memory_space<vmem>>, vector<5x128xf32>
    %c25_163 = arith.constant 25 : index
    %c128_164 = arith.constant 128 : index
    %104 = vector.load %arg11[%c25_163, %c128_164] : memref<56x1152xf32, #tpu.memory_space<vmem>>, vector<5x128xf32>
    tpu.vector_store %arg11[%c25_163, %c128_164], %103 {strides = array<i32>} : memref<56x1152xf32, #tpu.memory_space<vmem>>, vector<5x128xf32>,
    %c51 = arith.constant 51 : index
    %c0_165 = arith.constant 0 : index
    %105 = vector.load %arg10[%c51, %c0_165] : memref<104x128xf32, #tpu.memory_space<vmem>>, vector<5x128xf32>
    %c25_166 = arith.constant 25 : index
    %c256_167 = arith.constant 256 : index
    %106 = vector.load %arg11[%c25_166, %c256_167] : memref<56x1152xf32, #tpu.memory_space<vmem>>, vector<5x128xf32>
    tpu.vector_store %arg11[%c25_166, %c256_167], %105 {strides = array<i32>} : memref<56x1152xf32, #tpu.memory_space<vmem>>, vector<5x128xf32>,
    %c56 = arith.constant 56 : index
    %c0_168 = arith.constant 0 : index
    %107 = vector.load %arg10[%c56, %c0_168] : memref<104x128xf32, #tpu.memory_space<vmem>>, vector<5x128xf32>
    %c25_169 = arith.constant 25 : index
    %c384_170 = arith.constant 384 : index
    %108 = vector.load %arg11[%c25_169, %c384_170] : memref<56x1152xf32, #tpu.memory_space<vmem>>, vector<5x128xf32>
    tpu.vector_store %arg11[%c25_169, %c384_170], %107 {strides = array<i32>} : memref<56x1152xf32, #tpu.memory_space<vmem>>, vector<5x128xf32>,
    %c57 = arith.constant 57 : index
    %c0_171 = arith.constant 0 : index
    %109 = vector.load %arg10[%c57, %c0_171] : memref<104x128xf32, #tpu.memory_space<vmem>>, vector<5x128xf32>
    %c25_172 = arith.constant 25 : index
    %c512_173 = arith.constant 512 : index
    %110 = vector.load %arg11[%c25_172, %c512_173] : memref<56x1152xf32, #tpu.memory_space<vmem>>, vector<5x128xf32>
    tpu.vector_store %arg11[%c25_172, %c512_173], %109 {strides = array<i32>} : memref<56x1152xf32, #tpu.memory_space<vmem>>, vector<5x128xf32>,
    %c58 = arith.constant 58 : index
    %c0_174 = arith.constant 0 : index
    %111 = vector.load %arg10[%c58, %c0_174] : memref<104x128xf32, #tpu.memory_space<vmem>>, vector<5x128xf32>
    %c25_175 = arith.constant 25 : index
    %c640_176 = arith.constant 640 : index
    %112 = vector.load %arg11[%c25_175, %c640_176] : memref<56x1152xf32, #tpu.memory_space<vmem>>, vector<5x128xf32>
    tpu.vector_store %arg11[%c25_175, %c640_176], %111 {strides = array<i32>} : memref<56x1152xf32, #tpu.memory_space<vmem>>, vector<5x128xf32>,
    %c63 = arith.constant 63 : index
    %c0_177 = arith.constant 0 : index
    %113 = vector.load %arg10[%c63, %c0_177] : memref<104x128xf32, #tpu.memory_space<vmem>>, vector<5x128xf32>
    %c25_178 = arith.constant 25 : index
    %c768_179 = arith.constant 768 : index
    %114 = vector.load %arg11[%c25_178, %c768_179] : memref<56x1152xf32, #tpu.memory_space<vmem>>, vector<5x128xf32>
    tpu.vector_store %arg11[%c25_178, %c768_179], %113 {strides = array<i32>} : memref<56x1152xf32, #tpu.memory_space<vmem>>, vector<5x128xf32>,
    %c64 = arith.constant 64 : index
    %c0_180 = arith.constant 0 : index
    %115 = vector.load %arg10[%c64, %c0_180] : memref<104x128xf32, #tpu.memory_space<vmem>>, vector<5x128xf32>
    %c25_181 = arith.constant 25 : index
    %c896_182 = arith.constant 896 : index
    %116 = vector.load %arg11[%c25_181, %c896_182] : memref<56x1152xf32, #tpu.memory_space<vmem>>, vector<5x128xf32>
    tpu.vector_store %arg11[%c25_181, %c896_182], %115 {strides = array<i32>} : memref<56x1152xf32, #tpu.memory_space<vmem>>, vector<5x128xf32>,
    %c65 = arith.constant 65 : index
    %c0_183 = arith.constant 0 : index
    %117 = vector.load %arg10[%c65, %c0_183] : memref<104x128xf32, #tpu.memory_space<vmem>>, vector<5x128xf32>
    %c25_184 = arith.constant 25 : index
    %c1024_185 = arith.constant 1024 : index
    %118 = vector.load %arg11[%c25_184, %c1024_185] : memref<56x1152xf32, #tpu.memory_space<vmem>>, vector<5x128xf32>
    tpu.vector_store %arg11[%c25_184, %c1024_185], %117 {strides = array<i32>} : memref<56x1152xf32, #tpu.memory_space<vmem>>, vector<5x128xf32>,
    %c56_186 = arith.constant 56 : index
    %c0_187 = arith.constant 0 : index
    %119 = vector.load %arg10[%c56_186, %c0_187] : memref<104x128xf32, #tpu.memory_space<vmem>>, vector<5x128xf32>
    %c30_188 = arith.constant 30 : index
    %c0_189 = arith.constant 0 : index
    %120 = vector.load %arg11[%c30_188, %c0_189] : memref<56x1152xf32, #tpu.memory_space<vmem>>, vector<5x128xf32>
    tpu.vector_store %arg11[%c30_188, %c0_189], %119 {strides = array<i32>} : memref<56x1152xf32, #tpu.memory_space<vmem>>, vector<5x128xf32>,
    %c57_190 = arith.constant 57 : index
    %c0_191 = arith.constant 0 : index
    %121 = vector.load %arg10[%c57_190, %c0_191] : memref<104x128xf32, #tpu.memory_space<vmem>>, vector<5x128xf32>
    %c30_192 = arith.constant 30 : index
    %c128_193 = arith.constant 128 : index
    %122 = vector.load %arg11[%c30_192, %c128_193] : memref<56x1152xf32, #tpu.memory_space<vmem>>, vector<5x128xf32>
    tpu.vector_store %arg11[%c30_192, %c128_193], %121 {strides = array<i32>} : memref<56x1152xf32, #tpu.memory_space<vmem>>, vector<5x128xf32>,
    %c58_194 = arith.constant 58 : index
    %c0_195 = arith.constant 0 : index
    %123 = vector.load %arg10[%c58_194, %c0_195] : memref<104x128xf32, #tpu.memory_space<vmem>>, vector<5x128xf32>
    %c30_196 = arith.constant 30 : index
    %c256_197 = arith.constant 256 : index
    %124 = vector.load %arg11[%c30_196, %c256_197] : memref<56x1152xf32, #tpu.memory_space<vmem>>, vector<5x128xf32>
    tpu.vector_store %arg11[%c30_196, %c256_197], %123 {strides = array<i32>} : memref<56x1152xf32, #tpu.memory_space<vmem>>, vector<5x128xf32>,
    %c63_198 = arith.constant 63 : index
    %c0_199 = arith.constant 0 : index
    %125 = vector.load %arg10[%c63_198, %c0_199] : memref<104x128xf32, #tpu.memory_space<vmem>>, vector<5x128xf32>
    %c30_200 = arith.constant 30 : index
    %c384_201 = arith.constant 384 : index
    %126 = vector.load %arg11[%c30_200, %c384_201] : memref<56x1152xf32, #tpu.memory_space<vmem>>, vector<5x128xf32>
    tpu.vector_store %arg11[%c30_200, %c384_201], %125 {strides = array<i32>} : memref<56x1152xf32, #tpu.memory_space<vmem>>, vector<5x128xf32>,
    %c64_202 = arith.constant 64 : index
    %c0_203 = arith.constant 0 : index
    %127 = vector.load %arg10[%c64_202, %c0_203] : memref<104x128xf32, #tpu.memory_space<vmem>>, vector<5x128xf32>
    %c30_204 = arith.constant 30 : index
    %c512_205 = arith.constant 512 : index
    %128 = vector.load %arg11[%c30_204, %c512_205] : memref<56x1152xf32, #tpu.memory_space<vmem>>, vector<5x128xf32>
    tpu.vector_store %arg11[%c30_204, %c512_205], %127 {strides = array<i32>} : memref<56x1152xf32, #tpu.memory_space<vmem>>, vector<5x128xf32>,
    %c65_206 = arith.constant 65 : index
    %c0_207 = arith.constant 0 : index
    %129 = vector.load %arg10[%c65_206, %c0_207] : memref<104x128xf32, #tpu.memory_space<vmem>>, vector<5x128xf32>
    %c30_208 = arith.constant 30 : index
    %c640_209 = arith.constant 640 : index
    %130 = vector.load %arg11[%c30_208, %c640_209] : memref<56x1152xf32, #tpu.memory_space<vmem>>, vector<5x128xf32>
    tpu.vector_store %arg11[%c30_208, %c640_209], %129 {strides = array<i32>} : memref<56x1152xf32, #tpu.memory_space<vmem>>, vector<5x128xf32>,
    %c70 = arith.constant 70 : index
    %c0_210 = arith.constant 0 : index
    %131 = vector.load %arg10[%c70, %c0_210] : memref<104x128xf32, #tpu.memory_space<vmem>>, vector<5x128xf32>
    %c30_211 = arith.constant 30 : index
    %c768_212 = arith.constant 768 : index
    %132 = vector.load %arg11[%c30_211, %c768_212] : memref<56x1152xf32, #tpu.memory_space<vmem>>, vector<5x128xf32>
    tpu.vector_store %arg11[%c30_211, %c768_212], %131 {strides = array<i32>} : memref<56x1152xf32, #tpu.memory_space<vmem>>, vector<5x128xf32>,
    %c71 = arith.constant 71 : index
    %c0_213 = arith.constant 0 : index
    %133 = vector.load %arg10[%c71, %c0_213] : memref<104x128xf32, #tpu.memory_space<vmem>>, vector<5x128xf32>
    %c30_214 = arith.constant 30 : index
    %c896_215 = arith.constant 896 : index
    %134 = vector.load %arg11[%c30_214, %c896_215] : memref<56x1152xf32, #tpu.memory_space<vmem>>, vector<5x128xf32>
    tpu.vector_store %arg11[%c30_214, %c896_215], %133 {strides = array<i32>} : memref<56x1152xf32, #tpu.memory_space<vmem>>, vector<5x128xf32>,
    %c72 = arith.constant 72 : index
    %c0_216 = arith.constant 0 : index
    %135 = vector.load %arg10[%c72, %c0_216] : memref<104x128xf32, #tpu.memory_space<vmem>>, vector<5x128xf32>
    %c30_217 = arith.constant 30 : index
    %c1024_218 = arith.constant 1024 : index
    %136 = vector.load %arg11[%c30_217, %c1024_218] : memref<56x1152xf32, #tpu.memory_space<vmem>>, vector<5x128xf32>
    tpu.vector_store %arg11[%c30_217, %c1024_218], %135 {strides = array<i32>} : memref<56x1152xf32, #tpu.memory_space<vmem>>, vector<5x128xf32>,
    %c63_219 = arith.constant 63 : index
    %c0_220 = arith.constant 0 : index
    %137 = vector.load %arg10[%c63_219, %c0_220] : memref<104x128xf32, #tpu.memory_space<vmem>>, vector<5x128xf32>
    %c35_221 = arith.constant 35 : index
    %c0_222 = arith.constant 0 : index
    %138 = vector.load %arg11[%c35_221, %c0_222] : memref<56x1152xf32, #tpu.memory_space<vmem>>, vector<5x128xf32>
    tpu.vector_store %arg11[%c35_221, %c0_222], %137 {strides = array<i32>} : memref<56x1152xf32, #tpu.memory_space<vmem>>, vector<5x128xf32>,
    %c64_223 = arith.constant 64 : index
    %c0_224 = arith.constant 0 : index
    %139 = vector.load %arg10[%c64_223, %c0_224] : memref<104x128xf32, #tpu.memory_space<vmem>>, vector<5x128xf32>
    %c35_225 = arith.constant 35 : index
    %c128_226 = arith.constant 128 : index
    %140 = vector.load %arg11[%c35_225, %c128_226] : memref<56x1152xf32, #tpu.memory_space<vmem>>, vector<5x128xf32>
    tpu.vector_store %arg11[%c35_225, %c128_226], %139 {strides = array<i32>} : memref<56x1152xf32, #tpu.memory_space<vmem>>, vector<5x128xf32>,
    %c65_227 = arith.constant 65 : index
    %c0_228 = arith.constant 0 : index
    %141 = vector.load %arg10[%c65_227, %c0_228] : memref<104x128xf32, #tpu.memory_space<vmem>>, vector<5x128xf32>
    %c35_229 = arith.constant 35 : index
    %c256_230 = arith.constant 256 : index
    %142 = vector.load %arg11[%c35_229, %c256_230] : memref<56x1152xf32, #tpu.memory_space<vmem>>, vector<5x128xf32>
    tpu.vector_store %arg11[%c35_229, %c256_230], %141 {strides = array<i32>} : memref<56x1152xf32, #tpu.memory_space<vmem>>, vector<5x128xf32>,
    %c70_231 = arith.constant 70 : index
    %c0_232 = arith.constant 0 : index
    %143 = vector.load %arg10[%c70_231, %c0_232] : memref<104x128xf32, #tpu.memory_space<vmem>>, vector<5x128xf32>
    %c35_233 = arith.constant 35 : index
    %c384_234 = arith.constant 384 : index
    %144 = vector.load %arg11[%c35_233, %c384_234] : memref<56x1152xf32, #tpu.memory_space<vmem>>, vector<5x128xf32>
    tpu.vector_store %arg11[%c35_233, %c384_234], %143 {strides = array<i32>} : memref<56x1152xf32, #tpu.memory_space<vmem>>, vector<5x128xf32>,
    %c71_235 = arith.constant 71 : index
    %c0_236 = arith.constant 0 : index
    %145 = vector.load %arg10[%c71_235, %c0_236] : memref<104x128xf32, #tpu.memory_space<vmem>>, vector<5x128xf32>
    %c35_237 = arith.constant 35 : index
    %c512_238 = arith.constant 512 : index
    %146 = vector.load %arg11[%c35_237, %c512_238] : memref<56x1152xf32, #tpu.memory_space<vmem>>, vector<5x128xf32>
    tpu.vector_store %arg11[%c35_237, %c512_238], %145 {strides = array<i32>} : memref<56x1152xf32, #tpu.memory_space<vmem>>, vector<5x128xf32>,
    %c72_239 = arith.constant 72 : index
    %c0_240 = arith.constant 0 : index
    %147 = vector.load %arg10[%c72_239, %c0_240] : memref<104x128xf32, #tpu.memory_space<vmem>>, vector<5x128xf32>
    %c35_241 = arith.constant 35 : index
    %c640_242 = arith.constant 640 : index
    %148 = vector.load %arg11[%c35_241, %c640_242] : memref<56x1152xf32, #tpu.memory_space<vmem>>, vector<5x128xf32>
    tpu.vector_store %arg11[%c35_241, %c640_242], %147 {strides = array<i32>} : memref<56x1152xf32, #tpu.memory_space<vmem>>, vector<5x128xf32>,
    %c77 = arith.constant 77 : index
    %c0_243 = arith.constant 0 : index
    %149 = vector.load %arg10[%c77, %c0_243] : memref<104x128xf32, #tpu.memory_space<vmem>>, vector<5x128xf32>
    %c35_244 = arith.constant 35 : index
    %c768_245 = arith.constant 768 : index
    %150 = vector.load %arg11[%c35_244, %c768_245] : memref<56x1152xf32, #tpu.memory_space<vmem>>, vector<5x128xf32>
    tpu.vector_store %arg11[%c35_244, %c768_245], %149 {strides = array<i32>} : memref<56x1152xf32, #tpu.memory_space<vmem>>, vector<5x128xf32>,
    %c78 = arith.constant 78 : index
    %c0_246 = arith.constant 0 : index
    %151 = vector.load %arg10[%c78, %c0_246] : memref<104x128xf32, #tpu.memory_space<vmem>>, vector<5x128xf32>
    %c35_247 = arith.constant 35 : index
    %c896_248 = arith.constant 896 : index
    %152 = vector.load %arg11[%c35_247, %c896_248] : memref<56x1152xf32, #tpu.memory_space<vmem>>, vector<5x128xf32>
    tpu.vector_store %arg11[%c35_247, %c896_248], %151 {strides = array<i32>} : memref<56x1152xf32, #tpu.memory_space<vmem>>, vector<5x128xf32>,
    %c79 = arith.constant 79 : index
    %c0_249 = arith.constant 0 : index
    %153 = vector.load %arg10[%c79, %c0_249] : memref<104x128xf32, #tpu.memory_space<vmem>>, vector<5x128xf32>
    %c35_250 = arith.constant 35 : index
    %c1024_251 = arith.constant 1024 : index
    %154 = vector.load %arg11[%c35_250, %c1024_251] : memref<56x1152xf32, #tpu.memory_space<vmem>>, vector<5x128xf32>
    tpu.vector_store %arg11[%c35_250, %c1024_251], %153 {strides = array<i32>} : memref<56x1152xf32, #tpu.memory_space<vmem>>, vector<5x128xf32>,
    %c70_252 = arith.constant 70 : index
    %c0_253 = arith.constant 0 : index
    %155 = vector.load %arg10[%c70_252, %c0_253] : memref<104x128xf32, #tpu.memory_space<vmem>>, vector<5x128xf32>
    %c40 = arith.constant 40 : index
    %c0_254 = arith.constant 0 : index
    %156 = vector.load %arg11[%c40, %c0_254] : memref<56x1152xf32, #tpu.memory_space<vmem>>, vector<5x128xf32>
    tpu.vector_store %arg11[%c40, %c0_254], %155 {strides = array<i32>} : memref<56x1152xf32, #tpu.memory_space<vmem>>, vector<5x128xf32>,
    %c71_255 = arith.constant 71 : index
    %c0_256 = arith.constant 0 : index
    %157 = vector.load %arg10[%c71_255, %c0_256] : memref<104x128xf32, #tpu.memory_space<vmem>>, vector<5x128xf32>
    %c40_257 = arith.constant 40 : index
    %c128_258 = arith.constant 128 : index
    %158 = vector.load %arg11[%c40_257, %c128_258] : memref<56x1152xf32, #tpu.memory_space<vmem>>, vector<5x128xf32>
    tpu.vector_store %arg11[%c40_257, %c128_258], %157 {strides = array<i32>} : memref<56x1152xf32, #tpu.memory_space<vmem>>, vector<5x128xf32>,
    %c72_259 = arith.constant 72 : index
    %c0_260 = arith.constant 0 : index
    %159 = vector.load %arg10[%c72_259, %c0_260] : memref<104x128xf32, #tpu.memory_space<vmem>>, vector<5x128xf32>
    %c40_261 = arith.constant 40 : index
    %c256_262 = arith.constant 256 : index
    %160 = vector.load %arg11[%c40_261, %c256_262] : memref<56x1152xf32, #tpu.memory_space<vmem>>, vector<5x128xf32>
    tpu.vector_store %arg11[%c40_261, %c256_262], %159 {strides = array<i32>} : memref<56x1152xf32, #tpu.memory_space<vmem>>, vector<5x128xf32>,
    %c77_263 = arith.constant 77 : index
    %c0_264 = arith.constant 0 : index
    %161 = vector.load %arg10[%c77_263, %c0_264] : memref<104x128xf32, #tpu.memory_space<vmem>>, vector<5x128xf32>
    %c40_265 = arith.constant 40 : index
    %c384_266 = arith.constant 384 : index
    %162 = vector.load %arg11[%c40_265, %c384_266] : memref<56x1152xf32, #tpu.memory_space<vmem>>, vector<5x128xf32>
    tpu.vector_store %arg11[%c40_265, %c384_266], %161 {strides = array<i32>} : memref<56x1152xf32, #tpu.memory_space<vmem>>, vector<5x128xf32>,
    %c78_267 = arith.constant 78 : index
    %c0_268 = arith.constant 0 : index
    %163 = vector.load %arg10[%c78_267, %c0_268] : memref<104x128xf32, #tpu.memory_space<vmem>>, vector<5x128xf32>
    %c40_269 = arith.constant 40 : index
    %c512_270 = arith.constant 512 : index
    %164 = vector.load %arg11[%c40_269, %c512_270] : memref<56x1152xf32, #tpu.memory_space<vmem>>, vector<5x128xf32>
    tpu.vector_store %arg11[%c40_269, %c512_270], %163 {strides = array<i32>} : memref<56x1152xf32, #tpu.memory_space<vmem>>, vector<5x128xf32>,
    %c79_271 = arith.constant 79 : index
    %c0_272 = arith.constant 0 : index
    %165 = vector.load %arg10[%c79_271, %c0_272] : memref<104x128xf32, #tpu.memory_space<vmem>>, vector<5x128xf32>
    %c40_273 = arith.constant 40 : index
    %c640_274 = arith.constant 640 : index
    %166 = vector.load %arg11[%c40_273, %c640_274] : memref<56x1152xf32, #tpu.memory_space<vmem>>, vector<5x128xf32>
    tpu.vector_store %arg11[%c40_273, %c640_274], %165 {strides = array<i32>} : memref<56x1152xf32, #tpu.memory_space<vmem>>, vector<5x128xf32>,
    %c84 = arith.constant 84 : index
    %c0_275 = arith.constant 0 : index
    %167 = vector.load %arg10[%c84, %c0_275] : memref<104x128xf32, #tpu.memory_space<vmem>>, vector<5x128xf32>
    %c40_276 = arith.constant 40 : index
    %c768_277 = arith.constant 768 : index
    %168 = vector.load %arg11[%c40_276, %c768_277] : memref<56x1152xf32, #tpu.memory_space<vmem>>, vector<5x128xf32>
    tpu.vector_store %arg11[%c40_276, %c768_277], %167 {strides = array<i32>} : memref<56x1152xf32, #tpu.memory_space<vmem>>, vector<5x128xf32>,
    %c85 = arith.constant 85 : index
    %c0_278 = arith.constant 0 : index
    %169 = vector.load %arg10[%c85, %c0_278] : memref<104x128xf32, #tpu.memory_space<vmem>>, vector<5x128xf32>
    %c40_279 = arith.constant 40 : index
    %c896_280 = arith.constant 896 : index
    %170 = vector.load %arg11[%c40_279, %c896_280] : memref<56x1152xf32, #tpu.memory_space<vmem>>, vector<5x128xf32>
    tpu.vector_store %arg11[%c40_279, %c896_280], %169 {strides = array<i32>} : memref<56x1152xf32, #tpu.memory_space<vmem>>, vector<5x128xf32>,
    %c86 = arith.constant 86 : index
    %c0_281 = arith.constant 0 : index
    %171 = vector.load %arg10[%c86, %c0_281] : memref<104x128xf32, #tpu.memory_space<vmem>>, vector<5x128xf32>
    %c40_282 = arith.constant 40 : index
    %c1024_283 = arith.constant 1024 : index
    %172 = vector.load %arg11[%c40_282, %c1024_283] : memref<56x1152xf32, #tpu.memory_space<vmem>>, vector<5x128xf32>
    tpu.vector_store %arg11[%c40_282, %c1024_283], %171 {strides = array<i32>} : memref<56x1152xf32, #tpu.memory_space<vmem>>, vector<5x128xf32>,
    %c77_284 = arith.constant 77 : index
    %c0_285 = arith.constant 0 : index
    %173 = vector.load %arg10[%c77_284, %c0_285] : memref<104x128xf32, #tpu.memory_space<vmem>>, vector<5x128xf32>
    %c45 = arith.constant 45 : index
    %c0_286 = arith.constant 0 : index
    %174 = vector.load %arg11[%c45, %c0_286] : memref<56x1152xf32, #tpu.memory_space<vmem>>, vector<5x128xf32>
    tpu.vector_store %arg11[%c45, %c0_286], %173 {strides = array<i32>} : memref<56x1152xf32, #tpu.memory_space<vmem>>, vector<5x128xf32>,
    %c78_287 = arith.constant 78 : index
    %c0_288 = arith.constant 0 : index
    %175 = vector.load %arg10[%c78_287, %c0_288] : memref<104x128xf32, #tpu.memory_space<vmem>>, vector<5x128xf32>
    %c45_289 = arith.constant 45 : index
    %c128_290 = arith.constant 128 : index
    %176 = vector.load %arg11[%c45_289, %c128_290] : memref<56x1152xf32, #tpu.memory_space<vmem>>, vector<5x128xf32>
    tpu.vector_store %arg11[%c45_289, %c128_290], %175 {strides = array<i32>} : memref<56x1152xf32, #tpu.memory_space<vmem>>, vector<5x128xf32>,
    %c79_291 = arith.constant 79 : index
    %c0_292 = arith.constant 0 : index
    %177 = vector.load %arg10[%c79_291, %c0_292] : memref<104x128xf32, #tpu.memory_space<vmem>>, vector<5x128xf32>
    %c45_293 = arith.constant 45 : index
    %c256_294 = arith.constant 256 : index
    %178 = vector.load %arg11[%c45_293, %c256_294] : memref<56x1152xf32, #tpu.memory_space<vmem>>, vector<5x128xf32>
    tpu.vector_store %arg11[%c45_293, %c256_294], %177 {strides = array<i32>} : memref<56x1152xf32, #tpu.memory_space<vmem>>, vector<5x128xf32>,
    %c84_295 = arith.constant 84 : index
    %c0_296 = arith.constant 0 : index
    %179 = vector.load %arg10[%c84_295, %c0_296] : memref<104x128xf32, #tpu.memory_space<vmem>>, vector<5x128xf32>
    %c45_297 = arith.constant 45 : index
    %c384_298 = arith.constant 384 : index
    %180 = vector.load %arg11[%c45_297, %c384_298] : memref<56x1152xf32, #tpu.memory_space<vmem>>, vector<5x128xf32>
    tpu.vector_store %arg11[%c45_297, %c384_298], %179 {strides = array<i32>} : memref<56x1152xf32, #tpu.memory_space<vmem>>, vector<5x128xf32>,
    %c85_299 = arith.constant 85 : index
    %c0_300 = arith.constant 0 : index
    %181 = vector.load %arg10[%c85_299, %c0_300] : memref<104x128xf32, #tpu.memory_space<vmem>>, vector<5x128xf32>
    %c45_301 = arith.constant 45 : index
    %c512_302 = arith.constant 512 : index
    %182 = vector.load %arg11[%c45_301, %c512_302] : memref<56x1152xf32, #tpu.memory_space<vmem>>, vector<5x128xf32>
    tpu.vector_store %arg11[%c45_301, %c512_302], %181 {strides = array<i32>} : memref<56x1152xf32, #tpu.memory_space<vmem>>, vector<5x128xf32>,
    %c86_303 = arith.constant 86 : index
    %c0_304 = arith.constant 0 : index
    %183 = vector.load %arg10[%c86_303, %c0_304] : memref<104x128xf32, #tpu.memory_space<vmem>>, vector<5x128xf32>
    %c45_305 = arith.constant 45 : index
    %c640_306 = arith.constant 640 : index
    %184 = vector.load %arg11[%c45_305, %c640_306] : memref<56x1152xf32, #tpu.memory_space<vmem>>, vector<5x128xf32>
    tpu.vector_store %arg11[%c45_305, %c640_306], %183 {strides = array<i32>} : memref<56x1152xf32, #tpu.memory_space<vmem>>, vector<5x128xf32>,
    %c91 = arith.constant 91 : index
    %c0_307 = arith.constant 0 : index
    %185 = vector.load %arg10[%c91, %c0_307] : memref<104x128xf32, #tpu.memory_space<vmem>>, vector<5x128xf32>
    %c45_308 = arith.constant 45 : index
    %c768_309 = arith.constant 768 : index
    %186 = vector.load %arg11[%c45_308, %c768_309] : memref<56x1152xf32, #tpu.memory_space<vmem>>, vector<5x128xf32>
    tpu.vector_store %arg11[%c45_308, %c768_309], %185 {strides = array<i32>} : memref<56x1152xf32, #tpu.memory_space<vmem>>, vector<5x128xf32>,
    %c92 = arith.constant 92 : index
    %c0_310 = arith.constant 0 : index
    %187 = vector.load %arg10[%c92, %c0_310] : memref<104x128xf32, #tpu.memory_space<vmem>>, vector<5x128xf32>
    %c45_311 = arith.constant 45 : index
    %c896_312 = arith.constant 896 : index
    %188 = vector.load %arg11[%c45_311, %c896_312] : memref<56x1152xf32, #tpu.memory_space<vmem>>, vector<5x128xf32>
    tpu.vector_store %arg11[%c45_311, %c896_312], %187 {strides = array<i32>} : memref<56x1152xf32, #tpu.memory_space<vmem>>, vector<5x128xf32>,
    %c93 = arith.constant 93 : index
    %c0_313 = arith.constant 0 : index
    %189 = vector.load %arg10[%c93, %c0_313] : memref<104x128xf32, #tpu.memory_space<vmem>>, vector<5x128xf32>
    %c45_314 = arith.constant 45 : index
    %c1024_315 = arith.constant 1024 : index
    %190 = vector.load %arg11[%c45_314, %c1024_315] : memref<56x1152xf32, #tpu.memory_space<vmem>>, vector<5x128xf32>
    tpu.vector_store %arg11[%c45_314, %c1024_315], %189 {strides = array<i32>} : memref<56x1152xf32, #tpu.memory_space<vmem>>, vector<5x128xf32>,
    %c0_316 = arith.constant 0 : index
    %c0_317 = arith.constant 0 : index
    %191 = vector.load %arg11[%c0_316, %c0_317] : memref<56x1152xf32, #tpu.memory_space<vmem>>, vector<56x1152xf32>
    %c0_318 = arith.constant 0 : index
    %c0_319 = arith.constant 0 : index
    %192 = vector.load %arg3[%c0_318, %c0_319] : memref<1152x128xf32, #tpu.memory_space<vmem>>, vector<1152x128xf32>
    %cst_320 = arith.constant dense<0.000000e+00> : vector<56x128xf32>
    %193 = tpu.matmul %191, %192, %cst_320 {dimension_numbers = #tpu.dot_dimension_numbers<[1], [0], [0], [1], [0, 0, 1, 1], [], []>} : vector<56x1152xf32>, vector<1152x128xf32>, vector<56x128xf32> -> vector<56x128xf32>
    %c0_321 = arith.constant 0 : index
    %c0_322 = arith.constant 0 : index
    %194 = vector.load %arg4[%c0_321, %c0_322] : memref<1x128xf32, #tpu.memory_space<vmem>>, vector<1x128xf32>
    %195 = vector.broadcast %194 : vector<1x128xf32> to vector<56x128xf32>
    %196 = arith.addf %193, %195 : vector<56x128xf32>
    %cst_323 = arith.constant 0.000000e+00 : f32
    %197 = vector.broadcast %cst_323 : f32 to vector<56x128xf32>
    %198 = arith.maximumf %196, %197 : vector<56x128xf32>
    %c0_324 = arith.constant 0 : index
    %c0_325 = arith.constant 0 : index
    %199 = vector.load %arg12[%c0_324, %c0_325] : memref<56x128xf32, #tpu.memory_space<vmem>>, vector<56x128xf32>
    tpu.vector_store %arg12[%c0_324, %c0_325], %198 {strides = array<i32>} : memref<56x128xf32, #tpu.memory_space<vmem>>, vector<56x128xf32>,
    %cst_326 = arith.constant 0.000000e+00 : f32
    %200 = vector.broadcast %cst_326 : f32 to vector<6x1152xf32>
    %c18 = arith.constant 18 : index
    %c0_327 = arith.constant 0 : index
    %201 = vector.load %arg13[%c18, %c0_327] : memref<24x1152xf32, #tpu.memory_space<vmem>>, vector<6x1152xf32>
    tpu.vector_store %arg13[%c18, %c0_327], %200 {strides = array<i32>} : memref<24x1152xf32, #tpu.memory_space<vmem>>, vector<6x1152xf32>,
    %c0_328 = arith.constant 0 : index
    %c0_329 = arith.constant 0 : index
    %202 = vector.load %arg12[%c0_328, %c0_329] : memref<56x128xf32, #tpu.memory_space<vmem>>, vector<3x128xf32>
    %c0_330 = arith.constant 0 : index
    %c0_331 = arith.constant 0 : index
    %203 = vector.load %arg13[%c0_330, %c0_331] : memref<24x1152xf32, #tpu.memory_space<vmem>>, vector<3x128xf32>
    tpu.vector_store %arg13[%c0_330, %c0_331], %202 {strides = array<i32>} : memref<24x1152xf32, #tpu.memory_space<vmem>>, vector<3x128xf32>,
    %c1_332 = arith.constant 1 : index
    %c0_333 = arith.constant 0 : index
    %204 = vector.load %arg12[%c1_332, %c0_333] : memref<56x128xf32, #tpu.memory_space<vmem>>, vector<3x128xf32>
    %c0_334 = arith.constant 0 : index
    %c128_335 = arith.constant 128 : index
    %205 = vector.load %arg13[%c0_334, %c128_335] : memref<24x1152xf32, #tpu.memory_space<vmem>>, vector<3x128xf32>
    tpu.vector_store %arg13[%c0_334, %c128_335], %204 {strides = array<i32>} : memref<24x1152xf32, #tpu.memory_space<vmem>>, vector<3x128xf32>,
    %c2_336 = arith.constant 2 : index
    %c0_337 = arith.constant 0 : index
    %206 = vector.load %arg12[%c2_336, %c0_337] : memref<56x128xf32, #tpu.memory_space<vmem>>, vector<3x128xf32>
    %c0_338 = arith.constant 0 : index
    %c256_339 = arith.constant 256 : index
    %207 = vector.load %arg13[%c0_338, %c256_339] : memref<24x1152xf32, #tpu.memory_space<vmem>>, vector<3x128xf32>
    tpu.vector_store %arg13[%c0_338, %c256_339], %206 {strides = array<i32>} : memref<24x1152xf32, #tpu.memory_space<vmem>>, vector<3x128xf32>,
    %c5_340 = arith.constant 5 : index
    %c0_341 = arith.constant 0 : index
    %208 = vector.load %arg12[%c5_340, %c0_341] : memref<56x128xf32, #tpu.memory_space<vmem>>, vector<3x128xf32>
    %c0_342 = arith.constant 0 : index
    %c384_343 = arith.constant 384 : index
    %209 = vector.load %arg13[%c0_342, %c384_343] : memref<24x1152xf32, #tpu.memory_space<vmem>>, vector<3x128xf32>
    tpu.vector_store %arg13[%c0_342, %c384_343], %208 {strides = array<i32>} : memref<24x1152xf32, #tpu.memory_space<vmem>>, vector<3x128xf32>,
    %c6 = arith.constant 6 : index
    %c0_344 = arith.constant 0 : index
    %210 = vector.load %arg12[%c6, %c0_344] : memref<56x128xf32, #tpu.memory_space<vmem>>, vector<3x128xf32>
    %c0_345 = arith.constant 0 : index
    %c512_346 = arith.constant 512 : index
    %211 = vector.load %arg13[%c0_345, %c512_346] : memref<24x1152xf32, #tpu.memory_space<vmem>>, vector<3x128xf32>
    tpu.vector_store %arg13[%c0_345, %c512_346], %210 {strides = array<i32>} : memref<24x1152xf32, #tpu.memory_space<vmem>>, vector<3x128xf32>,
    %c7_347 = arith.constant 7 : index
    %c0_348 = arith.constant 0 : index
    %212 = vector.load %arg12[%c7_347, %c0_348] : memref<56x128xf32, #tpu.memory_space<vmem>>, vector<3x128xf32>
    %c0_349 = arith.constant 0 : index
    %c640_350 = arith.constant 640 : index
    %213 = vector.load %arg13[%c0_349, %c640_350] : memref<24x1152xf32, #tpu.memory_space<vmem>>, vector<3x128xf32>
    tpu.vector_store %arg13[%c0_349, %c640_350], %212 {strides = array<i32>} : memref<24x1152xf32, #tpu.memory_space<vmem>>, vector<3x128xf32>,
    %c10_351 = arith.constant 10 : index
    %c0_352 = arith.constant 0 : index
    %214 = vector.load %arg12[%c10_351, %c0_352] : memref<56x128xf32, #tpu.memory_space<vmem>>, vector<3x128xf32>
    %c0_353 = arith.constant 0 : index
    %c768_354 = arith.constant 768 : index
    %215 = vector.load %arg13[%c0_353, %c768_354] : memref<24x1152xf32, #tpu.memory_space<vmem>>, vector<3x128xf32>
    tpu.vector_store %arg13[%c0_353, %c768_354], %214 {strides = array<i32>} : memref<24x1152xf32, #tpu.memory_space<vmem>>, vector<3x128xf32>,
    %c11 = arith.constant 11 : index
    %c0_355 = arith.constant 0 : index
    %216 = vector.load %arg12[%c11, %c0_355] : memref<56x128xf32, #tpu.memory_space<vmem>>, vector<3x128xf32>
    %c0_356 = arith.constant 0 : index
    %c896_357 = arith.constant 896 : index
    %217 = vector.load %arg13[%c0_356, %c896_357] : memref<24x1152xf32, #tpu.memory_space<vmem>>, vector<3x128xf32>
    tpu.vector_store %arg13[%c0_356, %c896_357], %216 {strides = array<i32>} : memref<24x1152xf32, #tpu.memory_space<vmem>>, vector<3x128xf32>,
    %c12 = arith.constant 12 : index
    %c0_358 = arith.constant 0 : index
    %218 = vector.load %arg12[%c12, %c0_358] : memref<56x128xf32, #tpu.memory_space<vmem>>, vector<3x128xf32>
    %c0_359 = arith.constant 0 : index
    %c1024_360 = arith.constant 1024 : index
    %219 = vector.load %arg13[%c0_359, %c1024_360] : memref<24x1152xf32, #tpu.memory_space<vmem>>, vector<3x128xf32>
    tpu.vector_store %arg13[%c0_359, %c1024_360], %218 {strides = array<i32>} : memref<24x1152xf32, #tpu.memory_space<vmem>>, vector<3x128xf32>,
    %c5_361 = arith.constant 5 : index
    %c0_362 = arith.constant 0 : index
    %220 = vector.load %arg12[%c5_361, %c0_362] : memref<56x128xf32, #tpu.memory_space<vmem>>, vector<3x128xf32>
    %c3 = arith.constant 3 : index
    %c0_363 = arith.constant 0 : index
    %221 = vector.load %arg13[%c3, %c0_363] : memref<24x1152xf32, #tpu.memory_space<vmem>>, vector<3x128xf32>
    tpu.vector_store %arg13[%c3, %c0_363], %220 {strides = array<i32>} : memref<24x1152xf32, #tpu.memory_space<vmem>>, vector<3x128xf32>,
    %c6_364 = arith.constant 6 : index
    %c0_365 = arith.constant 0 : index
    %222 = vector.load %arg12[%c6_364, %c0_365] : memref<56x128xf32, #tpu.memory_space<vmem>>, vector<3x128xf32>
    %c3_366 = arith.constant 3 : index
    %c128_367 = arith.constant 128 : index
    %223 = vector.load %arg13[%c3_366, %c128_367] : memref<24x1152xf32, #tpu.memory_space<vmem>>, vector<3x128xf32>
    tpu.vector_store %arg13[%c3_366, %c128_367], %222 {strides = array<i32>} : memref<24x1152xf32, #tpu.memory_space<vmem>>, vector<3x128xf32>,
    %c7_368 = arith.constant 7 : index
    %c0_369 = arith.constant 0 : index
    %224 = vector.load %arg12[%c7_368, %c0_369] : memref<56x128xf32, #tpu.memory_space<vmem>>, vector<3x128xf32>
    %c3_370 = arith.constant 3 : index
    %c256_371 = arith.constant 256 : index
    %225 = vector.load %arg13[%c3_370, %c256_371] : memref<24x1152xf32, #tpu.memory_space<vmem>>, vector<3x128xf32>
    tpu.vector_store %arg13[%c3_370, %c256_371], %224 {strides = array<i32>} : memref<24x1152xf32, #tpu.memory_space<vmem>>, vector<3x128xf32>,
    %c10_372 = arith.constant 10 : index
    %c0_373 = arith.constant 0 : index
    %226 = vector.load %arg12[%c10_372, %c0_373] : memref<56x128xf32, #tpu.memory_space<vmem>>, vector<3x128xf32>
    %c3_374 = arith.constant 3 : index
    %c384_375 = arith.constant 384 : index
    %227 = vector.load %arg13[%c3_374, %c384_375] : memref<24x1152xf32, #tpu.memory_space<vmem>>, vector<3x128xf32>
    tpu.vector_store %arg13[%c3_374, %c384_375], %226 {strides = array<i32>} : memref<24x1152xf32, #tpu.memory_space<vmem>>, vector<3x128xf32>,
    %c11_376 = arith.constant 11 : index
    %c0_377 = arith.constant 0 : index
    %228 = vector.load %arg12[%c11_376, %c0_377] : memref<56x128xf32, #tpu.memory_space<vmem>>, vector<3x128xf32>
    %c3_378 = arith.constant 3 : index
    %c512_379 = arith.constant 512 : index
    %229 = vector.load %arg13[%c3_378, %c512_379] : memref<24x1152xf32, #tpu.memory_space<vmem>>, vector<3x128xf32>
    tpu.vector_store %arg13[%c3_378, %c512_379], %228 {strides = array<i32>} : memref<24x1152xf32, #tpu.memory_space<vmem>>, vector<3x128xf32>,
    %c12_380 = arith.constant 12 : index
    %c0_381 = arith.constant 0 : index
    %230 = vector.load %arg12[%c12_380, %c0_381] : memref<56x128xf32, #tpu.memory_space<vmem>>, vector<3x128xf32>
    %c3_382 = arith.constant 3 : index
    %c640_383 = arith.constant 640 : index
    %231 = vector.load %arg13[%c3_382, %c640_383] : memref<24x1152xf32, #tpu.memory_space<vmem>>, vector<3x128xf32>
    tpu.vector_store %arg13[%c3_382, %c640_383], %230 {strides = array<i32>} : memref<24x1152xf32, #tpu.memory_space<vmem>>, vector<3x128xf32>,
    %c15_384 = arith.constant 15 : index
    %c0_385 = arith.constant 0 : index
    %232 = vector.load %arg12[%c15_384, %c0_385] : memref<56x128xf32, #tpu.memory_space<vmem>>, vector<3x128xf32>
    %c3_386 = arith.constant 3 : index
    %c768_387 = arith.constant 768 : index
    %233 = vector.load %arg13[%c3_386, %c768_387] : memref<24x1152xf32, #tpu.memory_space<vmem>>, vector<3x128xf32>
    tpu.vector_store %arg13[%c3_386, %c768_387], %232 {strides = array<i32>} : memref<24x1152xf32, #tpu.memory_space<vmem>>, vector<3x128xf32>,
    %c16_388 = arith.constant 16 : index
    %c0_389 = arith.constant 0 : index
    %234 = vector.load %arg12[%c16_388, %c0_389] : memref<56x128xf32, #tpu.memory_space<vmem>>, vector<3x128xf32>
    %c3_390 = arith.constant 3 : index
    %c896_391 = arith.constant 896 : index
    %235 = vector.load %arg13[%c3_390, %c896_391] : memref<24x1152xf32, #tpu.memory_space<vmem>>, vector<3x128xf32>
    tpu.vector_store %arg13[%c3_390, %c896_391], %234 {strides = array<i32>} : memref<24x1152xf32, #tpu.memory_space<vmem>>, vector<3x128xf32>,
    %c17 = arith.constant 17 : index
    %c0_392 = arith.constant 0 : index
    %236 = vector.load %arg12[%c17, %c0_392] : memref<56x128xf32, #tpu.memory_space<vmem>>, vector<3x128xf32>
    %c3_393 = arith.constant 3 : index
    %c1024_394 = arith.constant 1024 : index
    %237 = vector.load %arg13[%c3_393, %c1024_394] : memref<24x1152xf32, #tpu.memory_space<vmem>>, vector<3x128xf32>
    tpu.vector_store %arg13[%c3_393, %c1024_394], %236 {strides = array<i32>} : memref<24x1152xf32, #tpu.memory_space<vmem>>, vector<3x128xf32>,
    %c10_395 = arith.constant 10 : index
    %c0_396 = arith.constant 0 : index
    %238 = vector.load %arg12[%c10_395, %c0_396] : memref<56x128xf32, #tpu.memory_space<vmem>>, vector<3x128xf32>
    %c6_397 = arith.constant 6 : index
    %c0_398 = arith.constant 0 : index
    %239 = vector.load %arg13[%c6_397, %c0_398] : memref<24x1152xf32, #tpu.memory_space<vmem>>, vector<3x128xf32>
    tpu.vector_store %arg13[%c6_397, %c0_398], %238 {strides = array<i32>} : memref<24x1152xf32, #tpu.memory_space<vmem>>, vector<3x128xf32>,
    %c11_399 = arith.constant 11 : index
    %c0_400 = arith.constant 0 : index
    %240 = vector.load %arg12[%c11_399, %c0_400] : memref<56x128xf32, #tpu.memory_space<vmem>>, vector<3x128xf32>
    %c6_401 = arith.constant 6 : index
    %c128_402 = arith.constant 128 : index
    %241 = vector.load %arg13[%c6_401, %c128_402] : memref<24x1152xf32, #tpu.memory_space<vmem>>, vector<3x128xf32>
    tpu.vector_store %arg13[%c6_401, %c128_402], %240 {strides = array<i32>} : memref<24x1152xf32, #tpu.memory_space<vmem>>, vector<3x128xf32>,
    %c12_403 = arith.constant 12 : index
    %c0_404 = arith.constant 0 : index
    %242 = vector.load %arg12[%c12_403, %c0_404] : memref<56x128xf32, #tpu.memory_space<vmem>>, vector<3x128xf32>
    %c6_405 = arith.constant 6 : index
    %c256_406 = arith.constant 256 : index
    %243 = vector.load %arg13[%c6_405, %c256_406] : memref<24x1152xf32, #tpu.memory_space<vmem>>, vector<3x128xf32>
    tpu.vector_store %arg13[%c6_405, %c256_406], %242 {strides = array<i32>} : memref<24x1152xf32, #tpu.memory_space<vmem>>, vector<3x128xf32>,
    %c15_407 = arith.constant 15 : index
    %c0_408 = arith.constant 0 : index
    %244 = vector.load %arg12[%c15_407, %c0_408] : memref<56x128xf32, #tpu.memory_space<vmem>>, vector<3x128xf32>
    %c6_409 = arith.constant 6 : index
    %c384_410 = arith.constant 384 : index
    %245 = vector.load %arg13[%c6_409, %c384_410] : memref<24x1152xf32, #tpu.memory_space<vmem>>, vector<3x128xf32>
    tpu.vector_store %arg13[%c6_409, %c384_410], %244 {strides = array<i32>} : memref<24x1152xf32, #tpu.memory_space<vmem>>, vector<3x128xf32>,
    %c16_411 = arith.constant 16 : index
    %c0_412 = arith.constant 0 : index
    %246 = vector.load %arg12[%c16_411, %c0_412] : memref<56x128xf32, #tpu.memory_space<vmem>>, vector<3x128xf32>
    %c6_413 = arith.constant 6 : index
    %c512_414 = arith.constant 512 : index
    %247 = vector.load %arg13[%c6_413, %c512_414] : memref<24x1152xf32, #tpu.memory_space<vmem>>, vector<3x128xf32>
    tpu.vector_store %arg13[%c6_413, %c512_414], %246 {strides = array<i32>} : memref<24x1152xf32, #tpu.memory_space<vmem>>, vector<3x128xf32>,
    %c17_415 = arith.constant 17 : index
    %c0_416 = arith.constant 0 : index
    %248 = vector.load %arg12[%c17_415, %c0_416] : memref<56x128xf32, #tpu.memory_space<vmem>>, vector<3x128xf32>
    %c6_417 = arith.constant 6 : index
    %c640_418 = arith.constant 640 : index
    %249 = vector.load %arg13[%c6_417, %c640_418] : memref<24x1152xf32, #tpu.memory_space<vmem>>, vector<3x128xf32>
    tpu.vector_store %arg13[%c6_417, %c640_418], %248 {strides = array<i32>} : memref<24x1152xf32, #tpu.memory_space<vmem>>, vector<3x128xf32>,
    %c20_419 = arith.constant 20 : index
    %c0_420 = arith.constant 0 : index
    %250 = vector.load %arg12[%c20_419, %c0_420] : memref<56x128xf32, #tpu.memory_space<vmem>>, vector<3x128xf32>
    %c6_421 = arith.constant 6 : index
    %c768_422 = arith.constant 768 : index
    %251 = vector.load %arg13[%c6_421, %c768_422] : memref<24x1152xf32, #tpu.memory_space<vmem>>, vector<3x128xf32>
    tpu.vector_store %arg13[%c6_421, %c768_422], %250 {strides = array<i32>} : memref<24x1152xf32, #tpu.memory_space<vmem>>, vector<3x128xf32>,
    %c21_423 = arith.constant 21 : index
    %c0_424 = arith.constant 0 : index
    %252 = vector.load %arg12[%c21_423, %c0_424] : memref<56x128xf32, #tpu.memory_space<vmem>>, vector<3x128xf32>
    %c6_425 = arith.constant 6 : index
    %c896_426 = arith.constant 896 : index
    %253 = vector.load %arg13[%c6_425, %c896_426] : memref<24x1152xf32, #tpu.memory_space<vmem>>, vector<3x128xf32>
    tpu.vector_store %arg13[%c6_425, %c896_426], %252 {strides = array<i32>} : memref<24x1152xf32, #tpu.memory_space<vmem>>, vector<3x128xf32>,
    %c22_427 = arith.constant 22 : index
    %c0_428 = arith.constant 0 : index
    %254 = vector.load %arg12[%c22_427, %c0_428] : memref<56x128xf32, #tpu.memory_space<vmem>>, vector<3x128xf32>
    %c6_429 = arith.constant 6 : index
    %c1024_430 = arith.constant 1024 : index
    %255 = vector.load %arg13[%c6_429, %c1024_430] : memref<24x1152xf32, #tpu.memory_space<vmem>>, vector<3x128xf32>
    tpu.vector_store %arg13[%c6_429, %c1024_430], %254 {strides = array<i32>} : memref<24x1152xf32, #tpu.memory_space<vmem>>, vector<3x128xf32>,
    %c25_431 = arith.constant 25 : index
    %c0_432 = arith.constant 0 : index
    %256 = vector.load %arg12[%c25_431, %c0_432] : memref<56x128xf32, #tpu.memory_space<vmem>>, vector<3x128xf32>
    %c9_433 = arith.constant 9 : index
    %c0_434 = arith.constant 0 : index
    %257 = vector.load %arg13[%c9_433, %c0_434] : memref<24x1152xf32, #tpu.memory_space<vmem>>, vector<3x128xf32>
    tpu.vector_store %arg13[%c9_433, %c0_434], %256 {strides = array<i32>} : memref<24x1152xf32, #tpu.memory_space<vmem>>, vector<3x128xf32>,
    %c26 = arith.constant 26 : index
    %c0_435 = arith.constant 0 : index
    %258 = vector.load %arg12[%c26, %c0_435] : memref<56x128xf32, #tpu.memory_space<vmem>>, vector<3x128xf32>
    %c9_436 = arith.constant 9 : index
    %c128_437 = arith.constant 128 : index
    %259 = vector.load %arg13[%c9_436, %c128_437] : memref<24x1152xf32, #tpu.memory_space<vmem>>, vector<3x128xf32>
    tpu.vector_store %arg13[%c9_436, %c128_437], %258 {strides = array<i32>} : memref<24x1152xf32, #tpu.memory_space<vmem>>, vector<3x128xf32>,
    %c27 = arith.constant 27 : index
    %c0_438 = arith.constant 0 : index
    %260 = vector.load %arg12[%c27, %c0_438] : memref<56x128xf32, #tpu.memory_space<vmem>>, vector<3x128xf32>
    %c9_439 = arith.constant 9 : index
    %c256_440 = arith.constant 256 : index
    %261 = vector.load %arg13[%c9_439, %c256_440] : memref<24x1152xf32, #tpu.memory_space<vmem>>, vector<3x128xf32>
    tpu.vector_store %arg13[%c9_439, %c256_440], %260 {strides = array<i32>} : memref<24x1152xf32, #tpu.memory_space<vmem>>, vector<3x128xf32>,
    %c30_441 = arith.constant 30 : index
    %c0_442 = arith.constant 0 : index
    %262 = vector.load %arg12[%c30_441, %c0_442] : memref<56x128xf32, #tpu.memory_space<vmem>>, vector<3x128xf32>
    %c9_443 = arith.constant 9 : index
    %c384_444 = arith.constant 384 : index
    %263 = vector.load %arg13[%c9_443, %c384_444] : memref<24x1152xf32, #tpu.memory_space<vmem>>, vector<3x128xf32>
    tpu.vector_store %arg13[%c9_443, %c384_444], %262 {strides = array<i32>} : memref<24x1152xf32, #tpu.memory_space<vmem>>, vector<3x128xf32>,
    %c31 = arith.constant 31 : index
    %c0_445 = arith.constant 0 : index
    %264 = vector.load %arg12[%c31, %c0_445] : memref<56x128xf32, #tpu.memory_space<vmem>>, vector<3x128xf32>
    %c9_446 = arith.constant 9 : index
    %c512_447 = arith.constant 512 : index
    %265 = vector.load %arg13[%c9_446, %c512_447] : memref<24x1152xf32, #tpu.memory_space<vmem>>, vector<3x128xf32>
    tpu.vector_store %arg13[%c9_446, %c512_447], %264 {strides = array<i32>} : memref<24x1152xf32, #tpu.memory_space<vmem>>, vector<3x128xf32>,
    %c32 = arith.constant 32 : index
    %c0_448 = arith.constant 0 : index
    %266 = vector.load %arg12[%c32, %c0_448] : memref<56x128xf32, #tpu.memory_space<vmem>>, vector<3x128xf32>
    %c9_449 = arith.constant 9 : index
    %c640_450 = arith.constant 640 : index
    %267 = vector.load %arg13[%c9_449, %c640_450] : memref<24x1152xf32, #tpu.memory_space<vmem>>, vector<3x128xf32>
    tpu.vector_store %arg13[%c9_449, %c640_450], %266 {strides = array<i32>} : memref<24x1152xf32, #tpu.memory_space<vmem>>, vector<3x128xf32>,
    %c35_451 = arith.constant 35 : index
    %c0_452 = arith.constant 0 : index
    %268 = vector.load %arg12[%c35_451, %c0_452] : memref<56x128xf32, #tpu.memory_space<vmem>>, vector<3x128xf32>
    %c9_453 = arith.constant 9 : index
    %c768_454 = arith.constant 768 : index
    %269 = vector.load %arg13[%c9_453, %c768_454] : memref<24x1152xf32, #tpu.memory_space<vmem>>, vector<3x128xf32>
    tpu.vector_store %arg13[%c9_453, %c768_454], %268 {strides = array<i32>} : memref<24x1152xf32, #tpu.memory_space<vmem>>, vector<3x128xf32>,
    %c36_455 = arith.constant 36 : index
    %c0_456 = arith.constant 0 : index
    %270 = vector.load %arg12[%c36_455, %c0_456] : memref<56x128xf32, #tpu.memory_space<vmem>>, vector<3x128xf32>
    %c9_457 = arith.constant 9 : index
    %c896_458 = arith.constant 896 : index
    %271 = vector.load %arg13[%c9_457, %c896_458] : memref<24x1152xf32, #tpu.memory_space<vmem>>, vector<3x128xf32>
    tpu.vector_store %arg13[%c9_457, %c896_458], %270 {strides = array<i32>} : memref<24x1152xf32, #tpu.memory_space<vmem>>, vector<3x128xf32>,
    %c37_459 = arith.constant 37 : index
    %c0_460 = arith.constant 0 : index
    %272 = vector.load %arg12[%c37_459, %c0_460] : memref<56x128xf32, #tpu.memory_space<vmem>>, vector<3x128xf32>
    %c9_461 = arith.constant 9 : index
    %c1024_462 = arith.constant 1024 : index
    %273 = vector.load %arg13[%c9_461, %c1024_462] : memref<24x1152xf32, #tpu.memory_space<vmem>>, vector<3x128xf32>
    tpu.vector_store %arg13[%c9_461, %c1024_462], %272 {strides = array<i32>} : memref<24x1152xf32, #tpu.memory_space<vmem>>, vector<3x128xf32>,
    %c30_463 = arith.constant 30 : index
    %c0_464 = arith.constant 0 : index
    %274 = vector.load %arg12[%c30_463, %c0_464] : memref<56x128xf32, #tpu.memory_space<vmem>>, vector<3x128xf32>
    %c12_465 = arith.constant 12 : index
    %c0_466 = arith.constant 0 : index
    %275 = vector.load %arg13[%c12_465, %c0_466] : memref<24x1152xf32, #tpu.memory_space<vmem>>, vector<3x128xf32>
    tpu.vector_store %arg13[%c12_465, %c0_466], %274 {strides = array<i32>} : memref<24x1152xf32, #tpu.memory_space<vmem>>, vector<3x128xf32>,
    %c31_467 = arith.constant 31 : index
    %c0_468 = arith.constant 0 : index
    %276 = vector.load %arg12[%c31_467, %c0_468] : memref<56x128xf32, #tpu.memory_space<vmem>>, vector<3x128xf32>
    %c12_469 = arith.constant 12 : index
    %c128_470 = arith.constant 128 : index
    %277 = vector.load %arg13[%c12_469, %c128_470] : memref<24x1152xf32, #tpu.memory_space<vmem>>, vector<3x128xf32>
    tpu.vector_store %arg13[%c12_469, %c128_470], %276 {strides = array<i32>} : memref<24x1152xf32, #tpu.memory_space<vmem>>, vector<3x128xf32>,
    %c32_471 = arith.constant 32 : index
    %c0_472 = arith.constant 0 : index
    %278 = vector.load %arg12[%c32_471, %c0_472] : memref<56x128xf32, #tpu.memory_space<vmem>>, vector<3x128xf32>
    %c12_473 = arith.constant 12 : index
    %c256_474 = arith.constant 256 : index
    %279 = vector.load %arg13[%c12_473, %c256_474] : memref<24x1152xf32, #tpu.memory_space<vmem>>, vector<3x128xf32>
    tpu.vector_store %arg13[%c12_473, %c256_474], %278 {strides = array<i32>} : memref<24x1152xf32, #tpu.memory_space<vmem>>, vector<3x128xf32>,
    %c35_475 = arith.constant 35 : index
    %c0_476 = arith.constant 0 : index
    %280 = vector.load %arg12[%c35_475, %c0_476] : memref<56x128xf32, #tpu.memory_space<vmem>>, vector<3x128xf32>
    %c12_477 = arith.constant 12 : index
    %c384_478 = arith.constant 384 : index
    %281 = vector.load %arg13[%c12_477, %c384_478] : memref<24x1152xf32, #tpu.memory_space<vmem>>, vector<3x128xf32>
    tpu.vector_store %arg13[%c12_477, %c384_478], %280 {strides = array<i32>} : memref<24x1152xf32, #tpu.memory_space<vmem>>, vector<3x128xf32>,
    %c36_479 = arith.constant 36 : index
    %c0_480 = arith.constant 0 : index
    %282 = vector.load %arg12[%c36_479, %c0_480] : memref<56x128xf32, #tpu.memory_space<vmem>>, vector<3x128xf32>
    %c12_481 = arith.constant 12 : index
    %c512_482 = arith.constant 512 : index
    %283 = vector.load %arg13[%c12_481, %c512_482] : memref<24x1152xf32, #tpu.memory_space<vmem>>, vector<3x128xf32>
    tpu.vector_store %arg13[%c12_481, %c512_482], %282 {strides = array<i32>} : memref<24x1152xf32, #tpu.memory_space<vmem>>, vector<3x128xf32>,
    %c37_483 = arith.constant 37 : index
    %c0_484 = arith.constant 0 : index
    %284 = vector.load %arg12[%c37_483, %c0_484] : memref<56x128xf32, #tpu.memory_space<vmem>>, vector<3x128xf32>
    %c12_485 = arith.constant 12 : index
    %c640_486 = arith.constant 640 : index
    %285 = vector.load %arg13[%c12_485, %c640_486] : memref<24x1152xf32, #tpu.memory_space<vmem>>, vector<3x128xf32>
    tpu.vector_store %arg13[%c12_485, %c640_486], %284 {strides = array<i32>} : memref<24x1152xf32, #tpu.memory_space<vmem>>, vector<3x128xf32>,
    %c40_487 = arith.constant 40 : index
    %c0_488 = arith.constant 0 : index
    %286 = vector.load %arg12[%c40_487, %c0_488] : memref<56x128xf32, #tpu.memory_space<vmem>>, vector<3x128xf32>
    %c12_489 = arith.constant 12 : index
    %c768_490 = arith.constant 768 : index
    %287 = vector.load %arg13[%c12_489, %c768_490] : memref<24x1152xf32, #tpu.memory_space<vmem>>, vector<3x128xf32>
    tpu.vector_store %arg13[%c12_489, %c768_490], %286 {strides = array<i32>} : memref<24x1152xf32, #tpu.memory_space<vmem>>, vector<3x128xf32>,
    %c41 = arith.constant 41 : index
    %c0_491 = arith.constant 0 : index
    %288 = vector.load %arg12[%c41, %c0_491] : memref<56x128xf32, #tpu.memory_space<vmem>>, vector<3x128xf32>
    %c12_492 = arith.constant 12 : index
    %c896_493 = arith.constant 896 : index
    %289 = vector.load %arg13[%c12_492, %c896_493] : memref<24x1152xf32, #tpu.memory_space<vmem>>, vector<3x128xf32>
    tpu.vector_store %arg13[%c12_492, %c896_493], %288 {strides = array<i32>} : memref<24x1152xf32, #tpu.memory_space<vmem>>, vector<3x128xf32>,
    %c42_494 = arith.constant 42 : index
    %c0_495 = arith.constant 0 : index
    %290 = vector.load %arg12[%c42_494, %c0_495] : memref<56x128xf32, #tpu.memory_space<vmem>>, vector<3x128xf32>
    %c12_496 = arith.constant 12 : index
    %c1024_497 = arith.constant 1024 : index
    %291 = vector.load %arg13[%c12_496, %c1024_497] : memref<24x1152xf32, #tpu.memory_space<vmem>>, vector<3x128xf32>
    tpu.vector_store %arg13[%c12_496, %c1024_497], %290 {strides = array<i32>} : memref<24x1152xf32, #tpu.memory_space<vmem>>, vector<3x128xf32>,
    %c35_498 = arith.constant 35 : index
    %c0_499 = arith.constant 0 : index
    %292 = vector.load %arg12[%c35_498, %c0_499] : memref<56x128xf32, #tpu.memory_space<vmem>>, vector<3x128xf32>
    %c15_500 = arith.constant 15 : index
    %c0_501 = arith.constant 0 : index
    %293 = vector.load %arg13[%c15_500, %c0_501] : memref<24x1152xf32, #tpu.memory_space<vmem>>, vector<3x128xf32>
    tpu.vector_store %arg13[%c15_500, %c0_501], %292 {strides = array<i32>} : memref<24x1152xf32, #tpu.memory_space<vmem>>, vector<3x128xf32>,
    %c36_502 = arith.constant 36 : index
    %c0_503 = arith.constant 0 : index
    %294 = vector.load %arg12[%c36_502, %c0_503] : memref<56x128xf32, #tpu.memory_space<vmem>>, vector<3x128xf32>
    %c15_504 = arith.constant 15 : index
    %c128_505 = arith.constant 128 : index
    %295 = vector.load %arg13[%c15_504, %c128_505] : memref<24x1152xf32, #tpu.memory_space<vmem>>, vector<3x128xf32>
    tpu.vector_store %arg13[%c15_504, %c128_505], %294 {strides = array<i32>} : memref<24x1152xf32, #tpu.memory_space<vmem>>, vector<3x128xf32>,
    %c37_506 = arith.constant 37 : index
    %c0_507 = arith.constant 0 : index
    %296 = vector.load %arg12[%c37_506, %c0_507] : memref<56x128xf32, #tpu.memory_space<vmem>>, vector<3x128xf32>
    %c15_508 = arith.constant 15 : index
    %c256_509 = arith.constant 256 : index
    %297 = vector.load %arg13[%c15_508, %c256_509] : memref<24x1152xf32, #tpu.memory_space<vmem>>, vector<3x128xf32>
    tpu.vector_store %arg13[%c15_508, %c256_509], %296 {strides = array<i32>} : memref<24x1152xf32, #tpu.memory_space<vmem>>, vector<3x128xf32>,
    %c40_510 = arith.constant 40 : index
    %c0_511 = arith.constant 0 : index
    %298 = vector.load %arg12[%c40_510, %c0_511] : memref<56x128xf32, #tpu.memory_space<vmem>>, vector<3x128xf32>
    %c15_512 = arith.constant 15 : index
    %c384_513 = arith.constant 384 : index
    %299 = vector.load %arg13[%c15_512, %c384_513] : memref<24x1152xf32, #tpu.memory_space<vmem>>, vector<3x128xf32>
    tpu.vector_store %arg13[%c15_512, %c384_513], %298 {strides = array<i32>} : memref<24x1152xf32, #tpu.memory_space<vmem>>, vector<3x128xf32>,
    %c41_514 = arith.constant 41 : index
    %c0_515 = arith.constant 0 : index
    %300 = vector.load %arg12[%c41_514, %c0_515] : memref<56x128xf32, #tpu.memory_space<vmem>>, vector<3x128xf32>
    %c15_516 = arith.constant 15 : index
    %c512_517 = arith.constant 512 : index
    %301 = vector.load %arg13[%c15_516, %c512_517] : memref<24x1152xf32, #tpu.memory_space<vmem>>, vector<3x128xf32>
    tpu.vector_store %arg13[%c15_516, %c512_517], %300 {strides = array<i32>} : memref<24x1152xf32, #tpu.memory_space<vmem>>, vector<3x128xf32>,
    %c42_518 = arith.constant 42 : index
    %c0_519 = arith.constant 0 : index
    %302 = vector.load %arg12[%c42_518, %c0_519] : memref<56x128xf32, #tpu.memory_space<vmem>>, vector<3x128xf32>
    %c15_520 = arith.constant 15 : index
    %c640_521 = arith.constant 640 : index
    %303 = vector.load %arg13[%c15_520, %c640_521] : memref<24x1152xf32, #tpu.memory_space<vmem>>, vector<3x128xf32>
    tpu.vector_store %arg13[%c15_520, %c640_521], %302 {strides = array<i32>} : memref<24x1152xf32, #tpu.memory_space<vmem>>, vector<3x128xf32>,
    %c45_522 = arith.constant 45 : index
    %c0_523 = arith.constant 0 : index
    %304 = vector.load %arg12[%c45_522, %c0_523] : memref<56x128xf32, #tpu.memory_space<vmem>>, vector<3x128xf32>
    %c15_524 = arith.constant 15 : index
    %c768_525 = arith.constant 768 : index
    %305 = vector.load %arg13[%c15_524, %c768_525] : memref<24x1152xf32, #tpu.memory_space<vmem>>, vector<3x128xf32>
    tpu.vector_store %arg13[%c15_524, %c768_525], %304 {strides = array<i32>} : memref<24x1152xf32, #tpu.memory_space<vmem>>, vector<3x128xf32>,
    %c46 = arith.constant 46 : index
    %c0_526 = arith.constant 0 : index
    %306 = vector.load %arg12[%c46, %c0_526] : memref<56x128xf32, #tpu.memory_space<vmem>>, vector<3x128xf32>
    %c15_527 = arith.constant 15 : index
    %c896_528 = arith.constant 896 : index
    %307 = vector.load %arg13[%c15_527, %c896_528] : memref<24x1152xf32, #tpu.memory_space<vmem>>, vector<3x128xf32>
    tpu.vector_store %arg13[%c15_527, %c896_528], %306 {strides = array<i32>} : memref<24x1152xf32, #tpu.memory_space<vmem>>, vector<3x128xf32>,
    %c47 = arith.constant 47 : index
    %c0_529 = arith.constant 0 : index
    %308 = vector.load %arg12[%c47, %c0_529] : memref<56x128xf32, #tpu.memory_space<vmem>>, vector<3x128xf32>
    %c15_530 = arith.constant 15 : index
    %c1024_531 = arith.constant 1024 : index
    %309 = vector.load %arg13[%c15_530, %c1024_531] : memref<24x1152xf32, #tpu.memory_space<vmem>>, vector<3x128xf32>
    tpu.vector_store %arg13[%c15_530, %c1024_531], %308 {strides = array<i32>} : memref<24x1152xf32, #tpu.memory_space<vmem>>, vector<3x128xf32>,
    %c0_532 = arith.constant 0 : index
    %c0_533 = arith.constant 0 : index
    %310 = vector.load %arg13[%c0_532, %c0_533] : memref<24x1152xf32, #tpu.memory_space<vmem>>, vector<24x1152xf32>
    %c0_534 = arith.constant 0 : index
    %c0_535 = arith.constant 0 : index
    %311 = vector.load %arg5[%c0_534, %c0_535] : memref<1152x128xf32, #tpu.memory_space<vmem>>, vector<1152x128xf32>
    %cst_536 = arith.constant dense<0.000000e+00> : vector<24x128xf32>
    %312 = tpu.matmul %310, %311, %cst_536 {dimension_numbers = #tpu.dot_dimension_numbers<[1], [0], [0], [1], [0, 0, 1, 1], [], []>} : vector<24x1152xf32>, vector<1152x128xf32>, vector<24x128xf32> -> vector<24x128xf32>
    %c0_537 = arith.constant 0 : index
    %c0_538 = arith.constant 0 : index
    %313 = vector.load %arg6[%c0_537, %c0_538] : memref<1x128xf32, #tpu.memory_space<vmem>>, vector<1x128xf32>
    %314 = vector.broadcast %313 : vector<1x128xf32> to vector<24x128xf32>
    %315 = arith.addf %312, %314 : vector<24x128xf32>
    %cst_539 = arith.constant 0.000000e+00 : f32
    %316 = vector.broadcast %cst_539 : f32 to vector<24x128xf32>
    %317 = arith.maximumf %315, %316 : vector<24x128xf32>
    %c0_540 = arith.constant 0 : index
    %c0_541 = arith.constant 0 : index
    %318 = vector.load %arg14[%c0_540, %c0_541] : memref<24x128xf32, #tpu.memory_space<vmem>>, vector<24x128xf32>
    tpu.vector_store %arg14[%c0_540, %c0_541], %317 {strides = array<i32>} : memref<24x128xf32, #tpu.memory_space<vmem>>, vector<24x128xf32>,
    %cst_542 = arith.constant 0.000000e+00 : f32
    %319 = vector.broadcast %cst_542 : f32 to vector<6x1152xf32>
    %c2_543 = arith.constant 2 : index
    %c0_544 = arith.constant 0 : index
    %320 = vector.load %arg15[%c2_543, %c0_544] : memref<8x1152xf32, #tpu.memory_space<vmem>>, vector<6x1152xf32>
    tpu.vector_store %arg15[%c2_543, %c0_544], %319 {strides = array<i32>} : memref<8x1152xf32, #tpu.memory_space<vmem>>, vector<6x1152xf32>,
    %c0_545 = arith.constant 0 : index
    %c0_546 = arith.constant 0 : index
    %321 = vector.load %arg14[%c0_545, %c0_546] : memref<24x128xf32, #tpu.memory_space<vmem>>, vector<1x128xf32>
    %c0_547 = arith.constant 0 : index
    %c0_548 = arith.constant 0 : index
    %322 = vector.load %arg15[%c0_547, %c0_548] : memref<8x1152xf32, #tpu.memory_space<vmem>>, vector<1x128xf32>
    tpu.vector_store %arg15[%c0_547, %c0_548], %321 {strides = array<i32>} : memref<8x1152xf32, #tpu.memory_space<vmem>>, vector<1x128xf32>,
    %c1_549 = arith.constant 1 : index
    %c0_550 = arith.constant 0 : index
    %323 = vector.load %arg14[%c1_549, %c0_550] : memref<24x128xf32, #tpu.memory_space<vmem>>, vector<1x128xf32>
    %c0_551 = arith.constant 0 : index
    %c128_552 = arith.constant 128 : index
    %324 = vector.load %arg15[%c0_551, %c128_552] : memref<8x1152xf32, #tpu.memory_space<vmem>>, vector<1x128xf32>
    tpu.vector_store %arg15[%c0_551, %c128_552], %323 {strides = array<i32>} : memref<8x1152xf32, #tpu.memory_space<vmem>>, vector<1x128xf32>,
    %c2_553 = arith.constant 2 : index
    %c0_554 = arith.constant 0 : index
    %325 = vector.load %arg14[%c2_553, %c0_554] : memref<24x128xf32, #tpu.memory_space<vmem>>, vector<1x128xf32>
    %c0_555 = arith.constant 0 : index
    %c256_556 = arith.constant 256 : index
    %326 = vector.load %arg15[%c0_555, %c256_556] : memref<8x1152xf32, #tpu.memory_space<vmem>>, vector<1x128xf32>
    tpu.vector_store %arg15[%c0_555, %c256_556], %325 {strides = array<i32>} : memref<8x1152xf32, #tpu.memory_space<vmem>>, vector<1x128xf32>,
    %c3_557 = arith.constant 3 : index
    %c0_558 = arith.constant 0 : index
    %327 = vector.load %arg14[%c3_557, %c0_558] : memref<24x128xf32, #tpu.memory_space<vmem>>, vector<1x128xf32>
    %c0_559 = arith.constant 0 : index
    %c384_560 = arith.constant 384 : index
    %328 = vector.load %arg15[%c0_559, %c384_560] : memref<8x1152xf32, #tpu.memory_space<vmem>>, vector<1x128xf32>
    tpu.vector_store %arg15[%c0_559, %c384_560], %327 {strides = array<i32>} : memref<8x1152xf32, #tpu.memory_space<vmem>>, vector<1x128xf32>,
    %c4 = arith.constant 4 : index
    %c0_561 = arith.constant 0 : index
    %329 = vector.load %arg14[%c4, %c0_561] : memref<24x128xf32, #tpu.memory_space<vmem>>, vector<1x128xf32>
    %c0_562 = arith.constant 0 : index
    %c512_563 = arith.constant 512 : index
    %330 = vector.load %arg15[%c0_562, %c512_563] : memref<8x1152xf32, #tpu.memory_space<vmem>>, vector<1x128xf32>
    tpu.vector_store %arg15[%c0_562, %c512_563], %329 {strides = array<i32>} : memref<8x1152xf32, #tpu.memory_space<vmem>>, vector<1x128xf32>,
    %c5_564 = arith.constant 5 : index
    %c0_565 = arith.constant 0 : index
    %331 = vector.load %arg14[%c5_564, %c0_565] : memref<24x128xf32, #tpu.memory_space<vmem>>, vector<1x128xf32>
    %c0_566 = arith.constant 0 : index
    %c640_567 = arith.constant 640 : index
    %332 = vector.load %arg15[%c0_566, %c640_567] : memref<8x1152xf32, #tpu.memory_space<vmem>>, vector<1x128xf32>
    tpu.vector_store %arg15[%c0_566, %c640_567], %331 {strides = array<i32>} : memref<8x1152xf32, #tpu.memory_space<vmem>>, vector<1x128xf32>,
    %c6_568 = arith.constant 6 : index
    %c0_569 = arith.constant 0 : index
    %333 = vector.load %arg14[%c6_568, %c0_569] : memref<24x128xf32, #tpu.memory_space<vmem>>, vector<1x128xf32>
    %c0_570 = arith.constant 0 : index
    %c768_571 = arith.constant 768 : index
    %334 = vector.load %arg15[%c0_570, %c768_571] : memref<8x1152xf32, #tpu.memory_space<vmem>>, vector<1x128xf32>
    tpu.vector_store %arg15[%c0_570, %c768_571], %333 {strides = array<i32>} : memref<8x1152xf32, #tpu.memory_space<vmem>>, vector<1x128xf32>,
    %c7_572 = arith.constant 7 : index
    %c0_573 = arith.constant 0 : index
    %335 = vector.load %arg14[%c7_572, %c0_573] : memref<24x128xf32, #tpu.memory_space<vmem>>, vector<1x128xf32>
    %c0_574 = arith.constant 0 : index
    %c896_575 = arith.constant 896 : index
    %336 = vector.load %arg15[%c0_574, %c896_575] : memref<8x1152xf32, #tpu.memory_space<vmem>>, vector<1x128xf32>
    tpu.vector_store %arg15[%c0_574, %c896_575], %335 {strides = array<i32>} : memref<8x1152xf32, #tpu.memory_space<vmem>>, vector<1x128xf32>,
    %c8_576 = arith.constant 8 : index
    %c0_577 = arith.constant 0 : index
    %337 = vector.load %arg14[%c8_576, %c0_577] : memref<24x128xf32, #tpu.memory_space<vmem>>, vector<1x128xf32>
    %c0_578 = arith.constant 0 : index
    %c1024_579 = arith.constant 1024 : index
    %338 = vector.load %arg15[%c0_578, %c1024_579] : memref<8x1152xf32, #tpu.memory_space<vmem>>, vector<1x128xf32>
    tpu.vector_store %arg15[%c0_578, %c1024_579], %337 {strides = array<i32>} : memref<8x1152xf32, #tpu.memory_space<vmem>>, vector<1x128xf32>,
    %c9_580 = arith.constant 9 : index
    %c0_581 = arith.constant 0 : index
    %339 = vector.load %arg14[%c9_580, %c0_581] : memref<24x128xf32, #tpu.memory_space<vmem>>, vector<1x128xf32>
    %c1_582 = arith.constant 1 : index
    %c0_583 = arith.constant 0 : index
    %340 = vector.load %arg15[%c1_582, %c0_583] : memref<8x1152xf32, #tpu.memory_space<vmem>>, vector<1x128xf32>
    tpu.vector_store %arg15[%c1_582, %c0_583], %339 {strides = array<i32>} : memref<8x1152xf32, #tpu.memory_space<vmem>>, vector<1x128xf32>,
    %c10_584 = arith.constant 10 : index
    %c0_585 = arith.constant 0 : index
    %341 = vector.load %arg14[%c10_584, %c0_585] : memref<24x128xf32, #tpu.memory_space<vmem>>, vector<1x128xf32>
    %c1_586 = arith.constant 1 : index
    %c128_587 = arith.constant 128 : index
    %342 = vector.load %arg15[%c1_586, %c128_587] : memref<8x1152xf32, #tpu.memory_space<vmem>>, vector<1x128xf32>
    tpu.vector_store %arg15[%c1_586, %c128_587], %341 {strides = array<i32>} : memref<8x1152xf32, #tpu.memory_space<vmem>>, vector<1x128xf32>,
    %c11_588 = arith.constant 11 : index
    %c0_589 = arith.constant 0 : index
    %343 = vector.load %arg14[%c11_588, %c0_589] : memref<24x128xf32, #tpu.memory_space<vmem>>, vector<1x128xf32>
    %c1_590 = arith.constant 1 : index
    %c256_591 = arith.constant 256 : index
    %344 = vector.load %arg15[%c1_590, %c256_591] : memref<8x1152xf32, #tpu.memory_space<vmem>>, vector<1x128xf32>
    tpu.vector_store %arg15[%c1_590, %c256_591], %343 {strides = array<i32>} : memref<8x1152xf32, #tpu.memory_space<vmem>>, vector<1x128xf32>,
    %c12_592 = arith.constant 12 : index
    %c0_593 = arith.constant 0 : index
    %345 = vector.load %arg14[%c12_592, %c0_593] : memref<24x128xf32, #tpu.memory_space<vmem>>, vector<1x128xf32>
    %c1_594 = arith.constant 1 : index
    %c384_595 = arith.constant 384 : index
    %346 = vector.load %arg15[%c1_594, %c384_595] : memref<8x1152xf32, #tpu.memory_space<vmem>>, vector<1x128xf32>
    tpu.vector_store %arg15[%c1_594, %c384_595], %345 {strides = array<i32>} : memref<8x1152xf32, #tpu.memory_space<vmem>>, vector<1x128xf32>,
    %c13 = arith.constant 13 : index
    %c0_596 = arith.constant 0 : index
    %347 = vector.load %arg14[%c13, %c0_596] : memref<24x128xf32, #tpu.memory_space<vmem>>, vector<1x128xf32>
    %c1_597 = arith.constant 1 : index
    %c512_598 = arith.constant 512 : index
    %348 = vector.load %arg15[%c1_597, %c512_598] : memref<8x1152xf32, #tpu.memory_space<vmem>>, vector<1x128xf32>
    tpu.vector_store %arg15[%c1_597, %c512_598], %347 {strides = array<i32>} : memref<8x1152xf32, #tpu.memory_space<vmem>>, vector<1x128xf32>,
    %c14_599 = arith.constant 14 : index
    %c0_600 = arith.constant 0 : index
    %349 = vector.load %arg14[%c14_599, %c0_600] : memref<24x128xf32, #tpu.memory_space<vmem>>, vector<1x128xf32>
    %c1_601 = arith.constant 1 : index
    %c640_602 = arith.constant 640 : index
    %350 = vector.load %arg15[%c1_601, %c640_602] : memref<8x1152xf32, #tpu.memory_space<vmem>>, vector<1x128xf32>
    tpu.vector_store %arg15[%c1_601, %c640_602], %349 {strides = array<i32>} : memref<8x1152xf32, #tpu.memory_space<vmem>>, vector<1x128xf32>,
    %c15_603 = arith.constant 15 : index
    %c0_604 = arith.constant 0 : index
    %351 = vector.load %arg14[%c15_603, %c0_604] : memref<24x128xf32, #tpu.memory_space<vmem>>, vector<1x128xf32>
    %c1_605 = arith.constant 1 : index
    %c768_606 = arith.constant 768 : index
    %352 = vector.load %arg15[%c1_605, %c768_606] : memref<8x1152xf32, #tpu.memory_space<vmem>>, vector<1x128xf32>
    tpu.vector_store %arg15[%c1_605, %c768_606], %351 {strides = array<i32>} : memref<8x1152xf32, #tpu.memory_space<vmem>>, vector<1x128xf32>,
    %c16_607 = arith.constant 16 : index
    %c0_608 = arith.constant 0 : index
    %353 = vector.load %arg14[%c16_607, %c0_608] : memref<24x128xf32, #tpu.memory_space<vmem>>, vector<1x128xf32>
    %c1_609 = arith.constant 1 : index
    %c896_610 = arith.constant 896 : index
    %354 = vector.load %arg15[%c1_609, %c896_610] : memref<8x1152xf32, #tpu.memory_space<vmem>>, vector<1x128xf32>
    tpu.vector_store %arg15[%c1_609, %c896_610], %353 {strides = array<i32>} : memref<8x1152xf32, #tpu.memory_space<vmem>>, vector<1x128xf32>,
    %c17_611 = arith.constant 17 : index
    %c0_612 = arith.constant 0 : index
    %355 = vector.load %arg14[%c17_611, %c0_612] : memref<24x128xf32, #tpu.memory_space<vmem>>, vector<1x128xf32>
    %c1_613 = arith.constant 1 : index
    %c1024_614 = arith.constant 1024 : index
    %356 = vector.load %arg15[%c1_613, %c1024_614] : memref<8x1152xf32, #tpu.memory_space<vmem>>, vector<1x128xf32>
    tpu.vector_store %arg15[%c1_613, %c1024_614], %355 {strides = array<i32>} : memref<8x1152xf32, #tpu.memory_space<vmem>>, vector<1x128xf32>,
    %c0_615 = arith.constant 0 : index
    %c0_616 = arith.constant 0 : index
    %357 = vector.load %arg15[%c0_615, %c0_616] : memref<8x1152xf32, #tpu.memory_space<vmem>>, vector<8x1152xf32>
    %c0_617 = arith.constant 0 : index
    %c0_618 = arith.constant 0 : index
    %358 = vector.load %arg7[%c0_617, %c0_618] : memref<1152x256xf32, #tpu.memory_space<vmem>>, vector<1152x256xf32>
    %cst_619 = arith.constant dense<0.000000e+00> : vector<8x256xf32>
    %359 = tpu.matmul %357, %358, %cst_619 {dimension_numbers = #tpu.dot_dimension_numbers<[1], [0], [0], [1], [0, 0, 1, 1], [], []>} : vector<8x1152xf32>, vector<1152x256xf32>, vector<8x256xf32> -> vector<8x256xf32>
    %c0_620 = arith.constant 0 : index
    %c0_621 = arith.constant 0 : index
    %360 = vector.load %arg8[%c0_620, %c0_621] : memref<1x256xf32, #tpu.memory_space<vmem>>, vector<1x256xf32>
    %361 = vector.broadcast %360 : vector<1x256xf32> to vector<8x256xf32>
    %362 = arith.addf %359, %361 : vector<8x256xf32>
    %363 = vector.extract_strided_slice %362 {offsets = [0, 0], sizes = [2, 256], strides = [1, 1]} : vector<8x256xf32> to vector<2x256xf32>
    %c0_622 = arith.constant 0 : index
    %c0_623 = arith.constant 0 : index
    %364 = vector.load %arg9[%c0_622, %c0_623] : memref<2x256xf32, #tpu.memory_space<vmem>>, vector<2x256xf32>
    tpu.vector_store %arg9[%c0_622, %c0_623], %363 {strides = array<i32>} : memref<2x256xf32, #tpu.memory_space<vmem>>, vector<2x256xf32>,
    return
  }
}

</mosaic_0001>

<bundles_post_ra>
// kernel: map_cnn_forward.1
= control target key start
LH: loop header
LB: loop body
LE: loop exit
PB: predicated region body
PF: predicated region fallthrough
CT: control target
= control target key end

     0   :  { %14 = vsyncpa [#allocation9], 0  ;;  %s4910_s0 = inlined_call_operand.vmem [shape: f32[104,32], index: 0, kind: input, shape index: {}]   ;;  %s4911_s1 = inlined_call_operand.vmem [shape: f32[32,128], index: 1, kind: input, shape index: {}]   ;;  %s4912_s2 = inlined_call_operand.vmem [shape: f32[1,128], index: 2, kind: input, shape index: {}]   ;;  %s4913_s3 = inlined_call_operand.hbm [shape: f32[1152,128], index: 3, kind: input, shape index: {}]   ;;  %s4914_s4 = inlined_call_operand.vmem [shape: f32[1,128], index: 4, kind: input, shape index: {}]   ;;  %s4915_s5 = inlined_call_operand.hbm [shape: f32[1152,128], index: 5, kind: input, shape index: {}]   ;;  %s4916_s6 = inlined_call_operand.vmem [shape: f32[1,128], index: 6, kind: input, shape index: {}]   ;;  %s4917_s7 = inlined_call_operand.vmem [shape: f32[1152,256], index: 7, kind: input, shape index: {}]   ;;  %s4918_s8 = inlined_call_operand.vmem [shape: f32[1,256], index: 8, kind: input, shape index: {}]   ;;  %s4919_s9 = inlined_call_operand.hbm [shape: f32[2,256], index: 9, kind: output, shape index: {}]  }
   0x1   :  { %15 = vsyncpa [#allocation12], 0 }
   0x2   :  { %16 = vsyncpa [#allocation10], 0  ;;  %s3716_s30 = smov [#allocation8]  }
   0x3   :  { %s28_s10 = sshll.u32 %s3716_s30, 4  ;;  %s29_s10 = int_to_ptr.vmem [resolvable:$true] %s28_s10 }
   0x4   :  { %s3658_s11 = scalar_lea.vmem %s29_s10, 18432  ;;  %p3663_p1 = scmp.lt.s32.totalorder %s29_s10, %s29_s10 }
   0x5   :  { %p3659_p0 = scmp.ne.s32.totalorder %s29_s10, %s3658_s11  ;;  %p3664_p2 = scmp.lt.s32.totalorder %s3658_s11, %s3658_s11 }
   0x7   :  { %p3665_p3 = por %p3664_p2, %p3663_p1 }
   0x9   :  { %p3666_p4 = pnand %p3665_p3, %p3659_p0 }
   0xb   :  { %3669 = shalt.err (!%p3666_p4)
}
   0xc   :  { %s3717_s12 = smov 128   ;;  %s3718_s13 = smov 8  }
   0xd   :  { %34 = dma.hbm_to_vmem [thread:$0]  %s4913_s3, 18432, %s29_s10, [#allocation9], %s3717_s12, %s3717_s12, %s3718_s13  }
   0xe   :  { %s3719_s16 = smov [#allocation11]  }
   0xf   :  { %s42_s17 = sshll.u32 %s3719_s16, 4  ;;  %s43_s17 = int_to_ptr.vmem [resolvable:$true] %s42_s17 }
  0x10   :  { %s3678_s18 = scalar_lea.vmem %s43_s17, 18432  ;;  %p3683_p6 = scmp.lt.s32.totalorder %s43_s17, %s43_s17 }
  0x11   :  { %p3679_p5 = scmp.ne.s32.totalorder %s43_s17, %s3678_s18  ;;  %p3684_p7 = scmp.lt.s32.totalorder %s3678_s18, %s3678_s18 }
  0x13   :  { %p3685_p8 = por %p3684_p7, %p3683_p6 }
  0x15   :  { %p3686_p9 = pnand %p3685_p8, %p3679_p5 }
  0x17   :  { %3689 = shalt.err (!%p3686_p9)
}
  0x18   :  { %48 = dma.hbm_to_vmem [thread:$0]  %s4915_s5, 18432, %s43_s17, [#allocation12], %s3717_s12, %s3717_s12, %s3718_s13  }
  0x19   :  { %3710 = dma.done.wait [#allocation9], 18432  }
  0x1a   :  { %3711 = vsyncadd [#allocation9], 4294948864 }
  0x1b   :  { %3712 = dma.done.wait [#allocation12], 18432  }
  0x1c   :  { %3713 = vsyncadd [#allocation12], 4294948864  ;;  %v4920_v0 = vmov 0.0   ;;  %vm3721_vm0 = vmmov 0   ;;  %v77_v1 = vld [vmem:[%s4911_s1 + $0x18] sm:$0xff]  ;;  %v76_v2 = vld [vmem:[%s4911_s1 + $0x10] sm:$0xff] }
  0x1d   :  { %3502 = vmatprep.subr.mxu0 %v4920_v0  ;;  %281 = vst [vmem:[#allocation3 + $0x68] sm:$0xfc] %v4920_v0  ;;  %282 = vst [vmem:[#allocation3 + $0x168] sm:$0xfc] %v4920_v0  ;;  %3510 = vmatprep.mubr.msk.f32.mxu0 %vm3721_vm0, %v4920_v0  ;;  %v75_v3 = vld [vmem:[%s4911_s1 + $0x8] sm:$0xff]  ;;  %v74_v4 = vld [vmem:[%s4911_s1] sm:$0xff] }
  0x1e   :  { %283 = vst [vmem:[#allocation3 + $0x90] sm:$0xfc] %v4920_v0  ;;  %284 = vst [vmem:[#allocation3 + $0x1c8] sm:$0xfc] %v4920_v0  ;;  %3503 = vmatpush3.msra.mxu0 %v77_v1  ;;  %v61_v5 = vld [vmem:[%s4910_s0] sm:$0xff]  ;;  %vm85_vm1 = vcmask 261120  }
  0x1f   :  { %285 = vst [vmem:[#allocation3 + $0x8] sm:$0xfc] %v4920_v0  ;;  %286 = vst [vmem:[#allocation3 + $0x120] sm:$0xfc] %v4920_v0  ;;  %3504 = vmatprep.subr.mxu0 %v4920_v0  ;;  %v825_v6 = vld [vmem:[#allocation8 + $0xf8] sm:$0xff]  ;;  %v824_v8 = vld [vmem:[#allocation8 + $0xf0] sm:$0xff] }
  0x20   :  { %287 = vst [vmem:[#allocation3 + $0xe8] sm:$0xfc] %v4920_v0  ;;  %288 = vst [vmem:[#allocation3] sm:$0xfc] %v4920_v0  ;;  %3505 = vmatpush3.msra.mxu0 %v76_v2  ;;  %3084 = vmatprep.subr.mxu1 %v825_v6  ;;  %v809_v7 = vld [vmem:[#allocation8 + $0x78] sm:$0xff]  ;;  %v808_v9 = vld [vmem:[#allocation8 + $0x70] sm:$0xff] }
  0x21   :  { %289 = vst [vmem:[#allocation3 + $0x138] sm:$0xfc] %v4920_v0  ;;  %1459 = vst [vmem:[#allocation5 + $0x20] sm:$0xfc] %v4920_v0  ;;  %3506 = vmatprep.subr.mxu0 %v4920_v0  ;;  %3085 = vmatpush3.msra.mxu1 %v809_v7  ;;  %v62_v10 = vld [vmem:[%s4910_s0 + $0x8] sm:$0xff]  ;;  %v63_v11 = vld [vmem:[%s4910_s0 + $0x10] sm:$0xff] }
  0x22   :  { %1460 = vst [vmem:[#allocation5 + $0x8] sm:$0xfc] %v4920_v0  ;;  %1461 = vst [vmem:[#allocation5 + $0x28] sm:$0xfc] %v4920_v0  ;;  %3507 = vmatpush3.msra.mxu0 %v75_v3  ;;  %3086 = vmatprep.subr.mxu1 %v824_v8  ;;  %v64_v12 = vld [vmem:[%s4910_s0 + $0x18] sm:$0xff]  ;;  %v65_v13 = vld [vmem:[%s4910_s0 + $0x20] sm:$0xff] }
  0x23   :  { %1462 = vst [vmem:[#allocation5 + $0x18] sm:$0xfc] %v4920_v0  ;;  %1463 = vst [vmem:[#allocation5 + $0x88] sm:$0xfc] %v4920_v0  ;;  %3508 = vmatprep.subr.mxu0 %v4920_v0  ;;  %3087 = vmatpush3.msra.mxu1 %v808_v9  ;;  %v66_v14 = vld [vmem:[%s4910_s0 + $0x28] sm:$0xff]  ;;  %v67_v15 = vld [vmem:[%s4910_s0 + $0x30] sm:$0xff] }
  0x24   :  { %1464 = vst [vmem:[#allocation5 + $0xb0] sm:$0xfc] %v4920_v0  ;;  %1465 = vst [vmem:[#allocation5 + $0xc8] sm:$0xfc] %v4920_v0  ;;  %3509 = vmatpush3.msra.mxu0 %v74_v4  ;;  %v68_v16 = vld [vmem:[%s4910_s0 + $0x38] sm:$0xff]  ;;  %v69_v17 = vld [vmem:[%s4910_s0 + $0x40] sm:$0xff] }
  0x25   :  { %1466 = vst [vmem:[#allocation5 + $0xd0] sm:$0xfc] %v4920_v0  ;;  %1467 = vst [vmem:[#allocation5 + $0xa0] sm:$0xfc] %v4920_v0  ;;  %3511 = vmatmul.mubr.msk.f32.vlgmr.msra.gmra.mxu0 %vm85_vm1, %v61_v5  ;;  %v70_v18 = vld [vmem:[%s4910_s0 + $0x48] sm:$0xff]  ;;  %v71_v19 = vld [vmem:[%s4910_s0 + $0x50] sm:$0xff] }
  0x26   :  { %2313 = vst [vmem:[#allocation7] sm:$0xfc] %v4920_v0  ;;  %2314 = vst [vmem:[#allocation7 + $0x8] sm:$0xfc] %v4920_v0  ;;  %3513 = vmatprep.mubr.msk.f32.mxu0 %vm3721_vm0, %v4920_v0  ;;  %v72_v20 = vld [vmem:[%s4910_s0 + $0x58] sm:$0xff]  ;;  %v73_v21 = vld [vmem:[%s4910_s0 + $0x60] sm:$0xff] }
  0x27   :  { %2315 = vst [vmem:[#allocation7 + $0x10] sm:$0xfc] %v4920_v0  ;;  %2316 = vst [vmem:[#allocation7 + $0x18] sm:$0xfc] %v4920_v0  ;;  %v823_v22 = vld [vmem:[#allocation8 + $0xe8] sm:$0xff]  ;;  %v857_v23 = vld [vmem:[#allocation8 + $0x1f8] sm:$0xff] }
  0x28   :  { %2317 = vst [vmem:[#allocation7 + $0x20] sm:$0xfc] %v4920_v0  ;;  %2318 = vst [vmem:[#allocation7 + $0x28] sm:$0xfc] %v4920_v0  ;;  %3088 = vmatprep.subr.mxu1 %v823_v22  ;;  %3137 = vmatprep.subr.mxu0 %v857_v23  ;;  %v807_v24 = vld [vmem:[#allocation8 + $0x68] sm:$0xff]  ;;  %v841_v25 = vld [vmem:[#allocation8 + $0x178] sm:$0xff] }
  0x29   :  { %2319 = vst [vmem:[#allocation7 + $0x30] sm:$0xfc] %v4920_v0  ;;  %2320 = vst [vmem:[#allocation7 + $0x38] sm:$0xfc] %v4920_v0  ;;  %3514 = vmatmul.mubr.msk.f32.gmra.mxu0 %vm85_vm1, %v62_v10  ;;  %3089 = vmatpush3.msra.mxu1 %v807_v24  ;;  %v822_v26 = vld [vmem:[#allocation8 + $0xe0] sm:$0xff]  ;;  %v856_v27 = vld [vmem:[#allocation8 + $0x1f0] sm:$0xff] }
  0x2a   :  { %2321 = vst [vmem:[#allocation7 + $0x40] sm:$0xfc] %v4920_v0  ;;  %3516 = vmatprep.mubr.msk.f32.mxu0 %vm3721_vm0, %v4920_v0  ;;  %3138 = vmatpush3.msra.mxu0 %v841_v25  ;;  %v806_v28 = vld [vmem:[#allocation8 + $0x60] sm:$0xff]  ;;  %v840_v29 = vld [vmem:[#allocation8 + $0x170] sm:$0xff]  ;;  %v821_v30 = vld [vmem:[#allocation8 + $0xd8] sm:$0xff] }
  0x2b   :  { %3090 = vmatprep.subr.mxu1 %v822_v26  ;;  %3139 = vmatprep.subr.mxu0 %v856_v27  ;;  %v855_v31 = vld [vmem:[#allocation8 + $0x1e8] sm:$0xff]  ;;  %v805_v32 = vld [vmem:[#allocation8 + $0x58] sm:$0xff]  ;;  %v820_v34 = vld [vmem:[#allocation8 + $0xd0] sm:$0xff] }
  0x2c   :  { %3091 = vmatpush3.msra.mxu1 %v806_v28  ;;  %3140 = vmatpush3.msra.mxu0 %v840_v29  ;;  %v839_v33 = vld [vmem:[#allocation8 + $0x168] sm:$0xff]  ;;  %v854_v35 = vld [vmem:[#allocation8 + $0x1e0] sm:$0xff]  ;;  %v804_v36 = vld [vmem:[#allocation8 + $0x50] sm:$0xff] }
  0x2d   :  { %3517 = vmatmul.mubr.msk.f32.gmra.mxu0 %vm85_vm1, %v63_v11  ;;  %3092 = vmatprep.subr.mxu1 %v821_v30  ;;  %v838_v37 = vld [vmem:[#allocation8 + $0x160] sm:$0xff]  ;;  %v819_v38 = vld [vmem:[#allocation8 + $0xc8] sm:$0xff]  ;;  %v853_v39 = vld [vmem:[#allocation8 + $0x1d8] sm:$0xff] }
  0x2e   :  { %3519 = vmatprep.mubr.msk.f32.mxu0 %vm3721_vm0, %v4920_v0  ;;  %3141 = vmatprep.subr.mxu0 %v855_v31  ;;  %v803_v40 = vld [vmem:[#allocation8 + $0x48] sm:$0xff]  ;;  %v837_v41 = vld [vmem:[#allocation8 + $0x158] sm:$0xff]  ;;  %v818_v42 = vld [vmem:[#allocation8 + $0xc0] sm:$0xff] }
  0x2f   :  { %3093 = vmatpush3.msra.mxu1 %v805_v32  ;;  %3142 = vmatpush3.msra.mxu0 %v839_v33  ;;  %v852_v43 = vld [vmem:[#allocation8 + $0x1d0] sm:$0xff]  ;;  %v802_v44 = vld [vmem:[#allocation8 + $0x40] sm:$0xff]  ;;  %v817_v46 = vld [vmem:[#allocation8 + $0xb8] sm:$0xff] }
  0x30   :  { %3094 = vmatprep.subr.mxu1 %v820_v34  ;;  %3143 = vmatprep.subr.mxu0 %v854_v35  ;;  %v836_v45 = vld [vmem:[#allocation8 + $0x150] sm:$0xff]  ;;  %v851_v47 = vld [vmem:[#allocation8 + $0x1c8] sm:$0xff]  ;;  %v801_v48 = vld [vmem:[#allocation8 + $0x38] sm:$0xff] }
  0x31   :  { %3520 = vmatmul.mubr.msk.f32.gmra.mxu0 %vm85_vm1, %v64_v12  ;;  %3095 = vmatpush3.msra.mxu1 %v804_v36  ;;  %v835_v49 = vld [vmem:[#allocation8 + $0x148] sm:$0xff]  ;;  %v816_v50 = vld [vmem:[#allocation8 + $0xb0] sm:$0xff]  ;;  %v850_v51 = vld [vmem:[#allocation8 + $0x1c0] sm:$0xff] }
  0x32   :  { %3522 = vmatprep.mubr.msk.f32.mxu0 %vm3721_vm0, %v4920_v0  ;;  %3144 = vmatpush3.msra.mxu0 %v838_v37  ;;  %v800_v52 = vld [vmem:[#allocation8 + $0x30] sm:$0xff]  ;;  %v834_v53 = vld [vmem:[#allocation8 + $0x140] sm:$0xff]  ;;  %v815_v54 = vld [vmem:[#allocation8 + $0xa8] sm:$0xff] }
  0x33   :  { %3096 = vmatprep.subr.mxu1 %v819_v38  ;;  %3145 = vmatprep.subr.mxu0 %v853_v39  ;;  %v849_v55 = vld [vmem:[#allocation8 + $0x1b8] sm:$0xff]  ;;  %v799_v56 = vld [vmem:[#allocation8 + $0x28] sm:$0xff]  ;;  %v814_v58 = vld [vmem:[#allocation8 + $0xa0] sm:$0xff] }
  0x34   :  { %3097 = vmatpush3.msra.mxu1 %v803_v40  ;;  %3146 = vmatpush3.msra.mxu0 %v837_v41  ;;  %v833_v57 = vld [vmem:[#allocation8 + $0x138] sm:$0xff]  ;;  %v848_v59 = vld [vmem:[#allocation8 + $0x1b0] sm:$0xff]  ;;  %v798_v60 = vld [vmem:[#allocation8 + $0x20] sm:$0xff] }
  0x35   :  { %3523 = vmatmul.mubr.msk.f32.gmra.mxu0 %vm85_vm1, %v65_v13  ;;  %3098 = vmatprep.subr.mxu1 %v818_v42  ;;  %v832_v61 = vld [vmem:[#allocation8 + $0x130] sm:$0xff]  ;;  %v813_v62 = vld [vmem:[#allocation8 + $0x98] sm:$0xff]  ;;  %v847_v63 = vld [vmem:[#allocation8 + $0x1a8] sm:$0xff] }
  0x36   :  { %3525 = vmatprep.mubr.msk.f32.mxu0 %vm3721_vm0, %v4920_v0  ;;  %3147 = vmatprep.subr.mxu0 %v852_v43  ;;  %v797_v1 = vld [vmem:[#allocation8 + $0x18] sm:$0xff]  ;;  %v831_v2 = vld [vmem:[#allocation8 + $0x128] sm:$0xff]  ;;  %v812_v3 = vld [vmem:[#allocation8 + $0x90] sm:$0xff] }
  0x37   :  { %3099 = vmatpush3.msra.mxu1 %v802_v44  ;;  %3148 = vmatpush3.msra.mxu0 %v836_v45  ;;  %v846_v4 = vld [vmem:[#allocation8 + $0x1a0] sm:$0xff]  ;;  %v796_v5 = vld [vmem:[#allocation8 + $0x10] sm:$0xff]  ;;  %v811_v7 = vld [vmem:[#allocation8 + $0x88] sm:$0xff] }
  0x38   :  { %3100 = vmatprep.subr.mxu1 %v817_v46  ;;  %3149 = vmatprep.subr.mxu0 %v851_v47  ;;  %v830_v6 = vld [vmem:[#allocation8 + $0x120] sm:$0xff]  ;;  %v845_v8 = vld [vmem:[#allocation8 + $0x198] sm:$0xff]  ;;  %v795_v9 = vld [vmem:[#allocation8 + $0x8] sm:$0xff] }
  0x39   :  { %3526 = vmatmul.mubr.msk.f32.gmra.mxu0 %vm85_vm1, %v66_v14  ;;  %3101 = vmatpush3.msra.mxu1 %v801_v48  ;;  %v829_v10 = vld [vmem:[#allocation8 + $0x118] sm:$0xff]  ;;  %v810_v11 = vld [vmem:[#allocation8 + $0x80] sm:$0xff]  ;;  %v844_v12 = vld [vmem:[#allocation8 + $0x190] sm:$0xff] }
  0x3a   :  { %3528 = vmatprep.mubr.msk.f32.mxu0 %vm3721_vm0, %v4920_v0  ;;  %3150 = vmatpush3.msra.mxu0 %v835_v49  ;;  %v794_v13 = vld [vmem:[#allocation8] sm:$0xff]  ;;  %v828_v14 = vld [vmem:[#allocation8 + $0x110] sm:$0xff] }
  0x3b   :  { %3102 = vmatprep.subr.mxu1 %v816_v50  ;;  %3151 = vmatprep.subr.mxu0 %v850_v51 }
  0x3c   :  { %3103 = vmatpush3.msra.mxu1 %v800_v52  ;;  %3152 = vmatpush3.msra.mxu0 %v834_v53 }
  0x3d   :  { %3529 = vmatmul.mubr.msk.f32.gmra.mxu0 %vm85_vm1, %v67_v15  ;;  %3104 = vmatprep.subr.mxu1 %v815_v54  ;;  %v843_v15 = vld [vmem:[#allocation8 + $0x188] sm:$0xff] }
  0x3e   :  { %3531 = vmatprep.mubr.msk.f32.mxu0 %vm3721_vm0, %v4920_v0  ;;  %3153 = vmatprep.subr.mxu0 %v849_v55 }
  0x3f   :  { %3105 = vmatpush3.msra.mxu1 %v799_v56  ;;  %3154 = vmatpush3.msra.mxu0 %v833_v57 }
  0x40   :  { %3106 = vmatprep.subr.mxu1 %v814_v58  ;;  %3155 = vmatprep.subr.mxu0 %v848_v59 }
  0x41   :  { %3532 = vmatmul.mubr.msk.f32.gmra.mxu0 %vm85_vm1, %v68_v16  ;;  %3107 = vmatpush3.msra.mxu1 %v798_v60  ;;  %v827_v16 = vld [vmem:[#allocation8 + $0x108] sm:$0xff] }
  0x42   :  { %3534 = vmatprep.mubr.msk.f32.mxu0 %vm3721_vm0, %v4920_v0  ;;  %3156 = vmatpush3.msra.mxu0 %v832_v61 }
  0x43   :  { %3108 = vmatprep.subr.mxu1 %v813_v62  ;;  %3157 = vmatprep.subr.mxu0 %v847_v63 }
  0x44   :  { %3109 = vmatpush3.msra.mxu1 %v797_v1  ;;  %3158 = vmatpush3.msra.mxu0 %v831_v2 }
  0x45   :  { %3535 = vmatmul.mubr.msk.f32.gmra.mxu0 %vm85_vm1, %v69_v17  ;;  %3110 = vmatprep.subr.mxu1 %v812_v3  ;;  %v842_v17 = vld [vmem:[#allocation8 + $0x180] sm:$0xff] }
  0x46   :  { %3537 = vmatprep.mubr.msk.f32.mxu0 %vm3721_vm0, %v4920_v0  ;;  %3159 = vmatprep.subr.mxu0 %v846_v4 }
  0x47   :  { %3111 = vmatpush3.msra.mxu1 %v796_v5  ;;  %3160 = vmatpush3.msra.mxu0 %v830_v6 }
  0x48   :  { %3112 = vmatprep.subr.mxu1 %v811_v7  ;;  %3161 = vmatprep.subr.mxu0 %v845_v8 }
  0x49   :  { %3538 = vmatmul.mubr.msk.f32.gmra.mxu0 %vm85_vm1, %v70_v18  ;;  %3113 = vmatpush3.msra.mxu1 %v795_v9  ;;  %v826_v18 = vld [vmem:[#allocation8 + $0x100] sm:$0xff] }
  0x4a   :  { %3540 = vmatprep.mubr.msk.f32.mxu0 %vm3721_vm0, %v4920_v0  ;;  %3162 = vmatpush3.msra.mxu0 %v829_v10 }
  0x4b   :  { %3114 = vmatprep.subr.mxu1 %v810_v11  ;;  %3163 = vmatprep.subr.mxu0 %v844_v12 }
  0x4c   :  { %3115 = vmatpush3.msra.mxu1 %v794_v13  ;;  %3164 = vmatpush3.msra.mxu0 %v828_v14 }
  0x4d   :  { %3541 = vmatmul.mubr.msk.f32.gmra.mxu0 %vm85_vm1, %v71_v19  ;;  %3165 = vmatprep.subr.mxu0 %v843_v15  ;;  %v889_v19 = vld [vmem:[#allocation8 + $0x2f8] sm:$0xff] }
  0x4e   :  { %3543 = vmatprep.mubr.msk.f32.mxu0 %vm3721_vm0, %v4920_v0  ;;  %3166 = vmatpush3.msra.mxu0 %v827_v16 }
  0x4f   :  { %3167 = vmatprep.subr.mxu0 %v842_v17  ;;  %3190 = vmatprep.subr.mxu1 %v889_v19 }
  0x50   :  { %3168 = vmatpush3.msra.mxu0 %v826_v18 }
  0x51   :  { %3544 = vmatmul.mubr.msk.f32.gmra.mxu0 %vm85_vm1, %v72_v20  ;;  %v921_v20 = vld [vmem:[#allocation8 + $0x3f8] sm:$0xff] }
  0x52   :  { %3546 = vmatprep.mubr.msk.f32.mxu0 %vm3721_vm0, %v4920_v0  ;;  %3243 = vmatprep.subr.mxu0 %v921_v20 }
  0x55   :  { %3547 = vmatmul.mubr.msk.f32.gmra.mxu0 %vm85_vm1, %v73_v21  ;;  %v3903_v21 = vld [vmem:[%s4912_s2] ss:$0 sm:$0xff] }
  0xe5   :  { %v191_v22 = vpop.f32.mrf.mxu0 }
  0xe6   :  { %v192_v23 = vadd.f32 %v3903_v21, %v191_v22 }
  0xe7   :  { %v3512_v24 = vpop.f32.mrf.mxu0 }
  0xe8   :  { %v255_v25 = vmax.f32 %v192_v23, 0.0 }
  0xe9   :  { %v196_v26 = vpop.f32.mrf.mxu0 }
  0xea   :  { %268 = vst [vmem:[#allocation2] sm:$0xff] %v255_v25  ;;  %v197_v27 = vadd.f32 %v3903_v21, %v196_v26 }
  0xeb   :  { %v3515_v28 = vpop.f32.mrf.mxu0 }
  0xec   :  { %v256_v29 = vmax.f32 %v197_v27, 0.0 }
  0xed   :  { %v201_v30 = vpop.f32.mrf.mxu0 }
  0xee   :  { %269 = vst [vmem:[#allocation2 + $0x8] sm:$0xff] %v256_v29  ;;  %v202_v31 = vadd.f32 %v3903_v21, %v201_v30 }
  0xef   :  { %v3518_v32 = vpop.f32.mrf.mxu0 }
  0xf0   :  { %v257_v33 = vmax.f32 %v202_v31, 0.0 }
  0xf1   :  { %v294_v34 = vld [vmem:[#allocation2 + $0x2] sm:$0x1f]  ;;  %v206_v35 = vpop.f32.mrf.mxu0 }
  0xf2   :  { %v292_v36 = vld [vmem:[#allocation2 + $0x1] sm:$0x1f]  ;;  %295 = vst [vmem:[#allocation3 + $0x50] sm:$0x1f] %v294_v34  ;;  %270 = vst [vmem:[#allocation2 + $0x10] sm:$0xff] %v257_v33  ;;  %v207_v38 = vadd.f32 %v3903_v21, %v206_v35 }
  0xf3   :  { %v290_v37 = vld [vmem:[#allocation2] sm:$0x1f]  ;;  %293 = vst [vmem:[#allocation3 + $0xd0] sm:$0x1f] %v292_v36  ;;  %v3521_v39 = vpop.f32.mrf.mxu0 }
  0xf4   :  { %291 = vst [vmem:[#allocation3 + $0xc8] sm:$0x1f] %v290_v37  ;;  %v258_v40 = vmax.f32 %v207_v38, 0.0 }
  0xf5   :  { %v298_v41 = vld [vmem:[#allocation2 + $0x8] sm:$0x1f]  ;;  %v211_v44 = vpop.f32.mrf.mxu0 }
  0xf6   :  { %v308_v42 = vld [vmem:[#allocation2 + $0x7] sm:$0x1f]  ;;  %299 = vst [vmem:[#allocation3 + $0x108] sm:$0x1f] %v298_v41  ;;  %271 = vst [vmem:[#allocation2 + $0x18] sm:$0xff] %v258_v40  ;;  %v212_v47 = vadd.f32 %v3903_v21, %v211_v44 }
  0xf7   :  { %v320_v43 = vld [vmem:[#allocation2 + $0x9] sm:$0x1f]  ;;  %v310_v45 = vrot.slane %v308_v42, 3  ;;  %v3524_v50 = vpop.f32.mrf.mxu0 }
  0xf8   :  { %v322_v46 = vrot.slane %v320_v43, 3  ;;  %v314_v48 = vld [vmem:[#allocation2 + $0x8] sm:$0x1f]  ;;  %v259_v53 = vmax.f32 %v212_v47, 0.0 }
  0xf9   :  { %v296_v49 = vld [vmem:[#allocation2 + $0x7] sm:$0x1f]  ;;  %v316_v51 = vrot.slane %v314_v48, 3  ;;  %312 = vst [vmem:[#allocation3 + $0xf0] ss:$-36 sps:$4 sm:$0xe3] %v310_v45   ;;  %v216_v57 = vpop.f32.mrf.mxu0 }
  0xfa   :  { %297 = vst [vmem:[#allocation3 + $0xd8] sm:$0x1f] %v296_v49  ;;  %v300_v52 = vld [vmem:[#allocation2 + $0x9] sm:$0x1f]  ;;  %v302_v54 = vld [vmem:[#allocation2 + $0xe] sm:$0x1f]  ;;  %v217_v61 = vadd.f32 %v3903_v21, %v216_v57 }
  0xfb   :  { %324 = vst [vmem:[#allocation3 + $0x38] ss:$28 sps:$4 sm:$0xe3] %v322_v46   ;;  %301 = vst [vmem:[#allocation3 + $0xc0] sm:$0x1f] %v300_v52  ;;  %v3527_v3 = vpop.f32.mrf.mxu0 }
  0xfc   :  { %v306_v55 = vld [vmem:[#allocation2 + $0x10] sm:$0x1f]  ;;  %318 = vst [vmem:[#allocation3 + $0xf8] ss:$-36 sps:$4 sm:$0xe3] %v316_v51   ;;  %272 = vst [vmem:[#allocation2 + $0x20] sm:$0xff] %v259_v53 }
  0xfd   :  { %v326_v56 = vld [vmem:[#allocation2 + $0xe] sm:$0x1f]  ;;  %303 = vst [vmem:[#allocation3 + $0x18] sm:$0x1f] %v302_v54  ;;  %307 = vst [vmem:[#allocation3 + $0x140] sm:$0x1f] %v306_v55  ;;  %v221_v11 = vpop.f32.mrf.mxu0 }
  0xfe   :  { %v328_v58 = vrot.slane %v326_v56, 3  ;;  %v332_v59 = vld [vmem:[#allocation2 + $0xf] sm:$0x1f]  ;;  %v260_v7 = vmax.f32 %v217_v61, 0.0  ;;  %v344_v9 = vld [vmem:[#allocation2 + $0x15] sm:$0x1f]  ;;  %v222_v53 = vadd.f32 %v3903_v21, %v221_v11 }
  0xff   :  { %v338_v60 = vld [vmem:[#allocation2 + $0x10] sm:$0x1f]  ;;  %v334_v62 = vrot.slane %v332_v59, 3  ;;  %v350_v10 = vld [vmem:[#allocation2 + $0x16] sm:$0x1f]  ;;  %v346_v12 = vrot.slane %v344_v9, 3  ;;  %v3530_v20 = vpop.f32.mrf.mxu0 }
 0x100   :  { %v340_v63 = vrot.slane %v338_v60, 3  ;;  %v362_v1 = vld [vmem:[#allocation2 + $0xe] sm:$0x1f]  ;;  %330 = vst [vmem:[#allocation3 + $0x160] ss:$-132 sps:$4 sm:$0xe3] %v328_v58  }
 0x101   :  { %v367_v2 = vld [vmem:[#allocation2 + $0xf] sm:$0x1f]  ;;  %v364_v4 = vrot.slane %v362_v1, 6  ;;  %336 = vst [vmem:[#allocation3 + $0x170] ss:$-100 sps:$4 sm:$0xe3] %v334_v62   ;;  %v226_v30 = vpop.f32.mrf.mxu0 }
 0x102   :  { %v369_v5 = vrot.slane %v367_v2, 6  ;;  %v372_v6 = vld [vmem:[#allocation2 + $0x10] sm:$0x1f]  ;;  %342 = vst [vmem:[#allocation3 + $0x1d8] ss:$-276 sps:$4 sm:$0xe3] %v340_v63   ;;  %v227_v54 = vadd.f32 %v3903_v21, %v226_v30 }
 0x103   :  { %v374_v8 = vrot.slane %v372_v6, 6  ;;  %366 = vst [vmem:[#allocation3 + $0xf0] sm:$0x7c] %v364_v4  ;;  %v352_v13 = vrot.slane %v350_v10, 3  ;;  %v356_v14 = vld [vmem:[#allocation2 + $0x17] sm:$0x1f]  ;;  %v3533_v39 = vpop.f32.mrf.mxu0 }
 0x104   :  { %371 = vst [vmem:[#allocation3 + $0xf8] sm:$0x7c] %v369_v5  ;;  %v377_v15 = vld [vmem:[#allocation2 + $0x15] sm:$0x1f]  ;;  %273 = vst [vmem:[#allocation2 + $0x28] sm:$0xff] %v260_v7  ;;  %v358_v16 = vrot.slane %v356_v14, 3 }
 0x105   :  { %376 = vst [vmem:[#allocation3 + $0x38] sm:$0x7c] %v374_v8  ;;  %v379_v17 = vrot.slane %v377_v15, 6  ;;  %v382_v18 = vld [vmem:[#allocation2 + $0x16] sm:$0x1f]  ;;  %v231_v48 = vpop.f32.mrf.mxu0  ;;  %v873_v7 = vld [vmem:[#allocation8 + $0x278] sm:$0xff] }
 0x106   :  { %v387_v19 = vld [vmem:[#allocation2 + $0x17] sm:$0x1f]  ;;  %348 = vst [vmem:[#allocation3 + $0x1a0] ss:$-388 sps:$4 sm:$0xe3] %v346_v12   ;;  %v384_v22 = vrot.slane %v382_v18, 6  ;;  %v232_v59 = vadd.f32 %v3903_v21, %v231_v48 }
 0x107   :  { %v389_v23 = vrot.slane %v387_v19, 6  ;;  %v407_v24 = vld [vmem:[#allocation2 + $0x15] sm:$0x1f]  ;;  %354 = vst [vmem:[#allocation3 + $0xb0] ss:$-20 sps:$4 sm:$0xe3] %v352_v13   ;;  %v3536_v60 = vpop.f32.mrf.mxu0 }
 0x108   :  { %v413_v25 = vld [vmem:[#allocation2 + $0x16] sm:$0x1f]  ;;  %360 = vst [vmem:[#allocation3 + $0x118] ss:$44 sps:$4 sm:$0xe3] %v358_v16   ;;  %v409_v26 = vrot.slane %v407_v24, 1 }
 0x109   :  { %v415_v27 = vrot.slane %v413_v25, 1  ;;  %v419_v28 = vld [vmem:[#allocation2 + $0x17] sm:$0x1f]  ;;  %381 = vst [vmem:[#allocation3 + $0x160] sm:$0x7c] %v379_v17  ;;  %v236_v6 = vpop.f32.mrf.mxu0  ;;  %v261_v10 = vmax.f32 %v222_v53, 0.0 }
 0x10a   :  { %v392_v29 = vld [vmem:[#allocation2 + $0x1c] sm:$0x1f]  ;;  %v421_v31 = vrot.slane %v419_v28, 1  ;;  %386 = vst [vmem:[#allocation3 + $0x170] sm:$0x7c] %v384_v22  ;;  %v262_v12 = vmax.f32 %v227_v54, 0.0  ;;  %v237_v17 = vadd.f32 %v3903_v21, %v236_v6 }
 0x10b   :  { %391 = vst [vmem:[#allocation3 + $0x1d8] sm:$0x7c] %v389_v23  ;;  %v394_v32 = vrot.slane %v392_v29, 6  ;;  %v397_v33 = vld [vmem:[#allocation2 + $0x1d] sm:$0x1f]  ;;  %v731_v13 = vld [vmem:[#allocation3 + $0xc8] sm:$0xff]  ;;  %v3539_v18 = vpop.f32.mrf.mxu0 }
 0x10c   :  { %v402_v34 = vld [vmem:[#allocation2 + $0x1e] sm:$0x1f]  ;;  %411 = vst [vmem:[#allocation3 + $0x1e0] ss:$-236 sps:$4 sm:$0x8f] %v409_v26   ;;  %v399_v35 = vrot.slane %v397_v33, 6 }
 0x10d   :  { %417 = vst [vmem:[#allocation3 + $0x198] ss:$-156 sps:$4 sm:$0x8f] %v415_v27   ;;  %v404_v36 = vrot.slane %v402_v34, 6  ;;  %v425_v37 = vld [vmem:[#allocation2 + $0x1c] sm:$0x1f]  ;;  %v241_v27 = vpop.f32.mrf.mxu0 }
 0x10e   :  { %v431_v38 = vld [vmem:[#allocation2 + $0x1d] sm:$0x1f]  ;;  %423 = vst [vmem:[#allocation3 + $0x1b0] ss:$-372 sps:$4 sm:$0x8f] %v421_v31   ;;  %v427_v40 = vrot.slane %v425_v37, 1  ;;  %v242_v29 = vadd.f32 %v3903_v21, %v241_v27 }
 0x10f   :  { %v433_v41 = vrot.slane %v431_v38, 1  ;;  %v437_v42 = vld [vmem:[#allocation2 + $0x1e] sm:$0x1f]  ;;  %v443_v43 = vld [vmem:[#allocation2 + $0x23] sm:$0x1f]  ;;  %v263_v15 = vmax.f32 %v232_v59, 0.0  ;;  %v3542_v31 = vpop.f32.mrf.mxu0 }
 0x110   :  { %396 = vst [vmem:[#allocation3 + $0x1a0] sm:$0x7c] %v394_v32  ;;  %v439_v44 = vrot.slane %v437_v42, 1  ;;  %v445_v45 = vrot.slane %v443_v43, 1  ;;  %v461_v46 = vld [vmem:[#allocation2 + $0x1c] sm:$0x1f] }
 0x111   :  { %v467_v47 = vld [vmem:[#allocation2 + $0x1d] sm:$0x1f]  ;;  %401 = vst [vmem:[#allocation3 + $0xb0] sm:$0x7c] %v399_v35  ;;  %406 = vst [vmem:[#allocation3 + $0x118] sm:$0x7c] %v404_v36 }
 0x112   :  { %v463_v49 = vrot.slane %v461_v46, 4  ;;  %v469_v50 = vrot.slane %v467_v47, 4  ;;  %v473_v51 = vld [vmem:[#allocation2 + $0x1e] sm:$0x1f]  ;;  %v479_v52 = vld [vmem:[#allocation2 + $0x23] sm:$0x1f] }
 0x113   :  { %429 = vst [vmem:[#allocation3 + $0xa8] ss:$188 sps:$4 sm:$0x8f] %v427_v40   ;;  %435 = vst [vmem:[#allocation3 + $0x1b8] ss:$-68 sps:$4 sm:$0x8f] %v433_v41   ;;  %v246_v40 = vpop.f32.mrf.mxu0 }
 0x114   :  { %v475_v55 = vrot.slane %v473_v51, 4  ;;  %v481_v56 = vrot.slane %v479_v52, 4  ;;  %441 = vst [vmem:[#allocation3 + $0x100] ss:$220 sps:$4 sm:$0x8f] %v439_v44   ;;  %v732_v11 = vld [vmem:[#allocation3 + $0xd0] sm:$0xff]  ;;  %v247_v43 = vadd.f32 %v3903_v21, %v246_v40 }
 0x115   :  { %447 = vst [vmem:[#allocation3 + $0x188] ss:$28 sps:$4 sm:$0x8f] %v445_v45   ;;  %v449_v57 = vld [vmem:[#allocation2 + $0x24] sm:$0x1f]  ;;  %1009 = vmatprep.mubr.f32.mxu1 %v732_v11  ;;  %274 = vst [vmem:[#allocation2 + $0x30] sm:$0xff] %v261_v10  ;;  %v3545_v51 = vpop.f32.mrf.mxu0 }
 0x116   :  { %v455_v58 = vld [vmem:[#allocation2 + $0x25] sm:$0x1f]  ;;  %465 = vst [vmem:[#allocation3 + $0x1f0] ss:$-12 sps:$4 sm:$0xf1] %v463_v49   ;;  %v451_v61 = vrot.slane %v449_v57, 1  ;;  %1010 = vmatmul.mubr.f32.vlgmr.msra.gmra.mxu1 %v731_v13 }
 0x117   :  { %471 = vst [vmem:[#allocation3 + $0x60] ss:$316 sps:$4 sm:$0xf1] %v469_v50   ;;  %v457_v62 = vrot.slane %v455_v58, 1  ;;  %v485_v63 = vld [vmem:[#allocation2 + $0x24] sm:$0x1f]  ;;  %3191 = vmatpush3.msra.mxu1 %v873_v7 }
 0x118   :  { %v491_v1 = vld [vmem:[#allocation2 + $0x25] sm:$0x1f]  ;;  %477 = vst [vmem:[#allocation3 + $0x1a8] ss:$12 sps:$4 sm:$0xf1] %v475_v55   ;;  %v487_v2 = vrot.slane %v485_v63, 4 }
 0x119   :  { %483 = vst [vmem:[#allocation3 + $0x150] ss:$-164 sps:$4 sm:$0xf1] %v481_v56   ;;  %v493_v3 = vrot.slane %v491_v1, 4  ;;  %v497_v4 = vld [vmem:[#allocation2 + $0x2a] sm:$0x1f]  ;;  %v3917_v1 = vpop.f32.mrf.mxu0 }
 0x11a   :  { %v503_v5 = vld [vmem:[#allocation2 + $0x2b] sm:$0x1f]  ;;  %v499_v8 = vrot.slane %v497_v4, 4  ;;  %453 = vst [vmem:[#allocation3 + $0xb8] ss:$-4 sps:$4 sm:$0x8f] %v451_v61  }
 0x11b   :  { %v505_v9 = vrot.slane %v503_v5, 4  ;;  %459 = vst [vmem:[#allocation3 + $0x80] ss:$156 sps:$4 sm:$0x8f] %v457_v62   ;;  %v734_v14 = vld [vmem:[#allocation3 + $0xd8] sm:$0xff]  ;;  %275 = vst [vmem:[#allocation2 + $0x38] sm:$0xff] %v262_v12 }
 0x11c   :  { %489 = vst [vmem:[#allocation3 + $0x78] ss:$324 sps:$4 sm:$0xf1] %v487_v2   ;;  %495 = vst [vmem:[#allocation3 + $0x1d0] ss:$-204 sps:$4 sm:$0xf1] %v493_v3   ;;  %1109 = vmatprep.mubr.f32.mxu0 %v734_v14 }
 0x11d   :  { %v741_v16 = vld [vmem:[#allocation3 + $0xf8] sm:$0xff]  ;;  %501 = vst [vmem:[#allocation3 + $0x130] ss:$92 sps:$4 sm:$0xf1] %v499_v8   ;;  %v733_v20 = vld [vmem:[#allocation3 + $0x50] sm:$0xff]  ;;  %v905_v22 = vld [vmem:[#allocation8 + $0x378] sm:$0xff] }
 0x11e   :  { %v888_v19 = vld [vmem:[#allocation8 + $0x2f0] sm:$0xff]  ;;  %507 = vst [vmem:[#allocation3 + $0x180] ss:$-196 sps:$4 sm:$0xf1] %v505_v9   ;;  %276 = vst [vmem:[#allocation2 + $0x40] sm:$0xff] %v263_v15  ;;  %1110 = vmatmul.mubr.f32.vlgmr.msra.gmra.mxu0 %v733_v20  ;;  %1014 = vmatprep.mubr.f32.mxu1 %v741_v16  ;;  %v264_v24 = vmax.f32 %v237_v17, 0.0  ;;  %v3548_v16 = vpop.f32.mrf.mxu0 }
 0x11f   :  { %v920_v23 = vld [vmem:[#allocation8 + $0x3f0] sm:$0xff]  ;;  %v740_v25 = vld [vmem:[#allocation3 + $0xf0] sm:$0xff]  ;;  %v743_v26 = vld [vmem:[#allocation3 + $0x160] sm:$0xff]  ;;  %3192 = vmatprep.subr.mxu1 %v888_v19  ;;  %3244 = vmatpush3.msra.mxu0 %v905_v22  ;;  %v265_v34 = vmax.f32 %v242_v29, 0.0  ;;  %v266_v58 = vmax.f32 %v247_v43, 0.0 }
 0x120   :  { %v304_v28 = vld [vmem:[#allocation2 + $0xf] sm:$0x1f]  ;;  %1114 = vmatprep.mubr.f32.mxu0 %v743_v26  ;;  %277 = vst [vmem:[#allocation2 + $0x48] sm:$0xff] %v264_v24  ;;  %v750_v30 = vld [vmem:[#allocation3 + $0x198] sm:$0xff]  ;;  %v887_v33 = vld [vmem:[#allocation8 + $0x2e8] sm:$0xff]  ;;  %1015 = vmatmul.mubr.f32.gmra.mxu1 %v740_v25 }
 0x121   :  { %305 = vst [vmem:[#allocation3 + $0x98] sm:$0x1f] %v304_v28  ;;  %v872_v32 = vld [vmem:[#allocation8 + $0x270] sm:$0xff]  ;;  %v871_v36 = vld [vmem:[#allocation8 + $0x268] sm:$0xff]  ;;  %3245 = vmatprep.subr.mxu0 %v920_v23  ;;  %1019 = vmatprep.mubr.f32.mxu1 %v750_v30  ;;  %v749_v38 = vld [vmem:[#allocation3 + $0x1e0] sm:$0xff] }
 0x122   :  { %v742_v35 = vld [vmem:[#allocation3 + $0x38] sm:$0xff]  ;;  %v752_v39 = vld [vmem:[#allocation3 + $0xa8] sm:$0xff]  ;;  %v919_v42 = vld [vmem:[#allocation8 + $0x3e8] sm:$0xff]  ;;  %278 = vst [vmem:[#allocation2 + $0x50] sm:$0xff] %v265_v34  ;;  %3193 = vmatpush3.msra.mxu1 %v872_v32 }
 0x123   :  { %v904_v37 = vld [vmem:[#allocation8 + $0x370] sm:$0xff]  ;;  %1115 = vmatmul.mubr.f32.gmra.mxu0 %v742_v35  ;;  %v886_v41 = vld [vmem:[#allocation8 + $0x2e0] sm:$0xff]  ;;  %v751_v44 = vld [vmem:[#allocation3 + $0x1b0] sm:$0xff]  ;;  %3194 = vmatprep.subr.mxu1 %v887_v33  ;;  %279 = vst [vmem:[#allocation2 + $0x58] sm:$0xff] %v266_v58 }
 0x124   :  { %1119 = vmatprep.mubr.f32.mxu0 %v752_v39  ;;  %v870_v45 = vld [vmem:[#allocation8 + $0x260] sm:$0xff]  ;;  %v903_v46 = vld [vmem:[#allocation8 + $0x368] sm:$0xff]  ;;  %v885_v52 = vld [vmem:[#allocation8 + $0x2d8] sm:$0xff]  ;;  %3246 = vmatpush3.msra.mxu0 %v904_v37 }
 0x125   :  { %v918_v47 = vld [vmem:[#allocation8 + $0x3e0] sm:$0xff]  ;;  %1020 = vmatmul.mubr.f32.gmra.mxu1 %v749_v38  ;;  %v869_v59 = vld [vmem:[#allocation8 + $0x258] sm:$0xff]  ;;  %3247 = vmatprep.subr.mxu0 %v919_v42  ;;  %v530_v62 = vld [vmem:[#allocation2 + $0x38] sm:$0x1f] }
 0x126   :  { %v509_v48 = vld [vmem:[#allocation2 + $0x2c] sm:$0x1f]  ;;  %v515_v49 = vld [vmem:[#allocation2 + $0x31] sm:$0x1f]  ;;  %v535_v63 = vld [vmem:[#allocation2 + $0x39] sm:$0x1f]  ;;  %3195 = vmatpush3.msra.mxu1 %v871_v36  ;;  %3248 = vmatpush3.msra.mxu0 %v903_v46 }
 0x127   :  { %v520_v50 = vld [vmem:[#allocation2 + $0x32] sm:$0x1f]  ;;  %v511_v54 = vrot.slane %v509_v48, 4  ;;  %v517_v55 = vrot.slane %v515_v49, 7  ;;  %v917_v60 = vld [vmem:[#allocation8 + $0x3d8] sm:$0xff]  ;;  %1120 = vmatmul.mubr.f32.gmra.mxu0 %v751_v44  ;;  %v884_v2 = vld [vmem:[#allocation8 + $0x2d0] sm:$0xff]  ;;  %3196 = vmatprep.subr.mxu1 %v886_v41 }
 0x128   :  { %v902_v53 = vld [vmem:[#allocation8 + $0x360] sm:$0xff]  ;;  %v522_v56 = vrot.slane %v520_v50, 7  ;;  %v901_v3 = vld [vmem:[#allocation8 + $0x358] sm:$0xff]  ;;  %v532_v4 = vrot.slane %v530_v62, 7  ;;  %v537_v5 = vrot.slane %v535_v63, 7  ;;  %v868_v8 = vld [vmem:[#allocation8 + $0x250] sm:$0xff]  ;;  %3197 = vmatpush3.msra.mxu1 %v870_v45  ;;  %3249 = vmatprep.subr.mxu0 %v918_v47 }
 0x129   :  { %v525_v57 = vld [vmem:[#allocation2 + $0x33] sm:$0x1f]  ;;  %513 = vst [vmem:[#allocation3 + $0x1c0] ss:$-316 sps:$4 sm:$0xf1] %v511_v54   ;;  %v916_v9 = vld [vmem:[#allocation8 + $0x3d0] sm:$0xff]  ;;  %3198 = vmatprep.subr.mxu1 %v885_v52  ;;  %3250 = vmatpush3.msra.mxu0 %v902_v53 }
 0x12a   :  { %v527_v61 = vrot.slane %v525_v57, 7  ;;  %519 = vst [vmem:[#allocation3 + $0x1f0] sm:$0x3e] %v517_v55  ;;  %524 = vst [vmem:[#allocation3 + $0x60] sm:$0x3e] %v522_v56  ;;  %v883_v14 = vld [vmem:[#allocation8 + $0x2c8] sm:$0xff]  ;;  %3199 = vmatpush3.msra.mxu1 %v869_v59  ;;  %3251 = vmatprep.subr.mxu0 %v917_v60 }
 0x12b   :  { %v540_v6 = vld [vmem:[#allocation2 + $0x3a] sm:$0x1f]  ;;  %v900_v15 = vld [vmem:[#allocation8 + $0x350] sm:$0xff]  ;;  %534 = vst [vmem:[#allocation3 + $0x150] sm:$0x3e] %v532_v4  ;;  %v882_v28 = vld [vmem:[#allocation8 + $0x2c0] sm:$0xff]  ;;  %3200 = vmatprep.subr.mxu1 %v884_v2  ;;  %3252 = vmatpush3.msra.mxu0 %v901_v3 }
 0x12c   :  { %v560_v7 = vld [vmem:[#allocation2 + $0x38] sm:$0x1f]  ;;  %529 = vst [vmem:[#allocation3 + $0x1a8] sm:$0x3e] %v527_v61  ;;  %v542_v10 = vrot.slane %v540_v6, 7  ;;  %v866_v34 = vld [vmem:[#allocation8 + $0x240] sm:$0xff]  ;;  %3201 = vmatpush3.msra.mxu1 %v868_v8  ;;  %3253 = vmatprep.subr.mxu0 %v916_v9  ;;  %v252_v8 = vadd.f32 %v3903_v21, %v3917_v1 }
 0x12d   :  { %v562_v11 = vrot.slane %v560_v7, 2  ;;  %v566_v12 = vld [vmem:[#allocation2 + $0x39] sm:$0x1f]  ;;  %539 = vst [vmem:[#allocation3 + $0x78] sm:$0x3e] %v537_v5  ;;  %v914_v35 = vld [vmem:[#allocation8 + $0x3c0] sm:$0xff]  ;;  %3202 = vmatprep.subr.mxu1 %v883_v14  ;;  %3254 = vmatpush3.msra.mxu0 %v900_v15 }
 0x12e   :  { %v572_v13 = vld [vmem:[#allocation2 + $0x3a] sm:$0x1f]  ;;  %v568_v17 = vrot.slane %v566_v12, 2  ;;  %v545_v19 = vld [vmem:[#allocation2 + $0x3f] sm:$0x1f]  ;;  %v881_v40 = vld [vmem:[#allocation8 + $0x2b8] sm:$0xff] }
 0x12f   :  { %v574_v18 = vrot.slane %v572_v13, 2  ;;  %v550_v20 = vld [vmem:[#allocation2 + $0x40] sm:$0x1f]  ;;  %v867_v22 = vld [vmem:[#allocation8 + $0x248] sm:$0xff]  ;;  %544 = vst [vmem:[#allocation3 + $0x1d0] sm:$0x3e] %v542_v10 }
 0x130   :  { %v915_v23 = vld [vmem:[#allocation8 + $0x3c8] sm:$0xff]  ;;  %564 = vst [vmem:[#allocation3 + $0x28] ss:$460 sps:$4 sm:$0xc7] %v562_v11   ;;  %v547_v24 = vrot.slane %v545_v19, 7  ;;  %v552_v25 = vrot.slane %v550_v20, 7  ;;  %3203 = vmatpush3.msra.mxu1 %v867_v22 }
 0x131   :  { %v555_v26 = vld [vmem:[#allocation2 + $0x41] sm:$0x1f]  ;;  %v899_v29 = vld [vmem:[#allocation8 + $0x348] sm:$0xff]  ;;  %570 = vst [vmem:[#allocation3 + $0x110] ss:$-172 sps:$4 sm:$0xc7] %v568_v17   ;;  %3255 = vmatprep.subr.mxu0 %v915_v23  ;;  %3204 = vmatprep.subr.mxu1 %v882_v28 }
 0x132   :  { %v578_v27 = vld [vmem:[#allocation2 + $0x3f] sm:$0x1f]  ;;  %576 = vst [vmem:[#allocation3 + $0x88] ss:$292 sps:$4 sm:$0xc7] %v574_v18   ;;  %v557_v30 = vrot.slane %v555_v26, 7  ;;  %3256 = vmatpush3.msra.mxu0 %v899_v29  ;;  %3205 = vmatpush3.msra.mxu1 %v866_v34 }
 0x133   :  { %v580_v31 = vrot.slane %v578_v27, 2  ;;  %v584_v32 = vld [vmem:[#allocation2 + $0x40] sm:$0x1f]  ;;  %549 = vst [vmem:[#allocation3 + $0x130] sm:$0x3e] %v547_v24  ;;  %v898_v41 = vld [vmem:[#allocation8 + $0x340] sm:$0xff]  ;;  %3257 = vmatprep.subr.mxu0 %v914_v35  ;;  %3206 = vmatprep.subr.mxu1 %v881_v40 }
 0x134   :  { %v590_v33 = vld [vmem:[#allocation2 + $0x41] sm:$0x1f]  ;;  %v586_v36 = vrot.slane %v584_v32, 2  ;;  %554 = vst [vmem:[#allocation3 + $0x180] sm:$0x3e] %v552_v25  ;;  %v865_v46 = vld [vmem:[#allocation8 + $0x238] sm:$0xff]  ;;  %3258 = vmatpush3.msra.mxu0 %v898_v41 }
 0x135   :  { %v592_v37 = vrot.slane %v590_v33, 2  ;;  %v614_v38 = vld [vmem:[#allocation2 + $0x3f] sm:$0x1f]  ;;  %559 = vst [vmem:[#allocation3 + $0x1c0] sm:$0x3e] %v557_v30  ;;  %v913_v47 = vld [vmem:[#allocation8 + $0x3b8] sm:$0xff]  ;;  %3207 = vmatpush3.msra.mxu1 %v865_v46 }
 0x136   :  { %v619_v39 = vld [vmem:[#allocation2 + $0x40] sm:$0x1f]  ;;  %v616_v42 = vrot.slane %v614_v38, 5  ;;  %582 = vst [vmem:[#allocation3 + $0x30] ss:$292 sps:$4 sm:$0xc7] %v580_v31   ;;  %3259 = vmatprep.subr.mxu0 %v913_v47 }
 0x137   :  { %v621_v43 = vrot.slane %v619_v39, 5  ;;  %v624_v44 = vld [vmem:[#allocation2 + $0x41] sm:$0x1f]  ;;  %v596_v45 = vld [vmem:[#allocation2 + $0x46] sm:$0x1f]  ;;  %v879_v2 = vld [vmem:[#allocation8 + $0x2a8] sm:$0xff] }
 0x138   :  { %v626_v48 = vrot.slane %v624_v44, 5  ;;  %588 = vst [vmem:[#allocation3 + $0x158] ss:$-220 sps:$4 sm:$0xc7] %v586_v36   ;;  %v598_v49 = vrot.slane %v596_v45, 2  ;;  %v880_v52 = vld [vmem:[#allocation8 + $0x2b0] sm:$0xff] }
 0x139   :  { %594 = vst [vmem:[#allocation3 + $0x178] ss:$92 sps:$4 sm:$0xc7] %v592_v37   ;;  %v602_v50 = vld [vmem:[#allocation2 + $0x47] sm:$0x1f]  ;;  %v863_v9 = vld [vmem:[#allocation8 + $0x228] sm:$0xff]  ;;  %3208 = vmatprep.subr.mxu1 %v880_v52 }
 0x13a   :  { %v608_v51 = vld [vmem:[#allocation2 + $0x48] sm:$0x1f]  ;;  %618 = vst [vmem:[#allocation3 + $0x28] sm:$0xf8] %v616_v42  ;;  %623 = vst [vmem:[#allocation3 + $0x110] sm:$0xf8] %v621_v43 }
 0x13b   :  { %v897_v53 = vld [vmem:[#allocation8 + $0x338] sm:$0xff]  ;;  %v604_v54 = vrot.slane %v602_v50, 2  ;;  %v610_v55 = vrot.slane %v608_v51, 2  ;;  %v864_v58 = vld [vmem:[#allocation8 + $0x230] sm:$0xff]  ;;  %628 = vst [vmem:[#allocation3 + $0x88] sm:$0xf8] %v626_v48 }
 0x13c   :  { %v629_v56 = vld [vmem:[#allocation2 + $0x46] sm:$0x1f]  ;;  %600 = vst [vmem:[#allocation3 + $0x70] ss:$196 sps:$4 sm:$0xc7] %v598_v49   ;;  %3260 = vmatpush3.msra.mxu0 %v897_v53  ;;  %3209 = vmatpush3.msra.mxu1 %v864_v58  ;;  %v878_v20 = vld [vmem:[#allocation8 + $0x2a0] sm:$0xff] }
 0x13d   :  { %v634_v57 = vld [vmem:[#allocation2 + $0x47] sm:$0x1f]  ;;  %v631_v60 = vrot.slane %v629_v56, 5  ;;  %v644_v63 = vld [vmem:[#allocation2 + $0x4d] sm:$0x1f]  ;;  %v911_v22 = vld [vmem:[#allocation8 + $0x3a8] sm:$0xff]  ;;  %3210 = vmatprep.subr.mxu1 %v879_v2 }
 0x13e   :  { %v912_v59 = vld [vmem:[#allocation8 + $0x3b0] sm:$0xff]  ;;  %v636_v61 = vrot.slane %v634_v57, 5  ;;  %v639_v62 = vld [vmem:[#allocation2 + $0x48] sm:$0x1f]  ;;  %v646_v5 = vrot.slane %v644_v63, 5  ;;  %v267_v26 = vmax.f32 %v252_v8, 0.0  ;;  %3211 = vmatpush3.msra.mxu1 %v863_v9 }
 0x13f   :  { %v896_v3 = vld [vmem:[#allocation8 + $0x330] sm:$0xff]  ;;  %v641_v4 = vrot.slane %v639_v62, 5  ;;  %606 = vst [vmem:[#allocation3 + $0x128] ss:$92 sps:$4 sm:$0xc7] %v604_v54   ;;  %3261 = vmatprep.subr.mxu0 %v912_v59  ;;  %v759_v27 = vld [vmem:[#allocation3 + $0x60] sm:$0xff]  ;;  %3212 = vmatprep.subr.mxu1 %v878_v20 }
 0x140   :  { %612 = vst [vmem:[#allocation3 + $0x1e8] ss:$-36 sps:$4 sm:$0xc7] %v610_v55   ;;  %v649_v6 = vld [vmem:[#allocation2 + $0x4e] sm:$0x1f]  ;;  %3262 = vmatpush3.msra.mxu0 %v896_v3  ;;  %1024 = vmatprep.mubr.f32.mxu1 %v759_v27  ;;  %v758_v30 = vld [vmem:[#allocation3 + $0x1f0] sm:$0xff] }
 0x141   :  { %v654_v7 = vld [vmem:[#allocation2 + $0x4f] sm:$0x1f]  ;;  %633 = vst [vmem:[#allocation3 + $0x30] sm:$0xf8] %v631_v60  ;;  %638 = vst [vmem:[#allocation3 + $0x158] sm:$0xf8] %v636_v61  ;;  %1025 = vmatmul.mubr.f32.gmra.mxu1 %v758_v30  ;;  %3263 = vmatprep.subr.mxu0 %v911_v22 }
 0x142   :  { %v651_v10 = vrot.slane %v649_v6, 5  ;;  %v656_v11 = vrot.slane %v654_v7, 5  ;;  %v677_v12 = vld [vmem:[#allocation2 + $0x4d] sm:$0x1f]  ;;  %643 = vst [vmem:[#allocation3 + $0x178] sm:$0xf8] %v641_v4 }
 0x143   :  { %v683_v13 = vld [vmem:[#allocation2 + $0x4e] sm:$0x1f]  ;;  %v679_v14 = vrot.slane %v677_v12, 3  ;;  %648 = vst [vmem:[#allocation3 + $0x70] sm:$0xf8] %v646_v5  ;;  %v768_v31 = vld [vmem:[#allocation3 + $0x110] sm:$0xff] }
 0x144   :  { %v685_v15 = vrot.slane %v683_v13, 3  ;;  %v689_v16 = vld [vmem:[#allocation2 + $0x4f] sm:$0x1f]  ;;  %v695_v17 = vld [vmem:[#allocation2 + $0x54] sm:$0x1f]  ;;  %280 = vst [vmem:[#allocation2 + $0x60] sm:$0xff] %v267_v26  ;;  %1029 = vmatprep.mubr.f32.mxu1 %v768_v31 }
 0x145   :  { %v691_v21 = vrot.slane %v689_v16, 3  ;;  %653 = vst [vmem:[#allocation3 + $0x128] sm:$0xf8] %v651_v10  ;;  %658 = vst [vmem:[#allocation3 + $0x1e8] sm:$0xf8] %v656_v11  ;;  %v697_v1 = vrot.slane %v695_v17, 3 }
 0x146   :  { %v701_v18 = vld [vmem:[#allocation2 + $0x55] sm:$0x1f]  ;;  %681 = vst [vmem:[#allocation3 + $0x68] ss:$-36 sps:$4 sm:$0xe3] %v679_v14   ;;  %v877_v35 = vld [vmem:[#allocation8 + $0x298] sm:$0xff] }
 0x147   :  { %v707_v19 = vld [vmem:[#allocation2 + $0x56] sm:$0x1f]  ;;  %687 = vst [vmem:[#allocation3 + $0x168] ss:$-28 sps:$4 sm:$0xe3] %v685_v15   ;;  %v703_v23 = vrot.slane %v701_v18, 3 }
 0x148   :  { %v709_v24 = vrot.slane %v707_v19, 3  ;;  %v713_v25 = vld [vmem:[#allocation2 + $0x5b] sm:$0x1f]  ;;  %v862_v28 = vld [vmem:[#allocation8 + $0x220] sm:$0xff]  ;;  %v661_v36 = vld [vmem:[#allocation2 + $0x47] sm:$0x1f] }
 0x149   :  { %693 = vst [vmem:[#allocation3 + $0x90] ss:$-124 sps:$4 sm:$0xe3] %v691_v21   ;;  %v715_v29 = vrot.slane %v713_v25, 3  ;;  %v761_v32 = vld [vmem:[#allocation3 + $0x150] sm:$0xff]  ;;  %v767_v33 = vld [vmem:[#allocation3 + $0x28] sm:$0xff]  ;;  %3213 = vmatpush3.msra.mxu1 %v862_v28 }
 0x14a   :  { %699 = vst [vmem:[#allocation3 + $0x1c8] ss:$-364 sps:$4 sm:$0xe3] %v697_v1   ;;  %705 = vst [vmem:[#allocation3 + $0x8] ss:$156 sps:$4 sm:$0xe3] %v703_v23   ;;  %1124 = vmatprep.mubr.f32.mxu0 %v761_v32  ;;  %1030 = vmatmul.mubr.f32.gmra.mxu1 %v767_v33 }
 0x14b   :  { %711 = vst [vmem:[#allocation3 + $0x120] ss:$-252 sps:$4 sm:$0xe3] %v709_v24   ;;  %v760_v34 = vld [vmem:[#allocation3 + $0x1a8] sm:$0xff]  ;;  %v659_v37 = vld [vmem:[#allocation2 + $0x46] sm:$0x1f]  ;;  %3214 = vmatprep.subr.mxu1 %v877_v35 }
 0x14c   :  { %717 = vst [vmem:[#allocation3 + $0xe8] ss:$-4 sps:$4 sm:$0xe3] %v715_v29   ;;  %1125 = vmatmul.mubr.f32.gmra.mxu0 %v760_v34  ;;  %v665_v38 = vld [vmem:[#allocation2 + $0x4d] sm:$0x1f]  ;;  %v770_v39 = vld [vmem:[#allocation3 + $0x30] sm:$0xff] }
 0x14d   :  { %662 = vst [vmem:[#allocation3 + $0x148] sm:$0x1f] %v661_v36  ;;  %660 = vst [vmem:[#allocation3 + $0x40] sm:$0x1f] %v659_v37  ;;  %v861_v40 = vld [vmem:[#allocation8 + $0x218] sm:$0xff]  ;;  %1129 = vmatprep.mubr.f32.mxu0 %v770_v39  ;;  %v876_v42 = vld [vmem:[#allocation8 + $0x290] sm:$0xff] }
 0x14e   :  { %666 = vst [vmem:[#allocation3 + $0x58] sm:$0x1f] %v665_v38  ;;  %v663_v41 = vld [vmem:[#allocation2 + $0x48] sm:$0x1f]  ;;  %v895_v43 = vld [vmem:[#allocation8 + $0x328] sm:$0xff]  ;;  %v769_v44 = vld [vmem:[#allocation3 + $0x88] sm:$0xff]  ;;  %3215 = vmatpush3.msra.mxu1 %v861_v40 }
 0x14f   :  { %664 = vst [vmem:[#allocation3 + $0x10] sm:$0x1f] %v663_v41  ;;  %v860_v45 = vld [vmem:[#allocation8 + $0x210] sm:$0xff]  ;;  %v910_v46 = vld [vmem:[#allocation8 + $0x3a0] sm:$0xff]  ;;  %v875_v47 = vld [vmem:[#allocation8 + $0x288] sm:$0xff]  ;;  %3216 = vmatprep.subr.mxu1 %v876_v42  ;;  %3264 = vmatpush3.msra.mxu0 %v895_v43 }
 0x150   :  { %1130 = vmatmul.mubr.f32.gmra.mxu0 %v769_v44  ;;  %v894_v48 = vld [vmem:[#allocation8 + $0x320] sm:$0xff]  ;;  %v859_v49 = vld [vmem:[#allocation8 + $0x208] sm:$0xff]  ;;  %v909_v50 = vld [vmem:[#allocation8 + $0x398] sm:$0xff]  ;;  %3217 = vmatpush3.msra.mxu1 %v860_v45 }
 0x151   :  { %v669_v51 = vld [vmem:[#allocation2 + $0x4f] sm:$0x1f]  ;;  %v719_v52 = vld [vmem:[#allocation2 + $0x5c] sm:$0x1f]  ;;  %3265 = vmatprep.subr.mxu0 %v910_v46  ;;  %3218 = vmatprep.subr.mxu1 %v875_v47  ;;  %v673_v3 = vld [vmem:[#allocation2 + $0x55] sm:$0x1f] }
 0x152   :  { %v725_v53 = vld [vmem:[#allocation2 + $0x5d] sm:$0x1f]  ;;  %670 = vst [vmem:[#allocation3 + $0x20] sm:$0x1f] %v669_v51  ;;  %v721_v54 = vrot.slane %v719_v52, 3  ;;  %3266 = vmatpush3.msra.mxu0 %v894_v48  ;;  %v874_v56 = vld [vmem:[#allocation8 + $0x280] sm:$0xff]  ;;  %3219 = vmatpush3.msra.mxu1 %v859_v49 }
 0x153   :  { %v727_v55 = vrot.slane %v725_v53, 3  ;;  %v893_v57 = vld [vmem:[#allocation8 + $0x318] sm:$0xff]  ;;  %3267 = vmatprep.subr.mxu0 %v909_v50  ;;  %v858_v62 = vld [vmem:[#allocation8 + $0x200] sm:$0xff]  ;;  %v908_v2 = vld [vmem:[#allocation8 + $0x390] sm:$0xff]  ;;  %674 = vst [vmem:[#allocation3 + $0x48] sm:$0x1f] %v673_v3  ;;  %3220 = vmatprep.subr.mxu1 %v874_v56 }
 0x154   :  { %v667_v58 = vld [vmem:[#allocation2 + $0x4e] sm:$0x1f]  ;;  %723 = vst [vmem:[#allocation3] ss:$76 sps:$4 sm:$0xe3] %v721_v54   ;;  %v892_v7 = vld [vmem:[#allocation8 + $0x310] sm:$0xff]  ;;  %3268 = vmatpush3.msra.mxu0 %v893_v57  ;;  %3221 = vmatpush3.msra.mxu1 %v858_v62 }
 0x155   :  { %v777_v59 = vld [vmem:[#allocation3 + $0x148] sm:$0xff]  ;;  %v776_v60 = vld [vmem:[#allocation3 + $0x40] sm:$0xff]  ;;  %v779_v61 = vld [vmem:[#allocation3 + $0x58] sm:$0xff]  ;;  %668 = vst [vmem:[#allocation3 + $0xa0] sm:$0x1f] %v667_v58  ;;  %3269 = vmatprep.subr.mxu0 %v908_v2  ;;  %3549 = vmatprep.subr.mxu1 %v4920_v0 }
 0x156   :  { %729 = vst [vmem:[#allocation3 + $0x138] ss:$92 sps:$4 sm:$0xe3] %v727_v55   ;;  %1034 = vmatprep.mubr.f32.mxu1 %v777_v59  ;;  %1134 = vmatprep.mubr.f32.mxu0 %v779_v61  ;;  %v778_v63 = vld [vmem:[#allocation3 + $0x10] sm:$0xff]  ;;  %v786_v4 = vld [vmem:[#allocation3 + $0x168] sm:$0xff]  ;;  %v736_v11 = vld [vmem:[#allocation3 + $0xc0] sm:$0xff] }
 0x157   :  { %1035 = vmatmul.mubr.f32.gmra.mxu1 %v776_v60  ;;  %1135 = vmatmul.mubr.f32.gmra.mxu0 %v778_v63  ;;  %v788_v5 = vld [vmem:[#allocation3 + $0x1c8] sm:$0xff]  ;;  %v907_v10 = vld [vmem:[#allocation8 + $0x388] sm:$0xff]  ;;  %v937_v15 = vld [vmem:[#allocation8 + $0x478] sm:$0xff] }
 0x158   :  { %v671_v6 = vld [vmem:[#allocation2 + $0x54] sm:$0x1f]  ;;  %1039 = vmatprep.mubr.f32.mxu1 %v786_v4  ;;  %1139 = vmatprep.mubr.f32.mxu0 %v788_v5  ;;  %v738_v16 = vld [vmem:[#allocation3 + $0x98] sm:$0xff]  ;;  %v754_v23 = vld [vmem:[#allocation3 + $0x100] sm:$0xff] }
 0x159   :  { %672 = vst [vmem:[#allocation3 + $0xe0] sm:$0x1f] %v671_v6  ;;  %v675_v8 = vld [vmem:[#allocation2 + $0x56] sm:$0x1f]  ;;  %3270 = vmatpush3.msra.mxu0 %v892_v7  ;;  %v745_v1 = vld [vmem:[#allocation3 + $0x1d8] sm:$0xff]  ;;  %v746_v26 = vld [vmem:[#allocation3 + $0x1a0] sm:$0xff] }
 0x15a   :  { %676 = vst [vmem:[#allocation3 + $0x190] sm:$0x1f] %v675_v8  ;;  %v785_v9 = vld [vmem:[#allocation3 + $0x68] sm:$0xff]  ;;  %v891_v12 = vld [vmem:[#allocation8 + $0x308] sm:$0xff]  ;;  %3271 = vmatprep.subr.mxu0 %v907_v10  ;;  %v936_v18 = vld [vmem:[#allocation8 + $0x470] sm:$0xff] }
 0x15b   :  { %1040 = vmatmul.mubr.f32.gmra.mxu1 %v785_v9  ;;  %v787_v13 = vld [vmem:[#allocation3 + $0x90] sm:$0xff]  ;;  %v906_v14 = vld [vmem:[#allocation8 + $0x380] sm:$0xff]  ;;  %3272 = vmatpush3.msra.mxu0 %v891_v12  ;;  %v737_v19 = vld [vmem:[#allocation3 + $0x18] sm:$0xff] }
 0x15c   :  { %1209 = vmatprep.mubr.f32.mxu1 %v736_v11  ;;  %1140 = vmatmul.mubr.f32.gmra.mxu0 %v787_v13  ;;  %v735_v17 = vld [vmem:[#allocation3 + $0x108] sm:$0xff]  ;;  %v935_v20 = vld [vmem:[#allocation8 + $0x468] sm:$0xff]  ;;  %v933_v27 = vld [vmem:[#allocation8 + $0x458] sm:$0xff] }
 0x15d   :  { %1309 = vmatprep.mubr.f32.mxu0 %v738_v16  ;;  %v890_v21 = vld [vmem:[#allocation8 + $0x300] sm:$0xff]  ;;  %3273 = vmatprep.subr.mxu0 %v906_v14  ;;  %v744_v22 = vld [vmem:[#allocation3 + $0x170] sm:$0xff]  ;;  %v753_v28 = vld [vmem:[#allocation3 + $0x1b8] sm:$0xff] }
 0x15e   :  { %3274 = vmatpush3.msra.mxu0 %v890_v21  ;;  %v934_v24 = vld [vmem:[#allocation8 + $0x460] sm:$0xff]  ;;  %v747_v25 = vld [vmem:[#allocation3 + $0xb0] sm:$0xff]  ;;  %v932_v30 = vld [vmem:[#allocation8 + $0x450] sm:$0xff] }
 0x15f   :  { %1210 = vmatmul.mubr.f32.vlgmr.msra.gmra.mxu1 %v735_v17  ;;  %v763_v29 = vld [vmem:[#allocation3 + $0x1d0] sm:$0xff]  ;;  %v756_v31 = vld [vmem:[#allocation3 + $0xb8] sm:$0xff]  ;;  %v755_v32 = vld [vmem:[#allocation3 + $0x188] sm:$0xff] }
 0x160   :  { %3550 = vmatpush3.msra.mxu1 %v937_v15  ;;  %1214 = vmatprep.mubr.f32.mxu1 %v745_v1  ;;  %v931_v33 = vld [vmem:[#allocation8 + $0x448] sm:$0xff]  ;;  %v762_v34 = vld [vmem:[#allocation3 + $0x78] sm:$0xff]  ;;  %v930_v36 = vld [vmem:[#allocation8 + $0x440] sm:$0xff] }
 0x161   :  { %3551 = vmatprep.subr.mxu1 %v4920_v0  ;;  %1310 = vmatmul.mubr.f32.vlgmr.msra.gmra.mxu0 %v737_v19  ;;  %v772_v35 = vld [vmem:[#allocation3 + $0x178] sm:$0xff]  ;;  %v765_v37 = vld [vmem:[#allocation3 + $0x180] sm:$0xff]  ;;  %v764_v38 = vld [vmem:[#allocation3 + $0x130] sm:$0xff] }
 0x162   :  { %3552 = vmatpush3.msra.mxu1 %v936_v18  ;;  %1314 = vmatprep.mubr.f32.mxu0 %v747_v25  ;;  %v929_v39 = vld [vmem:[#allocation8 + $0x438] sm:$0xff]  ;;  %v771_v40 = vld [vmem:[#allocation3 + $0x158] sm:$0xff]  ;;  %v774_v43 = vld [vmem:[#allocation3 + $0x128] sm:$0xff] }
 0x163   :  { %3553 = vmatprep.subr.mxu1 %v4920_v0  ;;  %1215 = vmatmul.mubr.f32.gmra.mxu1 %v744_v22  ;;  %v781_v41 = vld [vmem:[#allocation3 + $0x20] sm:$0xff]  ;;  %v928_v42 = vld [vmem:[#allocation8 + $0x430] sm:$0xff]  ;;  %v773_v44 = vld [vmem:[#allocation3 + $0x70] sm:$0xff] }
 0x164   :  { %3554 = vmatpush3.msra.mxu1 %v935_v20  ;;  %1219 = vmatprep.mubr.f32.mxu1 %v754_v23  ;;  %v927_v45 = vld [vmem:[#allocation8 + $0x428] sm:$0xff]  ;;  %v780_v46 = vld [vmem:[#allocation3 + $0xa0] sm:$0xff]  ;;  %v926_v48 = vld [vmem:[#allocation8 + $0x420] sm:$0xff] }
 0x165   :  { %3555 = vmatprep.subr.mxu1 %v4920_v0  ;;  %1315 = vmatmul.mubr.f32.gmra.mxu0 %v746_v26  ;;  %v790_v47 = vld [vmem:[#allocation3 + $0x120] sm:$0xff]  ;;  %v783_v49 = vld [vmem:[#allocation3 + $0x48] sm:$0xff]  ;;  %v924_v54 = vld [vmem:[#allocation8 + $0x410] sm:$0xff] }
 0x166   :  { %3556 = vmatpush3.msra.mxu1 %v934_v24  ;;  %1319 = vmatprep.mubr.f32.mxu0 %v756_v31  ;;  %v782_v50 = vld [vmem:[#allocation3 + $0xe0] sm:$0xff]  ;;  %v789_v52 = vld [vmem:[#allocation3 + $0x8] sm:$0xff]  ;;  %v923_v56 = vld [vmem:[#allocation8 + $0x408] sm:$0xff] }
 0x167   :  { %3557 = vmatprep.subr.mxu1 %v4920_v0  ;;  %1220 = vmatmul.mubr.f32.gmra.mxu1 %v753_v28  ;;  %v925_v51 = vld [vmem:[#allocation8 + $0x418] sm:$0xff]  ;;  %v791_v55 = vld [vmem:[#allocation3 + $0xe8] sm:$0xff]  ;;  %v748_v59 = vld [vmem:[#allocation3 + $0x118] sm:$0xff] }
 0x168   :  { %3558 = vmatpush3.msra.mxu1 %v933_v27  ;;  %1224 = vmatprep.mubr.f32.mxu1 %v763_v29  ;;  %v792_v53 = vld [vmem:[#allocation3] sm:$0xff]  ;;  %v922_v57 = vld [vmem:[#allocation8 + $0x400] sm:$0xff]  ;;  %v784_v63 = vld [vmem:[#allocation3 + $0x190] sm:$0xff] }
 0x169   :  { %3559 = vmatprep.subr.mxu1 %v4920_v0  ;;  %1320 = vmatmul.mubr.f32.gmra.mxu0 %v755_v32  ;;  %v739_v58 = vld [vmem:[#allocation3 + $0x140] sm:$0xff]  ;;  %v775_v62 = vld [vmem:[#allocation3 + $0x1e8] sm:$0xff]  ;;  %v793_v2 = vld [vmem:[#allocation3 + $0x138] sm:$0xff] }
 0x16a   :  { %3560 = vmatpush3.msra.mxu1 %v932_v30  ;;  %1324 = vmatprep.mubr.f32.mxu0 %v765_v37  ;;  %v757_v60 = vld [vmem:[#allocation3 + $0x80] sm:$0xff]  ;;  %v1786_v5 = vld [vmem:[#allocation11 + $0xf0] sm:$0xff]  ;;  %v1785_v8 = vld [vmem:[#allocation11 + $0xe8] sm:$0xff] }
 0x16b   :  { %3561 = vmatprep.subr.mxu1 %v4920_v0  ;;  %1225 = vmatmul.mubr.f32.gmra.mxu1 %v762_v34  ;;  %v766_v61 = vld [vmem:[#allocation3 + $0x1c0] sm:$0xff]  ;;  %v1770_v6 = vld [vmem:[#allocation11 + $0x70] sm:$0xff]  ;;  %v1769_v9 = vld [vmem:[#allocation11 + $0x68] sm:$0xff] }
 0x16c   :  { %3562 = vmatpush3.msra.mxu1 %v931_v33  ;;  %1229 = vmatprep.mubr.f32.mxu1 %v772_v35  ;;  %v1787_v3 = vld [vmem:[#allocation11 + $0xf8] sm:$0xff]  ;;  %v1784_v11 = vld [vmem:[#allocation11 + $0xe0] sm:$0xff]  ;;  %v1818_v12 = vld [vmem:[#allocation11 + $0x1f0] sm:$0xff] }
 0x16d   :  { %3563 = vmatprep.subr.mxu1 %v4920_v0  ;;  %1325 = vmatmul.mubr.f32.gmra.mxu0 %v764_v38  ;;  %v1771_v4 = vld [vmem:[#allocation11 + $0x78] sm:$0xff]  ;;  %v1768_v13 = vld [vmem:[#allocation11 + $0x60] sm:$0xff]  ;;  %v1802_v14 = vld [vmem:[#allocation11 + $0x170] sm:$0xff] }
 0x16e   :  { %3564 = vmatpush3.msra.mxu1 %v930_v36  ;;  %1329 = vmatprep.mubr.f32.mxu0 %v774_v43  ;;  %v1819_v7 = vld [vmem:[#allocation11 + $0x1f8] sm:$0xff]  ;;  %v1817_v16 = vld [vmem:[#allocation11 + $0x1e8] sm:$0xff]  ;;  %v1782_v1 = vld [vmem:[#allocation11 + $0xd0] sm:$0xff] }
 0x16f   :  { %3565 = vmatprep.subr.mxu1 %v4920_v0  ;;  %1230 = vmatmul.mubr.f32.gmra.mxu1 %v771_v40  ;;  %v1803_v10 = vld [vmem:[#allocation11 + $0x178] sm:$0xff]  ;;  %v1801_v21 = vld [vmem:[#allocation11 + $0x168] sm:$0xff]  ;;  %v1816_v18 = vld [vmem:[#allocation11 + $0x1e0] sm:$0xff] }
 0x170   :  { %3566 = vmatpush3.msra.mxu1 %v929_v39  ;;  %1234 = vmatprep.mubr.f32.mxu1 %v781_v41  ;;  %v1783_v15 = vld [vmem:[#allocation11 + $0xd8] sm:$0xff]  ;;  %v1766_v19 = vld [vmem:[#allocation11 + $0x50] sm:$0xff]  ;;  %v1800_v20 = vld [vmem:[#allocation11 + $0x160] sm:$0xff] }
 0x171   :  { %3567 = vmatprep.subr.mxu1 %v4920_v0  ;;  %1330 = vmatmul.mubr.f32.gmra.mxu0 %v773_v44  ;;  %v1767_v17 = vld [vmem:[#allocation11 + $0x58] sm:$0xff]  ;;  %v1781_v22 = vld [vmem:[#allocation11 + $0xc8] sm:$0xff]  ;;  %v1780_v26 = vld [vmem:[#allocation11 + $0xc0] sm:$0xff] }
 0x172   :  { %3568 = vmatpush3.msra.mxu1 %v928_v42  ;;  %1334 = vmatprep.mubr.f32.mxu0 %v783_v49  ;;  %v1815_v23 = vld [vmem:[#allocation11 + $0x1d8] sm:$0xff]  ;;  %v1765_v24 = vld [vmem:[#allocation11 + $0x48] sm:$0xff]  ;;  %v1814_v27 = vld [vmem:[#allocation11 + $0x1d0] sm:$0xff] }
 0x173   :  { %3569 = vmatprep.subr.mxu1 %v4920_v0  ;;  %1235 = vmatmul.mubr.f32.gmra.mxu1 %v780_v46  ;;  %v1799_v25 = vld [vmem:[#allocation11 + $0x158] sm:$0xff]  ;;  %v1764_v28 = vld [vmem:[#allocation11 + $0x40] sm:$0xff]  ;;  %v1798_v29 = vld [vmem:[#allocation11 + $0x150] sm:$0xff] }
 0x174   :  { %3570 = vmatpush3.msra.mxu1 %v927_v45  ;;  %1239 = vmatprep.mubr.f32.mxu1 %v790_v47  ;;  %v1779_v30 = vld [vmem:[#allocation11 + $0xb8] sm:$0xff]  ;;  %v1813_v31 = vld [vmem:[#allocation11 + $0x1c8] sm:$0xff]  ;;  %v1778_v34 = vld [vmem:[#allocation11 + $0xb0] sm:$0xff] }
 0x175   :  { %3571 = vmatprep.subr.mxu1 %v4920_v0  ;;  %1335 = vmatmul.mubr.f32.gmra.mxu0 %v782_v50  ;;  %v1763_v32 = vld [vmem:[#allocation11 + $0x38] sm:$0xff]  ;;  %v1797_v33 = vld [vmem:[#allocation11 + $0x148] sm:$0xff]  ;;  %v1812_v35 = vld [vmem:[#allocation11 + $0x1c0] sm:$0xff] }
 0x176   :  { %3572 = vmatpush3.msra.mxu1 %v926_v48  ;;  %1339 = vmatprep.mubr.f32.mxu0 %v792_v53  ;;  %v1762_v36 = vld [vmem:[#allocation11 + $0x30] sm:$0xff]  ;;  %v1796_v37 = vld [vmem:[#allocation11 + $0x140] sm:$0xff]  ;;  %v1777_v38 = vld [vmem:[#allocation11 + $0xa8] sm:$0xff] }
 0x177   :  { %3573 = vmatprep.subr.mxu1 %v4920_v0  ;;  %1240 = vmatmul.mubr.f32.gmra.mxu1 %v789_v52  ;;  %v1811_v39 = vld [vmem:[#allocation11 + $0x1b8] sm:$0xff]  ;;  %v1761_v40 = vld [vmem:[#allocation11 + $0x28] sm:$0xff]  ;;  %v1776_v42 = vld [vmem:[#allocation11 + $0xa0] sm:$0xff] }
 0x178   :  { %3574 = vmatpush3.msra.mxu1 %v925_v51  ;;  %3581 = vmatprep.mubr.msk.f32.mxu1 %vm3721_vm0, %v4920_v0  ;;  %v1795_v41 = vld [vmem:[#allocation11 + $0x138] sm:$0xff]  ;;  %v1810_v43 = vld [vmem:[#allocation11 + $0x1b0] sm:$0xff]  ;;  %v1760_v44 = vld [vmem:[#allocation11 + $0x20] sm:$0xff] }
 0x179   :  { %3575 = vmatprep.subr.mxu1 %v4920_v0  ;;  %1340 = vmatmul.mubr.f32.gmra.mxu0 %v791_v55  ;;  %v1794_v45 = vld [vmem:[#allocation11 + $0x130] sm:$0xff]  ;;  %v1775_v46 = vld [vmem:[#allocation11 + $0x98] sm:$0xff]  ;;  %v1809_v47 = vld [vmem:[#allocation11 + $0x1a8] sm:$0xff] }
 0x17a   :  { %3576 = vmatpush3.msra.mxu1 %v924_v54  ;;  %3319 = vmatprep.subr.mxu0 %v1787_v3  ;;  %v1759_v48 = vld [vmem:[#allocation11 + $0x18] sm:$0xff]  ;;  %v1793_v49 = vld [vmem:[#allocation11 + $0x128] sm:$0xff]  ;;  %v1774_v50 = vld [vmem:[#allocation11 + $0x90] sm:$0xff] }
 0x17b   :  { %3577 = vmatprep.subr.mxu1 %v4920_v0  ;;  %3320 = vmatpush3.msra.mxu0 %v1771_v4  ;;  %v1808_v51 = vld [vmem:[#allocation11 + $0x1a0] sm:$0xff]  ;;  %v1758_v52 = vld [vmem:[#allocation11 + $0x10] sm:$0xff]  ;;  %v1773_v54 = vld [vmem:[#allocation11 + $0x88] sm:$0xff] }
 0x17c   :  { %3578 = vmatpush3.msra.mxu1 %v923_v56  ;;  %3321 = vmatprep.subr.mxu0 %v1786_v5  ;;  %v1792_v53 = vld [vmem:[#allocation11 + $0x120] sm:$0xff]  ;;  %v1807_v55 = vld [vmem:[#allocation11 + $0x198] sm:$0xff]  ;;  %v1757_v56 = vld [vmem:[#allocation11 + $0x8] sm:$0xff] }
 0x17d   :  { %3579 = vmatprep.subr.mxu1 %v4920_v0  ;;  %3322 = vmatpush3.msra.mxu0 %v1770_v6  ;;  %v1804_v3 = vld [vmem:[#allocation11 + $0x180] sm:$0xff]  ;;  %v1883_v5 = vld [vmem:[#allocation11 + $0x3f8] sm:$0xff] }
 0x17e   :  { %3580 = vmatpush3.msra.mxu1 %v922_v57  ;;  %3323 = vmatprep.subr.mxu0 %v1785_v8  ;;  %v1791_v57 = vld [vmem:[#allocation11 + $0x118] sm:$0xff]  ;;  %v1788_v4 = vld [vmem:[#allocation11 + $0x100] sm:$0xff] }
 0x17f   :  { %3582 = vmatmul.mubr.f32.vlgmr.msra.gmra.mxu1 %v739_v58  ;;  %3360 = vmatprep.subr.mxu1 %v1819_v7  ;;  %v1772_v58 = vld [vmem:[#allocation11 + $0x80] sm:$0xff] }
 0x180   :  { %3584 = vmatprep.mubr.msk.f32.mxu1 %vm3721_vm0, %v4920_v0  ;;  %3324 = vmatpush3.msra.mxu0 %v1769_v9 }
 0x181   :  { %3361 = vmatpush3.msra.mxu1 %v1803_v10  ;;  %3325 = vmatprep.subr.mxu0 %v1784_v11 }
 0x182   :  { %3362 = vmatprep.subr.mxu1 %v1818_v12  ;;  %3326 = vmatpush3.msra.mxu0 %v1768_v13 }
 0x183   :  { %3585 = vmatmul.mubr.f32.gmra.mxu1 %v748_v59  ;;  %3327 = vmatprep.subr.mxu0 %v1783_v15  ;;  %v1806_v59 = vld [vmem:[#allocation11 + $0x190] sm:$0xff] }
 0x184   :  { %3587 = vmatprep.mubr.msk.f32.mxu1 %vm3721_vm0, %v4920_v0  ;;  %3363 = vmatpush3.msra.mxu1 %v1802_v14 }
 0x185   :  { %3364 = vmatprep.subr.mxu1 %v1817_v16  ;;  %3328 = vmatpush3.msra.mxu0 %v1767_v17 }
 0x186   :  { %3365 = vmatpush3.msra.mxu1 %v1801_v21  ;;  %3329 = vmatprep.subr.mxu0 %v1782_v1 }
 0x187   :  { %3588 = vmatmul.mubr.f32.gmra.mxu1 %v757_v60  ;;  %3366 = vmatprep.subr.mxu1 %v1816_v18  ;;  %v1756_v60 = vld [vmem:[#allocation11] sm:$0xff] }
 0x188   :  { %3590 = vmatprep.mubr.msk.f32.mxu1 %vm3721_vm0, %v4920_v0  ;;  %3330 = vmatpush3.msra.mxu0 %v1766_v19 }
 0x189   :  { %3367 = vmatpush3.msra.mxu1 %v1800_v20  ;;  %3331 = vmatprep.subr.mxu0 %v1781_v22 }
 0x18a   :  { %3368 = vmatprep.subr.mxu1 %v1815_v23  ;;  %3332 = vmatpush3.msra.mxu0 %v1765_v24 }
 0x18b   :  { %3591 = vmatmul.mubr.f32.gmra.mxu1 %v766_v61  ;;  %3333 = vmatprep.subr.mxu0 %v1780_v26  ;;  %v1790_v61 = vld [vmem:[#allocation11 + $0x110] sm:$0xff] }
 0x18c   :  { %3593 = vmatprep.mubr.msk.f32.mxu1 %vm3721_vm0, %v4920_v0  ;;  %3369 = vmatpush3.msra.mxu1 %v1799_v25 }
 0x18d   :  { %3370 = vmatprep.subr.mxu1 %v1814_v27  ;;  %3334 = vmatpush3.msra.mxu0 %v1764_v28 }
 0x18e   :  { %3371 = vmatpush3.msra.mxu1 %v1798_v29  ;;  %3335 = vmatprep.subr.mxu0 %v1779_v30 }
 0x18f   :  { %3594 = vmatmul.mubr.f32.gmra.mxu1 %v775_v62  ;;  %3372 = vmatprep.subr.mxu1 %v1813_v31  ;;  %v1805_v62 = vld [vmem:[#allocation11 + $0x188] sm:$0xff] }
 0x190   :  { %3596 = vmatprep.mubr.msk.f32.mxu1 %vm3721_vm0, %v4920_v0  ;;  %3336 = vmatpush3.msra.mxu0 %v1763_v32 }
 0x191   :  { %3373 = vmatpush3.msra.mxu1 %v1797_v33  ;;  %3337 = vmatprep.subr.mxu0 %v1778_v34 }
 0x192   :  { %3374 = vmatprep.subr.mxu1 %v1812_v35  ;;  %3338 = vmatpush3.msra.mxu0 %v1762_v36 }
 0x193   :  { %3597 = vmatmul.mubr.f32.gmra.mxu1 %v784_v63  ;;  %3339 = vmatprep.subr.mxu0 %v1777_v38  ;;  %v1851_v63 = vld [vmem:[#allocation11 + $0x2f8] sm:$0xff] }
 0x194   :  { %3599 = vmatprep.mubr.msk.f32.mxu1 %vm3721_vm0, %v4920_v0  ;;  %3375 = vmatpush3.msra.mxu1 %v1796_v37 }
 0x195   :  { %3376 = vmatprep.subr.mxu1 %v1811_v39  ;;  %3340 = vmatpush3.msra.mxu0 %v1761_v40 }
 0x196   :  { %3377 = vmatpush3.msra.mxu1 %v1795_v41  ;;  %3341 = vmatprep.subr.mxu0 %v1776_v42 }
 0x197   :  { %3600 = vmatmul.mubr.f32.gmra.mxu1 %v793_v2  ;;  %3378 = vmatprep.subr.mxu1 %v1810_v43  ;;  %v1789_v2 = vld [vmem:[#allocation11 + $0x108] sm:$0xff] }
 0x198   :  { %3342 = vmatpush3.msra.mxu0 %v1760_v44  ;;  %3379 = vmatpush3.msra.mxu1 %v1794_v45 }
 0x199   :  { %3343 = vmatprep.subr.mxu0 %v1775_v46  ;;  %3380 = vmatprep.subr.mxu1 %v1809_v47 }
 0x19a   :  { %3344 = vmatpush3.msra.mxu0 %v1759_v48  ;;  %3381 = vmatpush3.msra.mxu1 %v1793_v49 }
 0x19b   :  { %3345 = vmatprep.subr.mxu0 %v1774_v50  ;;  %3382 = vmatprep.subr.mxu1 %v1808_v51 }
 0x19c   :  { %3346 = vmatpush3.msra.mxu0 %v1758_v52  ;;  %3383 = vmatpush3.msra.mxu1 %v1792_v53  ;;  %v3982_v52 = vld [vmem:[%s4914_s4] ss:$0 sm:$0xff] }
 0x19d   :  { %3347 = vmatprep.subr.mxu0 %v1773_v54  ;;  %3384 = vmatprep.subr.mxu1 %v1807_v55 }
 0x19e   :  { %3348 = vmatpush3.msra.mxu0 %v1757_v56  ;;  %3385 = vmatpush3.msra.mxu1 %v1791_v57 }
 0x19f   :  { %3349 = vmatprep.subr.mxu0 %v1772_v58  ;;  %3386 = vmatprep.subr.mxu1 %v1806_v59 }
 0x1a0   :  { %3350 = vmatpush3.msra.mxu0 %v1756_v60  ;;  %3387 = vmatpush3.msra.mxu1 %v1790_v61 }
 0x1a1   :  { %3388 = vmatprep.subr.mxu1 %v1805_v62  ;;  %3401 = vmatprep.subr.mxu0 %v1851_v63 }
 0x1a2   :  { %3389 = vmatpush3.msra.mxu1 %v1789_v2 }
 0x1a3   :  { %3390 = vmatprep.subr.mxu1 %v1804_v3 }
 0x1a4   :  { %3391 = vmatpush3.msra.mxu1 %v1788_v4 }
 0x1a5   :  { %3442 = vmatprep.subr.mxu1 %v1883_v5 }
 0x1d6   :  { %v3116_v6 = vpop.f32.mrf.mxu1 }
 0x1d8   :  { %v3117_v8 = vpop.f32.mrf.mxu1 }
 0x1d9   :  { %v3118_v51 = vadd.f32 %v3117_v8, %v3116_v6 }
 0x1db   :  { %v1012_v56 = vadd.f32 %v3118_v51, %v3982_v52 }
 0x1de   :  { %v3169_v7 = vpop.f32.mrf.mxu0 }
 0x1e0   :  { %v3170_v9 = vpop.f32.mrf.mxu0  ;;  %v3119_v10 = vpop.f32.mrf.mxu1 }
 0x1e1   :  { %v3171_v54 = vadd.f32 %v3170_v9, %v3169_v7 }
 0x1e2   :  { %v3120_v12 = vpop.f32.mrf.mxu1 }
 0x1e3   :  { %v3172_v11 = vpop.f32.mrf.mxu0  ;;  %v3121_v57 = vadd.f32 %v3120_v12, %v3119_v10  ;;  %v1112_v60 = vadd.f32 %v3171_v54, %v1012_v56 }
 0x1e5   :  { %v3173_v13 = vpop.f32.mrf.mxu0  ;;  %v3122_v14 = vpop.f32.mrf.mxu1  ;;  %v1017_v3 = vadd.f32 %v3121_v57, %v3982_v52 }
 0x1e6   :  { %v3174_v61 = vadd.f32 %v3173_v13, %v3172_v11 }
 0x1e7   :  { %v3175_v15 = vpop.f32.mrf.mxu0  ;;  %v3123_v16 = vpop.f32.mrf.mxu1 }
 0x1e8   :  { %v3124_v63 = vadd.f32 %v3123_v16, %v3122_v14  ;;  %v1117_v7 = vadd.f32 %v3174_v61, %v1017_v3 }
 0x1e9   :  { %v3176_v17 = vpop.f32.mrf.mxu0 }
 0x1ea   :  { %v3177_v6 = vadd.f32 %v3176_v17, %v3175_v15  ;;  %v1022_v10 = vadd.f32 %v3124_v63, %v3982_v52 }
 0x1ec   :  { %v1122_v14 = vadd.f32 %v3177_v6, %v1022_v10 }
 0x201   :  { %v3125_v21 = vpop.f32.mrf.mxu1 }
 0x203   :  { %v3126_v18 = vpop.f32.mrf.mxu1 }
 0x20a   :  { %v3953_v20 = vpop.f32.mrf.mxu1 }
 0x20c   :  { %v3951_v1 = vpop.f32.mrf.mxu0  ;;  %v3957_v23 = vpop.f32.mrf.mxu1 }
 0x20d   :  { %v3130_v17 = vadd.f32 %v3957_v23, %v3953_v20 }
 0x20e   :  { %v3179_v19 = vpop.f32.mrf.mxu0 }
 0x210   :  { %v3955_v22 = vpop.f32.mrf.mxu0 }
 0x212   :  { %v3959_v24 = vpop.f32.mrf.mxu0 }
 0x217   :  { %v3961_v25 = vpop.f32.mrf.mxu1  ;;  %v3963_v26 = vpop.f32.mrf.mxu0 }
 0x219   :  { %v3965_v27 = vpop.f32.mrf.mxu1  ;;  %v3967_v28 = vpop.f32.mrf.mxu0 }
 0x21b   :  { %v3969_v29 = vpop.f32.mrf.mxu1 }
 0x21c   :  { %v3973_v31 = vpop.f32.mrf.mxu0 }
 0x21d   :  { %v3971_v30 = vpop.f32.mrf.mxu1 }
 0x21e   :  { %v3975_v33 = vpop.f32.mrf.mxu0 }
 0x21f   :  { %v3222_v32 = vpop.f32.mrf.mxu1  ;;  %v3189_v6 = vadd.f32 %v3975_v33, %v3973_v31 }
 0x221   :  { %v3223_v34 = vpop.f32.mrf.mxu1  ;;  %v3275_v35 = vpop.f32.mrf.mxu0 }
 0x222   :  { %v3224_v58 = vadd.f32 %v3223_v34, %v3222_v32  ;;  %v3127_v34 = vadd.f32 %v3126_v18, %v3125_v21 }
 0x223   :  { %v3225_v36 = vpop.f32.mrf.mxu1  ;;  %v3276_v37 = vpop.f32.mrf.mxu0 }
 0x224   :  { %v3277_v62 = vadd.f32 %v3276_v37, %v3275_v35  ;;  %v1212_v4 = vadd.f32 %v3224_v58, %v1112_v60  ;;  %v3180_v35 = vadd.f32 %v3179_v19, %v3951_v1 }
 0x225   :  { %v3226_v38 = vpop.f32.mrf.mxu1  ;;  %v3278_v39 = vpop.f32.mrf.mxu0 }
 0x226   :  { %v3227_v5 = vadd.f32 %v3226_v38, %v3225_v36  ;;  %v1312_v0 = vadd.f32 %v3277_v62, %v1212_v4 }
 0x227   :  { %v3228_v40 = vpop.f32.mrf.mxu1  ;;  %v3279_v41 = vpop.f32.mrf.mxu0 }
 0x228   :  { %v3280_v9 = vadd.f32 %v3279_v41, %v3278_v39  ;;  %v1217_v51 = vadd.f32 %v3227_v5, %v1117_v7  ;;  %v1027_v41 = vadd.f32 %v3127_v34, %v3982_v52 }
 0x229   :  { %v3229_v42 = vpop.f32.mrf.mxu1  ;;  %v3281_v44 = vpop.f32.mrf.mxu0 }
 0x22a   :  { %v3230_v11 = vadd.f32 %v3229_v42, %v3228_v40  ;;  %v1317_v15 = vadd.f32 %v3280_v9, %v1217_v51  ;;  %v1127_v40 = vadd.f32 %v3180_v35, %v1027_v41 }
 0x22b   :  { %v3231_v43 = vpop.f32.mrf.mxu1  ;;  %v3282_v46 = vpop.f32.mrf.mxu0 }
 0x22c   :  { %v3283_v37 = vadd.f32 %v3282_v46, %v3281_v44  ;;  %v1222_v54 = vadd.f32 %v3230_v11, %v1122_v14  ;;  %v1032_v44 = vadd.f32 %v3130_v17, %v3982_v52 }
 0x22d   :  { %v3232_v45 = vpop.f32.mrf.mxu1  ;;  %v3284_v49 = vpop.f32.mrf.mxu0 }
 0x22e   :  { %v3233_v56 = vadd.f32 %v3232_v45, %v3231_v43  ;;  %v1322_v42 = vadd.f32 %v3283_v37, %v1222_v54  ;;  %v3133_v45 = vadd.f32 %v3965_v27, %v3961_v25 }
 0x22f   :  { %v3234_v47 = vpop.f32.mrf.mxu1  ;;  %v3285_v55 = vpop.f32.mrf.mxu0 }
 0x230   :  { %v3286_v1 = vadd.f32 %v3285_v55, %v3284_v49  ;;  %v1227_v23 = vadd.f32 %v3233_v56, %v1127_v40  ;;  %v3136_v49 = vadd.f32 %v3971_v30, %v3969_v29  ;;  %v1037_v30 = vadd.f32 %v3133_v45, %v3982_v52 }
 0x231   :  { %v3235_v48 = vpop.f32.mrf.mxu1  ;;  %v3287_v2 = vpop.f32.mrf.mxu0 }
 0x232   :  { %v3236_v57 = vadd.f32 %v3235_v48, %v3234_v47  ;;  %v3186_v47 = vadd.f32 %v3967_v28, %v3963_v26  ;;  %v1042_v9 = vadd.f32 %v3136_v49, %v3982_v52 }
 0x233   :  { %v3977_v50 = vpop.f32.mrf.mxu1  ;;  %v3288_v12 = vpop.f32.mrf.mxu0 }
 0x234   :  { %v3289_v61 = vadd.f32 %v3288_v12, %v3287_v2  ;;  %v1137_v11 = vadd.f32 %v3186_v47, %v1037_v30 }
 0x235   :  { %v3984_v53 = vpop.f32.mrf.mxu1  ;;  %v3290_v38 = vpop.f32.mrf.mxu0 }
 0x236   :  { %v3239_v7 = vadd.f32 %v3984_v53, %v3977_v50 }
 0x237   :  { %v3987_v59 = vpop.f32.mrf.mxu1  ;;  %v3291_v46 = vpop.f32.mrf.mxu0 }
 0x238   :  { %v3292_v33 = vadd.f32 %v3291_v46, %v3290_v38  ;;  %v1237_v17 = vadd.f32 %v3239_v7, %v1137_v11  ;;  %v1835_v11 = vld [vmem:[#allocation11 + $0x278] sm:$0xff] }
 0x239   :  { %v3990_v8 = vpop.f32.mrf.mxu1  ;;  %v3293_v55 = vpop.f32.mrf.mxu0 }
 0x23a   :  { %v3242_v31 = vadd.f32 %v3990_v8, %v3987_v59  ;;  %v1337_v46 = vadd.f32 %v3292_v33, %v1237_v17 }
 0x23b   :  { %v3294_v10 = vpop.f32.mrf.mxu0 }
 0x23f   :  { %v1411_v32 = vpop.f32.mrf.mxu1 }
 0x240   :  { %v1412_v13 = vadd.f32 %v1411_v32, %v1312_v0  ;;  %v3183_v0 = vadd.f32 %v3959_v24, %v3955_v22  ;;  %v1327_v24 = vadd.f32 %v3286_v1, %v1227_v23 }
 0x241   :  { %v3583_v16 = vpop.f32.mrf.mxu1 }
 0x242   :  { %v1445_v36 = vmax.f32 %v1412_v13, 0.0  ;;  %v1132_v60 = vadd.f32 %v3183_v0, %v1032_v44  ;;  %v1142_v16 = vadd.f32 %v3189_v6, %v1042_v9 }
 0x243   :  { %v1416_v39 = vpop.f32.mrf.mxu1 }
 0x244   :  { %1452 = vst [vmem:[#allocation4] sm:$0xff] %v1445_v36  ;;  %v1417_v21 = vadd.f32 %v1416_v39, %v1317_v15  ;;  %v1232_v48 = vadd.f32 %v3236_v57, %v1132_v60  ;;  %v3295_v39 = vadd.f32 %v3294_v10, %v3293_v55  ;;  %v1242_v40 = vadd.f32 %v3242_v31, %v1142_v16 }
 0x245   :  { %v3586_v18 = vpop.f32.mrf.mxu1 }
 0x246   :  { %v1446_v19 = vmax.f32 %v1417_v21, 0.0  ;;  %v1332_v28 = vadd.f32 %v3289_v61, %v1232_v48  ;;  %v1342_v49 = vadd.f32 %v3295_v39, %v1242_v40 }
 0x247   :  { %v1421_v20 = vpop.f32.mrf.mxu1 }
 0x248   :  { %1453 = vst [vmem:[#allocation4 + $0x8] sm:$0xff] %v1446_v19  ;;  %v1422_v58 = vadd.f32 %v1421_v20, %v1322_v42 }
 0x249   :  { %v3589_v43 = vpop.f32.mrf.mxu1 }
 0x24a   :  { %v1447_v22 = vmax.f32 %v1422_v58, 0.0 }
 0x24b   :  { %v1468_v62 = vld [vmem:[#allocation4] sm:$0x7]  ;;  %v1486_v3 = vld [vmem:[#allocation4 + $0x5] sm:$0x7]  ;;  %v1426_v4 = vpop.f32.mrf.mxu1 }
 0x24c   :  { %v1472_v63 = vld [vmem:[#allocation4 + $0x2] sm:$0x7]  ;;  %1469 = vst [vmem:[#allocation5 + $0xa8] sm:$0x7] %v1468_v62  ;;  %v1488_v5 = vrot.slane %v1486_v3, 5  ;;  %1454 = vst [vmem:[#allocation4 + $0x10] sm:$0xff] %v1447_v22  ;;  %v1427_v25 = vadd.f32 %v1426_v4, %v1327_v24 }
 0x24d   :  { %1473 = vst [vmem:[#allocation5 + $0x98] sm:$0x7] %v1472_v63  ;;  %v1470_v27 = vld [vmem:[#allocation4 + $0x1] sm:$0x7]  ;;  %v1474_v2 = vld [vmem:[#allocation4 + $0x5] sm:$0x7]  ;;  %v3592_v29 = vpop.f32.mrf.mxu1 }
 0x24e   :  { %1471 = vst [vmem:[#allocation5 + $0x70] sm:$0x7] %v1470_v27  ;;  %1475 = vst [vmem:[#allocation5] sm:$0x7] %v1474_v2  ;;  %v1448_v26 = vmax.f32 %v1427_v25, 0.0 }
 0x24f   :  { %1490 = vst [vmem:[#allocation5 + $0xa8] sm:$0x38] %v1488_v5  ;;  %v1476_v12 = vld [vmem:[#allocation4 + $0x6] sm:$0x7]  ;;  %v1480_v32 = vld [vmem:[#allocation4 + $0xa] sm:$0x7]  ;;  %v1431_v51 = vpop.f32.mrf.mxu1 }
 0x250   :  { %v1484_v34 = vld [vmem:[#allocation4 + $0xc] sm:$0x7]  ;;  %1477 = vst [vmem:[#allocation5 + $0x38] sm:$0x7] %v1476_v12  ;;  %1481 = vst [vmem:[#allocation5 + $0x90] sm:$0x7] %v1480_v32  ;;  %v1432_v14 = vadd.f32 %v1431_v51, %v1332_v28 }
 0x251   :  { %1485 = vst [vmem:[#allocation5 + $0x78] sm:$0x7] %v1484_v34  ;;  %v1491_v13 = vld [vmem:[#allocation4 + $0x6] sm:$0x7]  ;;  %v1501_v53 = vld [vmem:[#allocation4 + $0xa] sm:$0x7]  ;;  %v3595_v15 = vpop.f32.mrf.mxu1 }
 0x252   :  { %v1496_v50 = vld [vmem:[#allocation4 + $0x7] sm:$0x7]  ;;  %1455 = vst [vmem:[#allocation4 + $0x18] sm:$0xff] %v1448_v26  ;;  %v1493_v52 = vrot.slane %v1491_v13, 5  ;;  %v1503_v37 = vrot.slane %v1501_v53, 5  ;;  %v1449_v8 = vmax.f32 %v1432_v14, 0.0 }
 0x253   :  { %v1498_v35 = vrot.slane %v1496_v50, 5  ;;  %v1506_v36 = vld [vmem:[#allocation4 + $0xb] sm:$0x7]  ;;  %v1436_v18 = vpop.f32.mrf.mxu1  ;;  %v1516_v42 = vld [vmem:[#allocation4 + $0xf] sm:$0x7]  ;;  %v1850_v14 = vld [vmem:[#allocation11 + $0x2f0] sm:$0xff] }
 0x254   :  { %v1508_v41 = vrot.slane %v1506_v36, 5  ;;  %v1511_v54 = vld [vmem:[#allocation4 + $0xc] sm:$0x7]  ;;  %1495 = vst [vmem:[#allocation5 + $0x70] sm:$0x38] %v1493_v52  ;;  %1456 = vst [vmem:[#allocation4 + $0x20] sm:$0xff] %v1449_v8  ;;  %v1437_v24 = vadd.f32 %v1436_v18, %v1337_v46 }
 0x255   :  { %v1531_v59 = vld [vmem:[#allocation4 + $0xa] sm:$0x7]  ;;  %1500 = vst [vmem:[#allocation5 + $0x98] sm:$0x38] %v1498_v35  ;;  %v1513_v38 = vrot.slane %v1511_v54, 5  ;;  %v1518_v20 = vrot.slane %v1516_v42, 5  ;;  %v3598_v60 = vpop.f32.mrf.mxu1 }
 0x256   :  { %v1533_v56 = vrot.slane %v1531_v59, 2  ;;  %v1537_v21 = vld [vmem:[#allocation4 + $0xb] sm:$0x7]  ;;  %1505 = vst [vmem:[#allocation5] sm:$0x38] %v1503_v37  ;;  %v1450_v9 = vmax.f32 %v1437_v24, 0.0 }
 0x257   :  { %v1543_v0 = vld [vmem:[#allocation4 + $0xc] sm:$0x7]  ;;  %1510 = vst [vmem:[#allocation5 + $0x38] sm:$0x38] %v1508_v41  ;;  %v1539_v1 = vrot.slane %v1537_v21, 2  ;;  %v1441_v4 = vpop.f32.mrf.mxu1  ;;  %v1834_v36 = vld [vmem:[#allocation11 + $0x270] sm:$0xff] }
 0x258   :  { %v1545_v19 = vrot.slane %v1543_v0, 2  ;;  %v1521_v44 = vld [vmem:[#allocation4 + $0x10] sm:$0x7]  ;;  %1535 = vst [vmem:[#allocation5 + $0x10] ss:$156 sps:$4 sm:$0xc1] %v1533_v56   ;;  %v1442_v27 = vadd.f32 %v1441_v4, %v1342_v49 }
 0x259   :  { %1515 = vst [vmem:[#allocation5 + $0x40] sm:$0x38] %v1513_v38  ;;  %v1523_v23 = vrot.slane %v1521_v44, 5  ;;  %v1526_v57 = vld [vmem:[#allocation4 + $0x11] sm:$0x7]  ;;  %v3601_v7 = vpop.f32.mrf.mxu1  ;;  %1457 = vst [vmem:[#allocation4 + $0x28] sm:$0xff] %v1450_v9 }
 0x25a   :  { %v1549_v58 = vld [vmem:[#allocation4 + $0xf] sm:$0x7]  ;;  %1547 = vst [vmem:[#allocation5 + $0x50] ss:$76 sps:$4 sm:$0xc1] %v1545_v19   ;;  %v1528_v43 = vrot.slane %v1526_v57, 5 }
 0x25b   :  { %1541 = vst [vmem:[#allocation5 + $0x80] ss:$-12 sps:$4 sm:$0xc1] %v1539_v1   ;;  %v1551_v45 = vrot.slane %v1549_v58, 2  ;;  %v1555_v61 = vld [vmem:[#allocation4 + $0x10] sm:$0x7] }
 0x25c   :  { %v1561_v22 = vld [vmem:[#allocation4 + $0x11] sm:$0x7]  ;;  %1520 = vst [vmem:[#allocation5 + $0x90] sm:$0x38] %v1518_v20  ;;  %v1557_v55 = vrot.slane %v1555_v61, 2  ;;  %v1451_v10 = vmax.f32 %v1442_v27, 0.0 }
 0x25d   :  { %v1563_v62 = vrot.slane %v1561_v22, 2  ;;  %v1567_v63 = vld [vmem:[#allocation4 + $0x14] sm:$0x7]  ;;  %1525 = vst [vmem:[#allocation5 + $0x58] sm:$0x38] %v1523_v23  ;;  %v1849_v54 = vld [vmem:[#allocation11 + $0x2e8] sm:$0xff] }
 0x25e   :  { %v1573_v3 = vld [vmem:[#allocation4 + $0x15] sm:$0x7]  ;;  %1530 = vst [vmem:[#allocation5 + $0x78] sm:$0x38] %v1528_v43  ;;  %v1569_v47 = vrot.slane %v1567_v63, 2  ;;  %1458 = vst [vmem:[#allocation4 + $0x30] sm:$0xff] %v1451_v10 }
 0x25f   :  { %v1575_v48 = vrot.slane %v1573_v3, 2  ;;  %1553 = vst [vmem:[#allocation5 + $0xb8] ss:$-180 sps:$4 sm:$0xc1] %v1551_v45   ;;  %v1579_v5 = vld [vmem:[#allocation4 + $0x16] sm:$0x7] }
 0x260   :  { %v1585_v25 = vld [vmem:[#allocation4 + $0x19] sm:$0x7]  ;;  %1559 = vst [vmem:[#allocation5 + $0xc0] ss:$-132 sps:$4 sm:$0xc1] %v1557_v55   ;;  %v1581_v2 = vrot.slane %v1579_v5, 2 }
 0x261   :  { %1565 = vst [vmem:[#allocation5 + $0x68] ss:$-36 sps:$4 sm:$0xc1] %v1563_v62   ;;  %v1587_v6 = vrot.slane %v1585_v25, 7  ;;  %v1590_v29 = vld [vmem:[#allocation4 + $0x1a] sm:$0x7] }
 0x262   :  { %v1595_v30 = vld [vmem:[#allocation4 + $0x1b] sm:$0x7]  ;;  %1571 = vst [vmem:[#allocation5 + $0x30] ss:$100 sps:$4 sm:$0xc1] %v1569_v47   ;;  %v1592_v26 = vrot.slane %v1590_v29, 7 }
 0x263   :  { %1577 = vst [vmem:[#allocation5 + $0x60] ss:$-4 sps:$4 sm:$0xc1] %v1575_v48   ;;  %v1597_v28 = vrot.slane %v1595_v30, 7  ;;  %v1478_v12 = vld [vmem:[#allocation4 + $0x7] sm:$0x7] }
 0x264   :  { %1583 = vst [vmem:[#allocation5 + $0x48] ss:$52 sps:$4 sm:$0xc1] %v1581_v2   ;;  %1589 = vst [vmem:[#allocation5 + $0x10] sm:$0xe] %v1587_v6  ;;  %v1729_v53 = vld [vmem:[#allocation5 + $0xa8] sm:$0xff] }
 0x265   :  { %v1600_v32 = vld [vmem:[#allocation4 + $0x1e] sm:$0x7]  ;;  %1479 = vst [vmem:[#allocation5 + $0x40] sm:$0x7] %v1478_v12  ;;  %1594 = vst [vmem:[#allocation5 + $0x80] sm:$0xe] %v1592_v26 }
 0x266   :  { %v1605_v34 = vld [vmem:[#allocation4 + $0x1f] sm:$0x7]  ;;  %1599 = vst [vmem:[#allocation5 + $0x50] sm:$0xe] %v1597_v28  ;;  %v1602_v31 = vrot.slane %v1600_v32, 7  ;;  %v1730_v37 = vld [vmem:[#allocation5 + $0x70] sm:$0xff] }
 0x267   :  { %v1610_v51 = vld [vmem:[#allocation4 + $0x20] sm:$0x7]  ;;  %v1607_v33 = vrot.slane %v1605_v34, 7  ;;  %v1615_v50 = vld [vmem:[#allocation4 + $0x23] sm:$0x7]  ;;  %1971 = vmatprep.mubr.f32.mxu0 %v1730_v37  ;;  %v1833_v21 = vld [vmem:[#allocation11 + $0x268] sm:$0xff] }
 0x268   :  { %v1612_v13 = vrot.slane %v1610_v51, 7  ;;  %v1617_v16 = vrot.slane %v1615_v50, 7  ;;  %v1620_v52 = vld [vmem:[#allocation4 + $0x24] sm:$0x7]  ;;  %v1630_v39 = vld [vmem:[#allocation4 + $0x1e] sm:$0x7]  ;;  %1972 = vmatmul.mubr.f32.vlgmr.msra.gmra.mxu0 %v1729_v53 }
 0x269   :  { %v1625_v35 = vld [vmem:[#allocation4 + $0x25] sm:$0x7]  ;;  %v1622_v15 = vrot.slane %v1620_v52, 7  ;;  %v1635_v41 = vld [vmem:[#allocation4 + $0x1f] sm:$0x7]  ;;  %v1632_v59 = vrot.slane %v1630_v39, 4  ;;  %3402 = vmatpush3.msra.mxu0 %v1835_v11 }
 0x26a   :  { %v1627_v17 = vrot.slane %v1625_v35, 7  ;;  %1604 = vst [vmem:[#allocation5 + $0xb8] sm:$0xe] %v1602_v31  ;;  %1609 = vst [vmem:[#allocation5 + $0xc0] sm:$0xe] %v1607_v33  ;;  %v1637_v8 = vrot.slane %v1635_v41, 4  ;;  %3403 = vmatprep.subr.mxu0 %v1850_v14 }
 0x26b   :  { %1614 = vst [vmem:[#allocation5 + $0x68] sm:$0xe] %v1612_v13  ;;  %v1640_v38 = vld [vmem:[#allocation4 + $0x20] sm:$0x7]  ;;  %v1645_v56 = vld [vmem:[#allocation4 + $0x23] sm:$0x7]  ;;  %3404 = vmatpush3.msra.mxu0 %v1834_v36 }
 0x26c   :  { %1619 = vst [vmem:[#allocation5 + $0x30] sm:$0xe] %v1617_v16  ;;  %v1642_v0 = vrot.slane %v1640_v38, 4  ;;  %v1647_v18 = vrot.slane %v1645_v56, 4  ;;  %v1650_v40 = vld [vmem:[#allocation4 + $0x24] sm:$0x7]  ;;  %3405 = vmatprep.subr.mxu0 %v1849_v54 }
 0x26d   :  { %v1655_v1 = vld [vmem:[#allocation4 + $0x25] sm:$0x7]  ;;  %1624 = vst [vmem:[#allocation5 + $0x60] sm:$0xe] %v1622_v15  ;;  %1629 = vst [vmem:[#allocation5 + $0x48] sm:$0xe] %v1627_v17  ;;  %3406 = vmatpush3.msra.mxu0 %v1833_v21 }
 0x26e   :  { %v1867_v19 = vld [vmem:[#allocation11 + $0x378] sm:$0xff]  ;;  %v1848_v42 = vld [vmem:[#allocation11 + $0x2e0] sm:$0xff]  ;;  %v1652_v44 = vrot.slane %v1650_v40, 4  ;;  %v1657_v46 = vrot.slane %v1655_v1, 4  ;;  %v1675_v20 = vld [vmem:[#allocation4 + $0x23] sm:$0x7] }
 0x26f   :  { %v1681_v23 = vld [vmem:[#allocation4 + $0x24] sm:$0x7]  ;;  %1634 = vst [vmem:[#allocation5 + $0x10] sm:$0x70] %v1632_v59  ;;  %1639 = vst [vmem:[#allocation5 + $0x80] sm:$0x70] %v1637_v8  ;;  %3407 = vmatprep.subr.mxu0 %v1848_v42 }
 0x270   :  { %v1882_v57 = vld [vmem:[#allocation11 + $0x3f0] sm:$0xff]  ;;  %v1832_v58 = vld [vmem:[#allocation11 + $0x260] sm:$0xff]  ;;  %v1677_v60 = vrot.slane %v1675_v20, 1  ;;  %v1683_v43 = vrot.slane %v1681_v23, 1  ;;  %1644 = vst [vmem:[#allocation5 + $0x50] sm:$0x70] %v1642_v0 }
 0x271   :  { %v1687_v45 = vld [vmem:[#allocation4 + $0x25] sm:$0x7]  ;;  %1649 = vst [vmem:[#allocation5 + $0xb8] sm:$0x70] %v1647_v18  ;;  %v1732_v61 = vld [vmem:[#allocation5] sm:$0xff]  ;;  %v1847_v24 = vld [vmem:[#allocation11 + $0x2d8] sm:$0xff]  ;;  %3408 = vmatpush3.msra.mxu0 %v1832_v58 }
 0x272   :  { %v1866_v22 = vld [vmem:[#allocation11 + $0x370] sm:$0xff]  ;;  %v1689_v49 = vrot.slane %v1687_v45, 1  ;;  %1654 = vst [vmem:[#allocation5 + $0xc0] sm:$0x70] %v1652_v44  ;;  %1659 = vst [vmem:[#allocation5 + $0x68] sm:$0x70] %v1657_v46  ;;  %2051 = vmatprep.mubr.f32.mxu1 %v1732_v61  ;;  %3409 = vmatprep.subr.mxu0 %v1847_v24 }
 0x273   :  { %v1660_v55 = vld [vmem:[#allocation4 + $0x28] sm:$0x7]  ;;  %v1731_v63 = vld [vmem:[#allocation5 + $0x98] sm:$0xff]  ;;  %v1881_v3 = vld [vmem:[#allocation11 + $0x3e8] sm:$0xff] }
 0x274   :  { %v1665_v62 = vld [vmem:[#allocation4 + $0x29] sm:$0x7]  ;;  %1679 = vst [vmem:[#allocation5 + $0x20] ss:$-12 sps:$4 sm:$0x83] %v1677_v60   ;;  %v1662_v47 = vrot.slane %v1660_v55, 4  ;;  %2052 = vmatmul.mubr.f32.vlgmr.msra.gmra.mxu1 %v1731_v63 }
 0x275   :  { %v1831_v4 = vld [vmem:[#allocation11 + $0x258] sm:$0xff]  ;;  %1685 = vst [vmem:[#allocation5 + $0x8] ss:$124 sps:$4 sm:$0x83] %v1683_v43   ;;  %v1667_v48 = vrot.slane %v1665_v62, 4  ;;  %v1865_v27 = vld [vmem:[#allocation11 + $0x368] sm:$0xff]  ;;  %3443 = vmatpush3.msra.mxu1 %v1867_v19 }
 0x276   :  { %v1670_v5 = vld [vmem:[#allocation4 + $0x2a] sm:$0x7]  ;;  %v1846_v2 = vld [vmem:[#allocation11 + $0x2d0] sm:$0xff]  ;;  %1691 = vst [vmem:[#allocation5 + $0x28] ss:$44 sps:$4 sm:$0x83] %v1689_v49   ;;  %3444 = vmatprep.subr.mxu1 %v1882_v57  ;;  %3410 = vmatpush3.msra.mxu0 %v1831_v4 }
 0x277   :  { %v1693_v25 = vld [vmem:[#allocation4 + $0x28] sm:$0x7]  ;;  %v1672_v6 = vrot.slane %v1670_v5, 4  ;;  %v1880_v26 = vld [vmem:[#allocation11 + $0x3e0] sm:$0xff]  ;;  %v1830_v28 = vld [vmem:[#allocation11 + $0x250] sm:$0xff]  ;;  %3445 = vmatpush3.msra.mxu1 %v1866_v22  ;;  %3411 = vmatprep.subr.mxu0 %v1846_v2 }
 0x278   :  { %v1695_v29 = vrot.slane %v1693_v25, 1  ;;  %v1699_v30 = vld [vmem:[#allocation4 + $0x29] sm:$0x7]  ;;  %v1711_v12 = vld [vmem:[#allocation4 + $0x2d] sm:$0x7]  ;;  %3446 = vmatprep.subr.mxu1 %v1881_v3  ;;  %v1864_v13 = vld [vmem:[#allocation11 + $0x360] sm:$0xff]  ;;  %3412 = vmatpush3.msra.mxu0 %v1830_v28 }
 0x279   :  { %v1705_v7 = vld [vmem:[#allocation4 + $0x2a] sm:$0x7]  ;;  %v1701_v9 = vrot.slane %v1699_v30, 1  ;;  %1664 = vst [vmem:[#allocation5 + $0x30] sm:$0x70] %v1662_v47  ;;  %v1713_v34 = vrot.slane %v1711_v12, 1  ;;  %3447 = vmatpush3.msra.mxu1 %v1865_v27 }
 0x27a   :  { %v1707_v10 = vrot.slane %v1705_v7, 1  ;;  %1669 = vst [vmem:[#allocation5 + $0x60] sm:$0x70] %v1667_v48  ;;  %v1717_v32 = vld [vmem:[#allocation4 + $0x2e] sm:$0x7]  ;;  %v1845_v50 = vld [vmem:[#allocation11 + $0x2c8] sm:$0xff]  ;;  %3448 = vmatprep.subr.mxu1 %v1880_v26 }
 0x27b   :  { %1674 = vst [vmem:[#allocation5 + $0x48] sm:$0x70] %v1672_v6  ;;  %1697 = vst [vmem:[#allocation5 + $0x18] ss:$164 sps:$4 sm:$0x83] %v1695_v29   ;;  %v1719_v51 = vrot.slane %v1717_v32, 1  ;;  %3449 = vmatpush3.msra.mxu1 %v1864_v13  ;;  %3413 = vmatprep.subr.mxu0 %v1845_v50 }
 0x27c   :  { %v1723_v11 = vld [vmem:[#allocation4 + $0x2f] sm:$0x7]  ;;  %v1482_v31 = vld [vmem:[#allocation4 + $0xb] sm:$0x7]  ;;  %v1739_v16 = vld [vmem:[#allocation5 + $0x80] sm:$0xff] }
 0x27d   :  { %1703 = vst [vmem:[#allocation5 + $0x88] ss:$60 sps:$4 sm:$0x83] %v1701_v9   ;;  %1709 = vst [vmem:[#allocation5 + $0xb0] ss:$-68 sps:$4 sm:$0x83] %v1707_v10   ;;  %1976 = vmatprep.mubr.f32.mxu0 %v1739_v16 }
 0x27e   :  { %v1725_v33 = vrot.slane %v1723_v11, 1  ;;  %1483 = vst [vmem:[#allocation5 + $0x58] sm:$0x7] %v1482_v31  ;;  %1715 = vst [vmem:[#allocation5 + $0xc8] ss:$-148 sps:$4 sm:$0x83] %v1713_v34  }
 0x27f   :  { %1721 = vst [vmem:[#allocation5 + $0xd0] ss:$-108 sps:$4 sm:$0x83] %v1719_v51   ;;  %v1879_v53 = vld [vmem:[#allocation11 + $0x3d8] sm:$0xff]  ;;  %v1829_v35 = vld [vmem:[#allocation11 + $0x248] sm:$0xff]  ;;  %v1844_v37 = vld [vmem:[#allocation11 + $0x2c0] sm:$0xff] }
 0x280   :  { %1727 = vst [vmem:[#allocation5 + $0xa0] ss:$-84 sps:$4 sm:$0x83] %v1725_v33   ;;  %v1863_v14 = vld [vmem:[#allocation11 + $0x358] sm:$0xff]  ;;  %3450 = vmatprep.subr.mxu1 %v1879_v53  ;;  %v1878_v36 = vld [vmem:[#allocation11 + $0x3d0] sm:$0xff]  ;;  %v1828_v17 = vld [vmem:[#allocation11 + $0x240] sm:$0xff]  ;;  %3414 = vmatpush3.msra.mxu0 %v1829_v35 }
 0x281   :  { %v1738_v52 = vld [vmem:[#allocation5 + $0x10] sm:$0xff]  ;;  %3451 = vmatpush3.msra.mxu1 %v1863_v14  ;;  %v1748_v15 = vld [vmem:[#allocation5 + $0x8] sm:$0xff]  ;;  %3415 = vmatprep.subr.mxu0 %v1844_v37  ;;  %v1877_v59 = vld [vmem:[#allocation11 + $0x3c8] sm:$0xff]  ;;  %v4922_v10 = vmov 0.0  }
 0x282   :  { %1977 = vmatmul.mubr.f32.gmra.mxu0 %v1738_v52  ;;  %v1862_v39 = vld [vmem:[#allocation11 + $0x350] sm:$0xff]  ;;  %v1741_v41 = vld [vmem:[#allocation5 + $0xb8] sm:$0xff]  ;;  %v1843_v54 = vld [vmem:[#allocation11 + $0x2b8] sm:$0xff]  ;;  %3452 = vmatprep.subr.mxu1 %v1878_v36 }
 0x283   :  { %1981 = vmatprep.mubr.f32.mxu0 %v1748_v15  ;;  %3416 = vmatpush3.msra.mxu0 %v1828_v17  ;;  %v1827_v8 = vld [vmem:[#allocation11 + $0x238] sm:$0xff]  ;;  %v1747_v38 = vld [vmem:[#allocation5 + $0x20] sm:$0xff]  ;;  %v1842_v0 = vld [vmem:[#allocation11 + $0x2b0] sm:$0xff] }
 0x284   :  { %3453 = vmatpush3.msra.mxu1 %v1862_v39  ;;  %2056 = vmatprep.mubr.f32.mxu1 %v1741_v41  ;;  %v1861_v56 = vld [vmem:[#allocation11 + $0x348] sm:$0xff]  ;;  %v1740_v21 = vld [vmem:[#allocation5 + $0x50] sm:$0xff]  ;;  %v1750_v18 = vld [vmem:[#allocation5 + $0x18] sm:$0xff] }
 0x285   :  { %3417 = vmatprep.subr.mxu0 %v1843_v54  ;;  %3454 = vmatprep.subr.mxu1 %v1877_v59  ;;  %v1876_v40 = vld [vmem:[#allocation11 + $0x3c0] sm:$0xff]  ;;  %v1826_v1 = vld [vmem:[#allocation11 + $0x230] sm:$0xff]  ;;  %v1734_v19 = vld [vmem:[#allocation5 + $0x40] sm:$0xff] }
 0x286   :  { %1982 = vmatmul.mubr.f32.gmra.mxu0 %v1747_v38  ;;  %2057 = vmatmul.mubr.f32.gmra.mxu1 %v1740_v21  ;;  %v1860_v42 = vld [vmem:[#allocation11 + $0x340] sm:$0xff]  ;;  %v1841_v44 = vld [vmem:[#allocation11 + $0x2a8] sm:$0xff]  ;;  %v1875_v46 = vld [vmem:[#allocation11 + $0x3b8] sm:$0xff] }
 0x287   :  { %3418 = vmatpush3.msra.mxu0 %v1827_v8  ;;  %3455 = vmatpush3.msra.mxu1 %v1861_v56  ;;  %v1825_v20 = vld [vmem:[#allocation11 + $0x228] sm:$0xff]  ;;  %v1859_v23 = vld [vmem:[#allocation11 + $0x338] sm:$0xff]  ;;  %v1749_v57 = vld [vmem:[#allocation5 + $0x28] sm:$0xff] }
 0x288   :  { %2061 = vmatprep.mubr.f32.mxu1 %v1750_v18  ;;  %3419 = vmatprep.subr.mxu0 %v1842_v0  ;;  %v1840_v58 = vld [vmem:[#allocation11 + $0x2a0] sm:$0xff]  ;;  %v1874_v60 = vld [vmem:[#allocation11 + $0x3b0] sm:$0xff]  ;;  %v1839_v61 = vld [vmem:[#allocation11 + $0x298] sm:$0xff] }
 0x289   :  { %2131 = vmatprep.mubr.f32.mxu0 %v1734_v19  ;;  %3456 = vmatprep.subr.mxu1 %v1876_v40  ;;  %v1824_v43 = vld [vmem:[#allocation11 + $0x220] sm:$0xff]  ;;  %v1858_v45 = vld [vmem:[#allocation11 + $0x330] sm:$0xff]  ;;  %v1873_v24 = vld [vmem:[#allocation11 + $0x3a8] sm:$0xff] }
 0x28a   :  { %3420 = vmatpush3.msra.mxu0 %v1826_v1  ;;  %3457 = vmatpush3.msra.mxu1 %v1860_v42  ;;  %v1736_v22 = vld [vmem:[#allocation5 + $0x58] sm:$0xff]  ;;  %v1823_v49 = vld [vmem:[#allocation11 + $0x218] sm:$0xff]  ;;  %v1857_v55 = vld [vmem:[#allocation11 + $0x328] sm:$0xff] }
 0x28b   :  { %3421 = vmatprep.subr.mxu0 %v1841_v44  ;;  %3458 = vmatprep.subr.mxu1 %v1875_v46  ;;  %v1838_v62 = vld [vmem:[#allocation11 + $0x290] sm:$0xff]  ;;  %v1872_v63 = vld [vmem:[#allocation11 + $0x3a0] sm:$0xff]  ;;  %v1837_v47 = vld [vmem:[#allocation11 + $0x288] sm:$0xff] }
 0x28c   :  { %2062 = vmatmul.mubr.f32.gmra.mxu1 %v1749_v57  ;;  %3422 = vmatpush3.msra.mxu0 %v1825_v20  ;;  %v1822_v3 = vld [vmem:[#allocation11 + $0x210] sm:$0xff]  ;;  %v1856_v4 = vld [vmem:[#allocation11 + $0x320] sm:$0xff]  ;;  %v1871_v48 = vld [vmem:[#allocation11 + $0x398] sm:$0xff] }
 0x28d   :  { %3459 = vmatpush3.msra.mxu1 %v1859_v23  ;;  %3423 = vmatprep.subr.mxu0 %v1840_v58  ;;  %v1821_v5 = vld [vmem:[#allocation11 + $0x208] sm:$0xff]  ;;  %v1855_v25 = vld [vmem:[#allocation11 + $0x318] sm:$0xff]  ;;  %v1836_v27 = vld [vmem:[#allocation11 + $0x280] sm:$0xff] }
 0x28e   :  { %3460 = vmatprep.subr.mxu1 %v1874_v60  ;;  %2211 = vmatprep.mubr.f32.mxu1 %v1736_v22  ;;  %v1870_v2 = vld [vmem:[#allocation11 + $0x390] sm:$0xff]  ;;  %v1820_v6 = vld [vmem:[#allocation11 + $0x200] sm:$0xff]  ;;  %v1869_v30 = vld [vmem:[#allocation11 + $0x388] sm:$0xff] }
 0x28f   :  { %3424 = vmatpush3.msra.mxu0 %v1824_v43  ;;  %3461 = vmatpush3.msra.mxu1 %v1858_v45  ;;  %v1854_v29 = vld [vmem:[#allocation11 + $0x310] sm:$0xff]  ;;  %v1733_v7 = vld [vmem:[#allocation5 + $0x38] sm:$0xff]  ;;  %v1853_v26 = vld [vmem:[#allocation11 + $0x308] sm:$0xff] }
 0x290   :  { %3425 = vmatprep.subr.mxu0 %v1839_v61  ;;  %3462 = vmatprep.subr.mxu1 %v1873_v24  ;;  %v1899_v28 = vld [vmem:[#allocation11 + $0x478] sm:$0xff]  ;;  %v1868_v9 = vld [vmem:[#allocation11 + $0x380] sm:$0xff]  ;;  %v1743_v12 = vld [vmem:[#allocation5 + $0x68] sm:$0xff] }
 0x291   :  { %3426 = vmatpush3.msra.mxu0 %v1823_v49  ;;  %3463 = vmatpush3.msra.mxu1 %v1857_v55  ;;  %v1852_v32 = vld [vmem:[#allocation11 + $0x300] sm:$0xff]  ;;  %v1898_v34 = vld [vmem:[#allocation11 + $0x470] sm:$0xff]  ;;  %v1735_v51 = vld [vmem:[#allocation5 + $0x90] sm:$0xff] }
 0x292   :  { %3427 = vmatprep.subr.mxu0 %v1838_v62  ;;  %3464 = vmatprep.subr.mxu1 %v1872_v63  ;;  %v1742_v11 = vld [vmem:[#allocation5 + $0xc0] sm:$0xff]  ;;  %v1752_v33 = vld [vmem:[#allocation5 + $0xb0] sm:$0xff]  ;;  %v1896_v50 = vld [vmem:[#allocation11 + $0x460] sm:$0xff] }
 0x293   :  { %3428 = vmatpush3.msra.mxu0 %v1822_v3  ;;  %3465 = vmatpush3.msra.mxu1 %v1856_v4  ;;  %v1897_v31 = vld [vmem:[#allocation11 + $0x468] sm:$0xff]  ;;  %v1744_v53 = vld [vmem:[#allocation5 + $0x30] sm:$0xff]  ;;  %v1751_v52 = vld [vmem:[#allocation5 + $0x88] sm:$0xff] }
 0x294   :  { %3429 = vmatprep.subr.mxu0 %v1837_v47  ;;  %3466 = vmatprep.subr.mxu1 %v1871_v48  ;;  %v1745_v13 = vld [vmem:[#allocation5 + $0x60] sm:$0xff]  ;;  %v1754_v14 = vld [vmem:[#allocation5 + $0xd0] sm:$0xff]  ;;  %v1894_v35 = vld [vmem:[#allocation11 + $0x450] sm:$0xff] }
 0x295   :  { %3430 = vmatpush3.msra.mxu0 %v1821_v5  ;;  %3467 = vmatpush3.msra.mxu1 %v1855_v25  ;;  %v1895_v16 = vld [vmem:[#allocation11 + $0x458] sm:$0xff]  ;;  %v1753_v37 = vld [vmem:[#allocation5 + $0xc8] sm:$0xff]  ;;  %v1893_v36 = vld [vmem:[#allocation11 + $0x448] sm:$0xff] }
 0x296   :  { %3431 = vmatprep.subr.mxu0 %v1836_v27  ;;  %3468 = vmatprep.subr.mxu1 %v1870_v2  ;;  %v1892_v15 = vld [vmem:[#allocation11 + $0x440] sm:$0xff]  ;;  %v1891_v17 = vld [vmem:[#allocation11 + $0x438] sm:$0xff]  ;;  %v1890_v39 = vld [vmem:[#allocation11 + $0x430] sm:$0xff] }
 0x297   :  { %3432 = vmatpush3.msra.mxu0 %v1820_v6  ;;  %3469 = vmatpush3.msra.mxu1 %v1854_v29  ;;  %v1889_v41 = vld [vmem:[#allocation11 + $0x428] sm:$0xff]  ;;  %v1888_v54 = vld [vmem:[#allocation11 + $0x420] sm:$0xff]  ;;  %v1887_v59 = vld [vmem:[#allocation11 + $0x418] sm:$0xff] }
 0x298   :  { %2132 = vmatmul.mubr.f32.vlgmr.msra.gmra.mxu0 %v1733_v7  ;;  %3470 = vmatprep.subr.mxu1 %v1869_v30  ;;  %v1886_v8 = vld [vmem:[#allocation11 + $0x410] sm:$0xff]  ;;  %v1885_v38 = vld [vmem:[#allocation11 + $0x408] sm:$0xff]  ;;  %v1884_v56 = vld [vmem:[#allocation11 + $0x400] sm:$0xff] }
 0x299   :  { %3602 = vmatprep.subr.mxu0 %v4922_v10  ;;  %2136 = vmatprep.mubr.f32.mxu0 %v1743_v12  ;;  %v1737_v21 = vld [vmem:[#allocation5 + $0x78] sm:$0xff]  ;;  %v1746_v0 = vld [vmem:[#allocation5 + $0x48] sm:$0xff]  ;;  %v1755_v18 = vld [vmem:[#allocation5 + $0xa0] sm:$0xff] }
 0x29a   :  { %3471 = vmatpush3.msra.mxu1 %v1853_v26  ;;  %3603 = vmatpush3.msra.mxu0 %v1899_v28  ;;  %v2398_v40 = vld [vmem:[%s4917_s7 + $0xf8] sm:$0xff]  ;;  %v2397_v19 = vld [vmem:[%s4917_s7 + $0xf0] sm:$0xff]  ;;  %v2396_v44 = vld [vmem:[%s4917_s7 + $0xe8] sm:$0xff] }
 0x29b   :  { %3472 = vmatprep.subr.mxu1 %v1868_v9  ;;  %3604 = vmatprep.subr.mxu0 %v4922_v10  ;;  %v2462_v1 = vld [vmem:[%s4917_s7 + $0x2f8] sm:$0xff]  ;;  %v2461_v42 = vld [vmem:[%s4917_s7 + $0x2f0] sm:$0xff]  ;;  %v2460_v46 = vld [vmem:[%s4917_s7 + $0x2e8] sm:$0xff] }
 0x29c   :  { %3473 = vmatpush3.msra.mxu1 %v1852_v32  ;;  %3605 = vmatpush3.msra.mxu0 %v1898_v34  ;;  %v2395_v20 = vld [vmem:[%s4917_s7 + $0xe0] sm:$0xff]  ;;  %v2394_v57 = vld [vmem:[%s4917_s7 + $0xd8] sm:$0xff]  ;;  %v2393_v60 = vld [vmem:[%s4917_s7 + $0xd0] sm:$0xff] }
 0x29d   :  { %2212 = vmatmul.mubr.f32.vlgmr.msra.gmra.mxu1 %v1735_v51  ;;  %2137 = vmatmul.mubr.f32.gmra.mxu0 %v1742_v11  ;;  %v2459_v23 = vld [vmem:[%s4917_s7 + $0x2e0] sm:$0xff]  ;;  %v2458_v58 = vld [vmem:[%s4917_s7 + $0x2d8] sm:$0xff]  ;;  %v2457_v43 = vld [vmem:[%s4917_s7 + $0x2d0] sm:$0xff] }
 0x29e   :  { %3606 = vmatprep.subr.mxu0 %v4922_v10  ;;  %2141 = vmatprep.mubr.f32.mxu0 %v1752_v33  ;;  %v2392_v45 = vld [vmem:[%s4917_s7 + $0xc8] sm:$0xff]  ;;  %v2391_v22 = vld [vmem:[%s4917_s7 + $0xc0] sm:$0xff]  ;;  %v2390_v49 = vld [vmem:[%s4917_s7 + $0xb8] sm:$0xff] }
 0x29f   :  { %2216 = vmatprep.mubr.f32.mxu1 %v1745_v13  ;;  %3607 = vmatpush3.msra.mxu0 %v1897_v31  ;;  %v2456_v61 = vld [vmem:[%s4917_s7 + $0x2c8] sm:$0xff]  ;;  %v2455_v24 = vld [vmem:[%s4917_s7 + $0x2c0] sm:$0xff]  ;;  %v2454_v55 = vld [vmem:[%s4917_s7 + $0x2b8] sm:$0xff] }
 0x2a0   :  { %3608 = vmatprep.subr.mxu0 %v4922_v10  ;;  %2667 = vmatprep.subr.mxu1 %v2398_v40  ;;  %v2389_v62 = vld [vmem:[%s4917_s7 + $0xb0] sm:$0xff]  ;;  %v2388_v3 = vld [vmem:[%s4917_s7 + $0xa8] sm:$0xff]  ;;  %v2387_v47 = vld [vmem:[%s4917_s7 + $0xa0] sm:$0xff] }
 0x2a1   :  { %2217 = vmatmul.mubr.f32.gmra.mxu1 %v1744_v53  ;;  %3609 = vmatpush3.msra.mxu0 %v1896_v50  ;;  %v2453_v63 = vld [vmem:[%s4917_s7 + $0x2b0] sm:$0xff]  ;;  %v2452_v4 = vld [vmem:[%s4917_s7 + $0x2a8] sm:$0xff]  ;;  %v2451_v48 = vld [vmem:[%s4917_s7 + $0x2a0] sm:$0xff] }
 0x2a2   :  { %2221 = vmatprep.mubr.f32.mxu1 %v1754_v14  ;;  %2142 = vmatmul.mubr.f32.gmra.mxu0 %v1751_v52  ;;  %v2386_v5 = vld [vmem:[%s4917_s7 + $0x98] sm:$0xff]  ;;  %v2385_v27 = vld [vmem:[%s4917_s7 + $0x90] sm:$0xff]  ;;  %v2384_v6 = vld [vmem:[%s4917_s7 + $0x88] sm:$0xff] }
 0x2a3   :  { %3610 = vmatprep.subr.mxu0 %v4922_v10  ;;  %3634 = vmatprep.mubr.msk.f32.mxu0 %vm3721_vm0, %v4922_v10  ;;  %v2450_v25 = vld [vmem:[%s4917_s7 + $0x298] sm:$0xff]  ;;  %v2449_v2 = vld [vmem:[%s4917_s7 + $0x290] sm:$0xff]  ;;  %v2448_v29 = vld [vmem:[%s4917_s7 + $0x288] sm:$0xff] }
 0x2a4   :  { %3611 = vmatpush3.msra.mxu0 %v1895_v16  ;;  %2668 = vmatpush1.msra.mxu1 %v2397_v19  ;;  %v2383_v30 = vld [vmem:[%s4917_s7 + $0x80] sm:$0xff]  ;;  %v2382_v26 = vld [vmem:[%s4917_s7 + $0x78] sm:$0xff]  ;;  %v2381_v9 = vld [vmem:[%s4917_s7 + $0x70] sm:$0xff] }
 0x2a5   :  { %3612 = vmatprep.subr.mxu0 %v4922_v10  ;;  %2222 = vmatmul.mubr.f32.gmra.mxu1 %v1753_v37  ;;  %v2447_v7 = vld [vmem:[%s4917_s7 + $0x280] sm:$0xff]  ;;  %v2446_v28 = vld [vmem:[%s4917_s7 + $0x278] sm:$0xff]  ;;  %v2445_v12 = vld [vmem:[%s4917_s7 + $0x270] sm:$0xff] }
 0x2a6   :  { %3613 = vmatpush3.msra.mxu0 %v1894_v35  ;;  %2669 = vmatprep.subr.mxu1 %v2396_v44  ;;  %v2380_v32 = vld [vmem:[%s4917_s7 + $0x68] sm:$0xff]  ;;  %v2379_v51 = vld [vmem:[%s4917_s7 + $0x60] sm:$0xff]  ;;  %v2378_v31 = vld [vmem:[%s4917_s7 + $0x58] sm:$0xff] }
 0x2a7   :  { %3614 = vmatprep.subr.mxu0 %v4922_v10  ;;  %2670 = vmatpush1.msra.mxu1 %v2395_v20  ;;  %v2444_v34 = vld [vmem:[%s4917_s7 + $0x268] sm:$0xff]  ;;  %v2443_v11 = vld [vmem:[%s4917_s7 + $0x260] sm:$0xff]  ;;  %v2442_v33 = vld [vmem:[%s4917_s7 + $0x258] sm:$0xff] }
 0x2a8   :  { %3615 = vmatpush3.msra.mxu0 %v1893_v36  ;;  %2671 = vmatprep.subr.mxu1 %v2394_v57  ;;  %v2377_v13 = vld [vmem:[%s4917_s7 + $0x50] sm:$0xff]  ;;  %v2376_v53 = vld [vmem:[%s4917_s7 + $0x48] sm:$0xff]  ;;  %v2375_v16 = vld [vmem:[%s4917_s7 + $0x40] sm:$0xff] }
 0x2a9   :  { %3616 = vmatprep.subr.mxu0 %v4922_v10  ;;  %2672 = vmatpush1.msra.mxu1 %v2393_v60  ;;  %v2441_v50 = vld [vmem:[%s4917_s7 + $0x250] sm:$0xff]  ;;  %v2440_v14 = vld [vmem:[%s4917_s7 + $0x248] sm:$0xff]  ;;  %v2439_v52 = vld [vmem:[%s4917_s7 + $0x240] sm:$0xff] }
 0x2aa   :  { %3617 = vmatpush3.msra.mxu0 %v1892_v15  ;;  %2673 = vmatprep.subr.mxu1 %v2392_v45  ;;  %v2374_v35 = vld [vmem:[%s4917_s7 + $0x38] sm:$0xff]  ;;  %v2373_v36 = vld [vmem:[%s4917_s7 + $0x30] sm:$0xff]  ;;  %v2431_v40 = vld [vmem:[%s4917_s7 + $0x200] sm:$0xff] }
 0x2ab   :  { %3618 = vmatprep.subr.mxu0 %v4922_v10  ;;  %2674 = vmatpush1.msra.mxu1 %v2391_v22  ;;  %v2438_v37 = vld [vmem:[%s4917_s7 + $0x238] sm:$0xff]  ;;  %v2437_v15 = vld [vmem:[%s4917_s7 + $0x230] sm:$0xff]  ;;  %v2492_v20 = vld [vmem:[%s4917_s7 + $0x3e8] sm:$0xff] }
 0x2ac   :  { %3619 = vmatpush3.msra.mxu0 %v1891_v17  ;;  %2675 = vmatprep.subr.mxu1 %v2390_v49  ;;  %v2372_v17 = vld [vmem:[%s4917_s7 + $0x28] sm:$0xff]  ;;  %v2494_v19 = vld [vmem:[%s4917_s7 + $0x3f8] sm:$0xff]  ;;  %v2493_v44 = vld [vmem:[%s4917_s7 + $0x3f0] sm:$0xff] }
 0x2ad   :  { %3620 = vmatprep.subr.mxu0 %v4922_v10  ;;  %2676 = vmatpush1.msra.mxu1 %v2389_v62  ;;  %v2491_v57 = vld [vmem:[%s4917_s7 + $0x3e0] sm:$0xff]  ;;  %v2490_v60 = vld [vmem:[%s4917_s7 + $0x3d8] sm:$0xff]  ;;  %v2489_v45 = vld [vmem:[%s4917_s7 + $0x3d0] sm:$0xff] }
 0x2ae   :  { %3621 = vmatpush3.msra.mxu0 %v1890_v39  ;;  %2677 = vmatprep.subr.mxu1 %v2388_v3  ;;  %v2436_v39 = vld [vmem:[%s4917_s7 + $0x228] sm:$0xff]  ;;  %v2487_v49 = vld [vmem:[%s4917_s7 + $0x3c0] sm:$0xff]  ;;  %v2486_v62 = vld [vmem:[%s4917_s7 + $0x3b8] sm:$0xff] }
 0x2af   :  { %3622 = vmatprep.subr.mxu0 %v4922_v10  ;;  %2678 = vmatpush1.msra.mxu1 %v2387_v47  ;;  %v2488_v22 = vld [vmem:[%s4917_s7 + $0x3c8] sm:$0xff]  ;;  %v2485_v3 = vld [vmem:[%s4917_s7 + $0x3b0] sm:$0xff] }
 0x2b0   :  { %3623 = vmatpush3.msra.mxu0 %v1889_v41  ;;  %2679 = vmatprep.subr.mxu1 %v2386_v5  ;;  %v2371_v41 = vld [vmem:[%s4917_s7 + $0x20] sm:$0xff]  ;;  %v2484_v47 = vld [vmem:[%s4917_s7 + $0x3a8] sm:$0xff] }
 0x2b1   :  { %3624 = vmatprep.subr.mxu0 %v4922_v10  ;;  %2680 = vmatpush1.msra.mxu1 %v2385_v27  ;;  %v2483_v5 = vld [vmem:[%s4917_s7 + $0x3a0] sm:$0xff]  ;;  %v2482_v27 = vld [vmem:[%s4917_s7 + $0x398] sm:$0xff] }
 0x2b2   :  { %3625 = vmatpush3.msra.mxu0 %v1888_v54  ;;  %2681 = vmatprep.subr.mxu1 %v2384_v6  ;;  %v2435_v54 = vld [vmem:[%s4917_s7 + $0x220] sm:$0xff]  ;;  %v2481_v6 = vld [vmem:[%s4917_s7 + $0x390] sm:$0xff] }
 0x2b3   :  { %3626 = vmatprep.subr.mxu0 %v4922_v10  ;;  %2682 = vmatpush1.msra.mxu1 %v2383_v30  ;;  %v2480_v30 = vld [vmem:[%s4917_s7 + $0x388] sm:$0xff] }
 0x2b4   :  { %3627 = vmatpush3.msra.mxu0 %v1887_v59  ;;  %2683 = vmatprep.subr.mxu1 %v2382_v26  ;;  %v2370_v59 = vld [vmem:[%s4917_s7 + $0x18] sm:$0xff]  ;;  %v2479_v26 = vld [vmem:[%s4917_s7 + $0x380] sm:$0xff] }
 0x2b5   :  { %3628 = vmatprep.subr.mxu0 %v4922_v10  ;;  %2684 = vmatpush1.msra.mxu1 %v2381_v9  ;;  %v2478_v9 = vld [vmem:[%s4917_s7 + $0x378] sm:$0xff] }
 0x2b6   :  { %3629 = vmatpush3.msra.mxu0 %v1886_v8  ;;  %2685 = vmatprep.subr.mxu1 %v2380_v32  ;;  %v2434_v8 = vld [vmem:[%s4917_s7 + $0x218] sm:$0xff]  ;;  %v2477_v32 = vld [vmem:[%s4917_s7 + $0x370] sm:$0xff] }
 0x2b7   :  { %3630 = vmatprep.subr.mxu0 %v4922_v10  ;;  %2686 = vmatpush1.msra.mxu1 %v2379_v51  ;;  %v2476_v51 = vld [vmem:[%s4917_s7 + $0x368] sm:$0xff] }
 0x2b8   :  { %3631 = vmatpush3.msra.mxu0 %v1885_v38  ;;  %2687 = vmatprep.subr.mxu1 %v2378_v31  ;;  %v2369_v38 = vld [vmem:[%s4917_s7 + $0x10] sm:$0xff]  ;;  %v2475_v31 = vld [vmem:[%s4917_s7 + $0x360] sm:$0xff] }
 0x2b9   :  { %3632 = vmatprep.subr.mxu0 %v4922_v10  ;;  %2688 = vmatpush1.msra.mxu1 %v2377_v13  ;;  %v2474_v13 = vld [vmem:[%s4917_s7 + $0x358] sm:$0xff] }
 0x2ba   :  { %3633 = vmatpush3.msra.mxu0 %v1884_v56  ;;  %2689 = vmatprep.subr.mxu1 %v2376_v53  ;;  %v2433_v56 = vld [vmem:[%s4917_s7 + $0x210] sm:$0xff] }
 0x2bb   :  { %3635 = vmatmul.mubr.f32.vlgmr.msra.gmra.mxu0 %v1737_v21  ;;  %2738 = vmatprep.subr.mxu0 %v2462_v1  ;;  %v2368_v21 = vld [vmem:[%s4917_s7 + $0x8] sm:$0xff]  ;;  %v2430_v1 = vld [vmem:[%s4917_s7 + $0x1f8] sm:$0xff]  ;;  %v2473_v53 = vld [vmem:[%s4917_s7 + $0x350] sm:$0xff] }
 0x2bc   :  { %3637 = vmatprep.mubr.msk.f32.mxu0 %vm3721_vm0, %v4922_v10  ;;  %2739 = vmatpush1.msra.mxu0 %v2461_v42  ;;  %v2429_v42 = vld [vmem:[%s4917_s7 + $0x1f0] sm:$0xff] }
 0x2bd   :  { %2740 = vmatprep.subr.mxu0 %v2460_v46  ;;  %2690 = vmatpush1.msra.mxu1 %v2375_v16  ;;  %v2428_v46 = vld [vmem:[%s4917_s7 + $0x1e8] sm:$0xff] }
 0x2be   :  { %2741 = vmatpush1.msra.mxu0 %v2459_v23  ;;  %2691 = vmatprep.subr.mxu1 %v2374_v35  ;;  %v2427_v23 = vld [vmem:[%s4917_s7 + $0x1e0] sm:$0xff]  ;;  %v2472_v16 = vld [vmem:[%s4917_s7 + $0x348] sm:$0xff] }
 0x2bf   :  { %3638 = vmatmul.mubr.f32.gmra.mxu0 %v1746_v0  ;;  %2742 = vmatprep.subr.mxu0 %v2458_v58  ;;  %v2432_v0 = vld [vmem:[%s4917_s7 + $0x208] sm:$0xff]  ;;  %v2426_v58 = vld [vmem:[%s4917_s7 + $0x1d8] sm:$0xff]  ;;  %v2471_v35 = vld [vmem:[%s4917_s7 + $0x340] sm:$0xff] }
 0x2c0   :  { %3640 = vmatprep.mubr.msk.f32.mxu0 %vm3721_vm0, %v4922_v10  ;;  %2743 = vmatpush1.msra.mxu0 %v2457_v43  ;;  %v2425_v43 = vld [vmem:[%s4917_s7 + $0x1d0] sm:$0xff] }
 0x2c1   :  { %2744 = vmatprep.subr.mxu0 %v2456_v61  ;;  %2692 = vmatpush1.msra.mxu1 %v2373_v36  ;;  %v2424_v61 = vld [vmem:[%s4917_s7 + $0x1c8] sm:$0xff]  ;;  %v2470_v36 = vld [vmem:[%s4917_s7 + $0x338] sm:$0xff] }
 0x2c2   :  { %2745 = vmatpush1.msra.mxu0 %v2455_v24  ;;  %2693 = vmatprep.subr.mxu1 %v2372_v17  ;;  %v2423_v24 = vld [vmem:[%s4917_s7 + $0x1c0] sm:$0xff]  ;;  %v2469_v17 = vld [vmem:[%s4917_s7 + $0x330] sm:$0xff] }
 0x2c3   :  { %3641 = vmatmul.mubr.f32.gmra.mxu0 %v1755_v18  ;;  %2746 = vmatprep.subr.mxu0 %v2454_v55  ;;  %v2367_v18 = vld [vmem:[%s4917_s7] sm:$0xff]  ;;  %v2422_v55 = vld [vmem:[%s4917_s7 + $0x1b8] sm:$0xff] }
 0x2c4   :  { %2747 = vmatpush1.msra.mxu0 %v2453_v63  ;;  %2694 = vmatpush1.msra.mxu1 %v2371_v41  ;;  %v2421_v63 = vld [vmem:[%s4917_s7 + $0x1b0] sm:$0xff]  ;;  %v2468_v41 = vld [vmem:[%s4917_s7 + $0x328] sm:$0xff] }
 0x2c5   :  { %2748 = vmatprep.subr.mxu0 %v2452_v4  ;;  %2695 = vmatprep.subr.mxu1 %v2370_v59  ;;  %v2420_v4 = vld [vmem:[%s4917_s7 + $0x1a8] sm:$0xff]  ;;  %v2467_v59 = vld [vmem:[%s4917_s7 + $0x320] sm:$0xff] }
 0x2c6   :  { %2749 = vmatpush1.msra.mxu0 %v2451_v48  ;;  %2696 = vmatpush1.msra.mxu1 %v2369_v38  ;;  %v2419_v48 = vld [vmem:[%s4917_s7 + $0x1a0] sm:$0xff]  ;;  %v2466_v38 = vld [vmem:[%s4917_s7 + $0x318] sm:$0xff] }
 0x2c7   :  { %2750 = vmatprep.subr.mxu0 %v2450_v25  ;;  %2697 = vmatprep.subr.mxu1 %v2368_v21  ;;  %v2418_v25 = vld [vmem:[%s4917_s7 + $0x198] sm:$0xff]  ;;  %v2465_v21 = vld [vmem:[%s4917_s7 + $0x310] sm:$0xff] }
 0x2c8   :  { %2751 = vmatpush1.msra.mxu0 %v2449_v2  ;;  %2698 = vmatpush1.msra.mxu1 %v2367_v18  ;;  %v2417_v2 = vld [vmem:[%s4917_s7 + $0x190] sm:$0xff]  ;;  %v2464_v18 = vld [vmem:[%s4917_s7 + $0x308] sm:$0xff] }
 0x2c9   :  { %2752 = vmatprep.subr.mxu0 %v2448_v29  ;;  %2699 = vmatprep.subr.mxu1 %v2430_v1  ;;  %v2416_v29 = vld [vmem:[%s4917_s7 + $0x188] sm:$0xff]  ;;  %v2463_v1 = vld [vmem:[%s4917_s7 + $0x300] sm:$0xff] }
 0x2ca   :  { %2753 = vmatpush1.msra.mxu0 %v2447_v7  ;;  %2700 = vmatpush2.msra.mxu1 %v2429_v42  ;;  %v2415_v7 = vld [vmem:[%s4917_s7 + $0x180] sm:$0xff]  ;;  %v2590_v42 = vld [vmem:[%s4917_s7 + $0x6f8] sm:$0xff] }
 0x2cb   :  { %2754 = vmatprep.subr.mxu0 %v2446_v28  ;;  %2701 = vmatprep.subr.mxu1 %v2428_v46  ;;  %v2414_v28 = vld [vmem:[%s4917_s7 + $0x178] sm:$0xff] }
 0x2cc   :  { %2755 = vmatpush1.msra.mxu0 %v2445_v12  ;;  %2702 = vmatpush2.msra.mxu1 %v2427_v23  ;;  %v2413_v12 = vld [vmem:[%s4917_s7 + $0x170] sm:$0xff] }
 0x2cd   :  { %2756 = vmatprep.subr.mxu0 %v2444_v34  ;;  %2703 = vmatprep.subr.mxu1 %v2426_v58  ;;  %v2412_v34 = vld [vmem:[%s4917_s7 + $0x168] sm:$0xff] }
 0x2ce   :  { %2757 = vmatpush1.msra.mxu0 %v2443_v11  ;;  %2704 = vmatpush2.msra.mxu1 %v2425_v43  ;;  %v2411_v11 = vld [vmem:[%s4917_s7 + $0x160] sm:$0xff] }
 0x2cf   :  { %2758 = vmatprep.subr.mxu0 %v2442_v33  ;;  %2705 = vmatprep.subr.mxu1 %v2424_v61  ;;  %v2410_v33 = vld [vmem:[%s4917_s7 + $0x158] sm:$0xff] }
 0x2d0   :  { %2759 = vmatpush1.msra.mxu0 %v2441_v50  ;;  %2706 = vmatpush2.msra.mxu1 %v2423_v24  ;;  %v2409_v50 = vld [vmem:[%s4917_s7 + $0x150] sm:$0xff] }
 0x2d1   :  { %2760 = vmatprep.subr.mxu0 %v2440_v14  ;;  %2707 = vmatprep.subr.mxu1 %v2422_v55  ;;  %v2408_v14 = vld [vmem:[%s4917_s7 + $0x148] sm:$0xff] }
 0x2d2   :  { %2761 = vmatpush1.msra.mxu0 %v2439_v52  ;;  %2708 = vmatpush2.msra.mxu1 %v2421_v63  ;;  %v2407_v52 = vld [vmem:[%s4917_s7 + $0x140] sm:$0xff] }
 0x2d3   :  { %2762 = vmatprep.subr.mxu0 %v2438_v37  ;;  %2709 = vmatprep.subr.mxu1 %v2420_v4  ;;  %v2406_v37 = vld [vmem:[%s4917_s7 + $0x138] sm:$0xff] }
 0x2d4   :  { %2763 = vmatpush1.msra.mxu0 %v2437_v15  ;;  %2710 = vmatpush2.msra.mxu1 %v2419_v48  ;;  %v2405_v15 = vld [vmem:[%s4917_s7 + $0x130] sm:$0xff]  ;;  %v3065_v48 = vld [vmem:[%s4916_s6] ss:$0 sm:$0xff] }
 0x2d5   :  { %2764 = vmatprep.subr.mxu0 %v2436_v39  ;;  %2711 = vmatprep.subr.mxu1 %v2418_v25  ;;  %v2404_v39 = vld [vmem:[%s4917_s7 + $0x128] sm:$0xff] }
 0x2d6   :  { %2765 = vmatpush1.msra.mxu0 %v2435_v54  ;;  %2712 = vmatpush2.msra.mxu1 %v2417_v2  ;;  %v2403_v54 = vld [vmem:[%s4917_s7 + $0x120] sm:$0xff] }
 0x2d7   :  { %2766 = vmatprep.subr.mxu0 %v2434_v8  ;;  %2713 = vmatprep.subr.mxu1 %v2416_v29  ;;  %v2402_v8 = vld [vmem:[%s4917_s7 + $0x118] sm:$0xff] }
 0x2d8   :  { %2767 = vmatpush1.msra.mxu0 %v2433_v56  ;;  %2714 = vmatpush2.msra.mxu1 %v2415_v7  ;;  %v2401_v56 = vld [vmem:[%s4917_s7 + $0x110] sm:$0xff] }
 0x2d9   :  { %2768 = vmatprep.subr.mxu0 %v2432_v0  ;;  %2715 = vmatprep.subr.mxu1 %v2414_v28  ;;  %v2400_v0 = vld [vmem:[%s4917_s7 + $0x108] sm:$0xff] }
 0x2da   :  { %2769 = vmatpush1.msra.mxu0 %v2431_v40  ;;  %2716 = vmatpush2.msra.mxu1 %v2413_v12  ;;  %v2399_v40 = vld [vmem:[%s4917_s7 + $0x100] sm:$0xff] }
 0x2db   :  { %2770 = vmatprep.subr.mxu0 %v2494_v19  ;;  %2717 = vmatprep.subr.mxu1 %v2412_v34  ;;  %v2526_v19 = vld [vmem:[%s4917_s7 + $0x4f8] sm:$0xff] }
 0x2dc   :  { %2771 = vmatpush2.msra.mxu0 %v2493_v44  ;;  %2718 = vmatpush2.msra.mxu1 %v2411_v11 }
 0x2dd   :  { %2772 = vmatprep.subr.mxu0 %v2492_v20  ;;  %2719 = vmatprep.subr.mxu1 %v2410_v33 }
 0x2de   :  { %2773 = vmatpush2.msra.mxu0 %v2491_v57  ;;  %2720 = vmatpush2.msra.mxu1 %v2409_v50 }
 0x2df   :  { %2774 = vmatprep.subr.mxu0 %v2490_v60  ;;  %2721 = vmatprep.subr.mxu1 %v2408_v14 }
 0x2e0   :  { %2775 = vmatpush2.msra.mxu0 %v2489_v45  ;;  %2722 = vmatpush2.msra.mxu1 %v2407_v52 }
 0x2e1   :  { %2776 = vmatprep.subr.mxu0 %v2488_v22  ;;  %2723 = vmatprep.subr.mxu1 %v2406_v37 }
 0x2e2   :  { %2777 = vmatpush2.msra.mxu0 %v2487_v49  ;;  %2724 = vmatpush2.msra.mxu1 %v2405_v15 }
 0x2e3   :  { %2778 = vmatprep.subr.mxu0 %v2486_v62  ;;  %2725 = vmatprep.subr.mxu1 %v2404_v39 }
 0x2e4   :  { %2779 = vmatpush2.msra.mxu0 %v2485_v3  ;;  %2726 = vmatpush2.msra.mxu1 %v2403_v54 }
 0x2e5   :  { %2780 = vmatprep.subr.mxu0 %v2484_v47  ;;  %2727 = vmatprep.subr.mxu1 %v2402_v8 }
 0x2e6   :  { %2781 = vmatpush2.msra.mxu0 %v2483_v5  ;;  %2728 = vmatpush2.msra.mxu1 %v2401_v56 }
 0x2e7   :  { %2782 = vmatprep.subr.mxu0 %v2482_v27  ;;  %2729 = vmatprep.subr.mxu1 %v2400_v0 }
 0x2e8   :  { %2783 = vmatpush2.msra.mxu0 %v2481_v6  ;;  %2730 = vmatpush2.msra.mxu1 %v2399_v40 }
 0x2e9   :  { %2784 = vmatprep.subr.mxu0 %v2480_v30  ;;  %2809 = vmatprep.subr.mxu1 %v2526_v19 }
 0x2ea   :  { %2785 = vmatpush2.msra.mxu0 %v2479_v26 }
 0x2eb   :  { %2786 = vmatprep.subr.mxu0 %v2478_v9 }
 0x2ec   :  { %2787 = vmatpush2.msra.mxu0 %v2477_v32 }
 0x2ed   :  { %2788 = vmatprep.subr.mxu0 %v2476_v51 }
 0x2ee   :  { %2789 = vmatpush2.msra.mxu0 %v2475_v31 }
 0x2ef   :  { %2790 = vmatprep.subr.mxu0 %v2474_v13 }
 0x2f0   :  { %2791 = vmatpush2.msra.mxu0 %v2473_v53 }
 0x2f1   :  { %2792 = vmatprep.subr.mxu0 %v2472_v16 }
 0x2f2   :  { %2793 = vmatpush2.msra.mxu0 %v2471_v35 }
 0x2f3   :  { %2794 = vmatprep.subr.mxu0 %v2470_v36 }
 0x2f4   :  { %2795 = vmatpush2.msra.mxu0 %v2469_v17 }
 0x2f5   :  { %2796 = vmatprep.subr.mxu0 %v2468_v41 }
 0x2f6   :  { %2797 = vmatpush2.msra.mxu0 %v2467_v59 }
 0x2f7   :  { %2798 = vmatprep.subr.mxu0 %v2466_v38 }
 0x2f8   :  { %2799 = vmatpush2.msra.mxu0 %v2465_v21 }
 0x2f9   :  { %2800 = vmatprep.subr.mxu0 %v2464_v18 }
 0x2fa   :  { %2801 = vmatpush2.msra.mxu0 %v2463_v1 }
 0x2fb   :  { %2880 = vmatprep.subr.mxu0 %v2590_v42 }
 0x328   :  { %v3351_v44 = vpop.f32.mrf.mxu0 }
 0x32a   :  { %v3352_v20 = vpop.f32.mrf.mxu0 }
 0x32b   :  { %v3353_v47 = vadd.f32 %v3352_v20, %v3351_v44 }
 0x32d   :  { %v1974_v2 = vadd.f32 %v3353_v47, %v3065_v48 }
 0x334   :  { %v3392_v46 = vpop.f32.mrf.mxu1 }
 0x336   :  { %v3393_v23 = vpop.f32.mrf.mxu1 }
 0x337   :  { %v3394_v25 = vadd.f32 %v3393_v23, %v3392_v46 }
 0x339   :  { %v2054_v7 = vadd.f32 %v3394_v25, %v1974_v2  ;;  %v2589_v25 = vld [vmem:[%s4917_s7 + $0x6f0] sm:$0xff]  ;;  %v2588_v2 = vld [vmem:[%s4917_s7 + $0x6e8] sm:$0xff] }
 0x342   :  { %v3354_v57 = vpop.f32.mrf.mxu0 }
 0x344   :  { %v3355_v60 = vpop.f32.mrf.mxu0 }
 0x345   :  { %v3356_v6 = vadd.f32 %v3355_v60, %v3354_v57 }
 0x346   :  { %v3395_v58 = vpop.f32.mrf.mxu1  ;;  %v3357_v45 = vpop.f32.mrf.mxu0 }
 0x347   :  { %v1979_v12 = vadd.f32 %v3356_v6, %v3065_v48  ;;  %v2523_v6 = vld [vmem:[%s4917_s7 + $0x4e0] sm:$0xff] }
 0x348   :  { %v3396_v43 = vpop.f32.mrf.mxu1  ;;  %v3358_v22 = vpop.f32.mrf.mxu0 }
 0x349   :  { %v3397_v26 = vadd.f32 %v3396_v43, %v3395_v58  ;;  %v3359_v32 = vadd.f32 %v3358_v22, %v3357_v45 }
 0x34b   :  { %v2059_v31 = vadd.f32 %v3397_v26, %v1979_v12  ;;  %v1984_v16 = vadd.f32 %v3359_v32, %v3065_v48  ;;  %v2525_v48 = vld [vmem:[%s4917_s7 + $0x4f0] sm:$0xff]  ;;  %v2586_v26 = vld [vmem:[%s4917_s7 + $0x6d8] sm:$0xff]  ;;  %v2520_v32 = vld [vmem:[%s4917_s7 + $0x4c8] sm:$0xff] }
 0x34c   :  { %v3398_v61 = vpop.f32.mrf.mxu1  ;;  %v2585_v12 = vld [vmem:[%s4917_s7 + $0x6d0] sm:$0xff] }
 0x34e   :  { %v3399_v24 = vpop.f32.mrf.mxu1 }
 0x34f   :  { %v3400_v33 = vadd.f32 %v3399_v24, %v3398_v61 }
 0x351   :  { %v2064_v15 = vadd.f32 %v3400_v33, %v1984_v16  ;;  %v2582_v33 = vld [vmem:[%s4917_s7 + $0x6b8] sm:$0xff]  ;;  %v2515_v16 = vld [vmem:[%s4917_s7 + $0x4a0] sm:$0xff] }
 0x358   :  { %v3433_v49 = vpop.f32.mrf.mxu0 }
 0x35a   :  { %v3434_v62 = vpop.f32.mrf.mxu0 }
 0x35b   :  { %v3435_v29 = vadd.f32 %v3434_v62, %v3433_v49 }
 0x35d   :  { %v3474_v55 = vpop.f32.mrf.mxu1  ;;  %v3436_v3 = vpop.f32.mrf.mxu0  ;;  %v2134_v34 = vadd.f32 %v3435_v29, %v2054_v7  ;;  %v2587_v29 = vld [vmem:[%s4917_s7 + $0x6e0] sm:$0xff]  ;;  %v2522_v7 = vld [vmem:[%s4917_s7 + $0x4d8] sm:$0xff] }
 0x35f   :  { %v3475_v63 = vpop.f32.mrf.mxu1  ;;  %v3437_v5 = vpop.f32.mrf.mxu0 }
 0x360   :  { %v3476_v28 = vadd.f32 %v3475_v63, %v3474_v55  ;;  %v3438_v51 = vadd.f32 %v3437_v5, %v3436_v3 }
 0x361   :  { %v3477_v4 = vpop.f32.mrf.mxu1 }
 0x362   :  { %v3439_v30 = vpop.f32.mrf.mxu0  ;;  %v2214_v50 = vadd.f32 %v3476_v28, %v2134_v34  ;;  %v2139_v52 = vadd.f32 %v3438_v51, %v2059_v31  ;;  %v2584_v34 = vld [vmem:[%s4917_s7 + $0x6c8] sm:$0xff]  ;;  %v2519_v51 = vld [vmem:[%s4917_s7 + $0x4c0] sm:$0xff]  ;;  %v2518_v31 = vld [vmem:[%s4917_s7 + $0x4b8] sm:$0xff] }
 0x363   :  { %v3478_v27 = vpop.f32.mrf.mxu1 }
 0x364   :  { %v3440_v11 = vpop.f32.mrf.mxu0  ;;  %v3479_v13 = vadd.f32 %v3478_v27, %v3477_v4  ;;  %v2524_v27 = vld [vmem:[%s4917_s7 + $0x4e8] sm:$0xff] }
 0x365   :  { %v3480_v9 = vpop.f32.mrf.mxu1  ;;  %v3441_v35 = vadd.f32 %v3440_v11, %v3439_v30  ;;  %v2583_v11 = vld [vmem:[%s4917_s7 + $0x6c0] sm:$0xff] }
 0x366   :  { %v2219_v41 = vadd.f32 %v3479_v13, %v2139_v52  ;;  %v2517_v13 = vld [vmem:[%s4917_s7 + $0x4b0] sm:$0xff]  ;;  %v2579_v52 = vld [vmem:[%s4917_s7 + $0x6a0] sm:$0xff] }
 0x367   :  { %v3481_v53 = vpop.f32.mrf.mxu1  ;;  %v2144_v59 = vadd.f32 %v3441_v35, %v2064_v15  ;;  %v2514_v35 = vld [vmem:[%s4917_s7 + $0x498] sm:$0xff]  ;;  %v2577_v15 = vld [vmem:[%s4917_s7 + $0x690] sm:$0xff] }
 0x368   :  { %v3482_v17 = vadd.f32 %v3481_v53, %v3480_v9  ;;  %v2521_v9 = vld [vmem:[%s4917_s7 + $0x4d0] sm:$0xff]  ;;  %v2516_v53 = vld [vmem:[%s4917_s7 + $0x4a8] sm:$0xff] }
 0x36a   :  { %v2224_v21 = vadd.f32 %v3482_v17, %v2144_v59  ;;  %v2512_v17 = vld [vmem:[%s4917_s7 + $0x488] sm:$0xff]  ;;  %v2510_v59 = vld [vmem:[%s4917_s7 + $0x478] sm:$0xff] }
 0x37b   :  { %v2293_v14 = vpop.f32.mrf.mxu0 }
 0x37c   :  { %v2294_v37 = vadd.f32 %v2293_v14, %v2214_v50  ;;  %v2581_v50 = vld [vmem:[%s4917_s7 + $0x6b0] sm:$0xff]  ;;  %v2580_v14 = vld [vmem:[%s4917_s7 + $0x6a8] sm:$0xff] }
 0x37d   :  { %v3636_v36 = vpop.f32.mrf.mxu0 }
 0x37e   :  { %v2307_v39 = vmax.f32 %v2294_v37, 0.0  ;;  %v2578_v37 = vld [vmem:[%s4917_s7 + $0x698] sm:$0xff]  ;;  %v2513_v36 = vld [vmem:[%s4917_s7 + $0x490] sm:$0xff] }
 0x37f   :  { %v2298_v54 = vpop.f32.mrf.mxu0 }
 0x380   :  { %2310 = vst [vmem:[#allocation6] sm:$0xff] %v2307_v39  ;;  %v2299_v8 = vadd.f32 %v2298_v54, %v2219_v41  ;;  %v2576_v39 = vld [vmem:[%s4917_s7 + $0x688] sm:$0xff]  ;;  %v2511_v41 = vld [vmem:[%s4917_s7 + $0x480] sm:$0xff] }
 0x381   :  { %v3639_v38 = vpop.f32.mrf.mxu0  ;;  %v2575_v54 = vld [vmem:[%s4917_s7 + $0x680] sm:$0xff] }
 0x382   :  { %v2308_v56 = vmax.f32 %v2299_v8, 0.0  ;;  %v2574_v8 = vld [vmem:[%s4917_s7 + $0x678] sm:$0xff]  ;;  %v2509_v38 = vld [vmem:[%s4917_s7 + $0x470] sm:$0xff] }
 0x383   :  { %v2303_v0 = vpop.f32.mrf.mxu0 }
 0x384   :  { %2311 = vst [vmem:[#allocation6 + $0x8] sm:$0xff] %v2308_v56  ;;  %v2304_v18 = vadd.f32 %v2303_v0, %v2224_v21  ;;  %v2573_v56 = vld [vmem:[%s4917_s7 + $0x670] sm:$0xff]  ;;  %v2508_v21 = vld [vmem:[%s4917_s7 + $0x468] sm:$0xff] }
 0x385   :  { %v3642_v40 = vpop.f32.mrf.mxu0  ;;  %v2572_v0 = vld [vmem:[%s4917_s7 + $0x668] sm:$0xff] }
 0x386   :  { %v2309_v1 = vmax.f32 %v2304_v18, 0.0  ;;  %v2507_v18 = vld [vmem:[%s4917_s7 + $0x460] sm:$0xff] }
 0x387   :  { %v2322_v19 = vld [vmem:[#allocation6] sm:$0x1]  ;;  %v2326_v42 = vld [vmem:[#allocation6 + $0x2] sm:$0x1]  ;;  %v2330_v44 = vld [vmem:[#allocation6 + $0x4] sm:$0x1] }
 0x388   :  { %2323 = vst [vmem:[#allocation7] sm:$0x1] %v2322_v19  ;;  %2327 = vst [vmem:[#allocation7 + $0x10] sm:$0x1] %v2326_v42  ;;  %v2334_v46 = vld [vmem:[#allocation6 + $0x6] sm:$0x1] }
 0x389   :  { %2331 = vst [vmem:[#allocation7 + $0x20] sm:$0x1] %v2330_v44  ;;  %2312 = vst [vmem:[#allocation6 + $0x10] sm:$0xff] %v2309_v1  ;;  %v2324_v20 = vld [vmem:[#allocation6 + $0x1] sm:$0x1]  ;;  %v2571_v40 = vld [vmem:[%s4917_s7 + $0x660] sm:$0xff] }
 0x38a   :  { %v2328_v23 = vld [vmem:[#allocation6 + $0x3] sm:$0x1]  ;;  %2335 = vst [vmem:[#allocation7 + $0x30] sm:$0x1] %v2334_v46  ;;  %2325 = vst [vmem:[#allocation7 + $0x8] sm:$0x1] %v2324_v20 }
 0x38b   :  { %2329 = vst [vmem:[#allocation7 + $0x18] sm:$0x1] %v2328_v23  ;;  %v2332_v57 = vld [vmem:[#allocation6 + $0x5] sm:$0x1]  ;;  %v2336_v58 = vld [vmem:[#allocation6 + $0x7] sm:$0x1] }
 0x38c   :  { %2333 = vst [vmem:[#allocation7 + $0x28] sm:$0x1] %v2332_v57  ;;  %2337 = vst [vmem:[#allocation7 + $0x38] sm:$0x1] %v2336_v58  ;;  %v2338_v60 = vld [vmem:[#allocation6 + $0x8] sm:$0x1] }
 0x38d   :  { %v2340_v43 = vld [vmem:[#allocation6 + $0x9] sm:$0x1]  ;;  %v2344_v45 = vld [vmem:[#allocation6 + $0xb] sm:$0x1]  ;;  %v2348_v61 = vld [vmem:[#allocation6 + $0xd] sm:$0x1] }
 0x38e   :  { %2341 = vst [vmem:[#allocation7 + $0x1] sm:$0x1] %v2340_v43  ;;  %2345 = vst [vmem:[#allocation7 + $0x11] sm:$0x1] %v2344_v45  ;;  %v2352_v22 = vld [vmem:[#allocation6 + $0xf] sm:$0x1] }
 0x38f   :  { %2339 = vst [vmem:[#allocation7 + $0x40] sm:$0x1] %v2338_v60  ;;  %v2342_v24 = vld [vmem:[#allocation6 + $0xa] sm:$0x1]  ;;  %2349 = vst [vmem:[#allocation7 + $0x21] sm:$0x1] %v2348_v61 }
 0x390   :  { %2353 = vst [vmem:[#allocation7 + $0x31] sm:$0x1] %v2352_v22  ;;  %2343 = vst [vmem:[#allocation7 + $0x9] sm:$0x1] %v2342_v24  ;;  %v2346_v49 = vld [vmem:[#allocation6 + $0xc] sm:$0x1] }
 0x391   :  { %v2350_v55 = vld [vmem:[#allocation6 + $0xe] sm:$0x1]  ;;  %2347 = vst [vmem:[#allocation7 + $0x19] sm:$0x1] %v2346_v49  ;;  %v2356_v62 = vld [vmem:[#allocation6 + $0x11] sm:$0x1] }
 0x392   :  { %2351 = vst [vmem:[#allocation7 + $0x29] sm:$0x1] %v2350_v55  ;;  %v2354_v63 = vld [vmem:[#allocation6 + $0x10] sm:$0x1]  ;;  %2357 = vst [vmem:[#allocation7 + $0x41] sm:$0x1] %v2356_v62 }
 0x393   :  { %2355 = vst [vmem:[#allocation7 + $0x39] sm:$0x1] %v2354_v63  ;;  %v2506_v1 = vld [vmem:[%s4917_s7 + $0x458] sm:$0xff]  ;;  %v2505_v42 = vld [vmem:[%s4917_s7 + $0x450] sm:$0xff]  ;;  %v2504_v46 = vld [vmem:[%s4917_s7 + $0x448] sm:$0xff] }
 0x394   :  { %v2570_v19 = vld [vmem:[%s4917_s7 + $0x658] sm:$0xff]  ;;  %v2569_v44 = vld [vmem:[%s4917_s7 + $0x650] sm:$0xff]  ;;  %v2568_v20 = vld [vmem:[%s4917_s7 + $0x648] sm:$0xff] }
 0x395   :  { %v2358_v3 = vld [vmem:[#allocation7] sm:$0xff]  ;;  %v2360_v47 = vld [vmem:[#allocation7 + $0x10] sm:$0xff]  ;;  %v2503_v23 = vld [vmem:[%s4917_s7 + $0x440] sm:$0xff] }
 0x396   :  { %v2567_v57 = vld [vmem:[%s4917_s7 + $0x640] sm:$0xff]  ;;  %v2502_v58 = vld [vmem:[%s4917_s7 + $0x438] sm:$0xff]  ;;  %v2501_v43 = vld [vmem:[%s4917_s7 + $0x430] sm:$0xff] }
 0x397   :  { %v2359_v4 = vld [vmem:[#allocation7 + $0x8] sm:$0xff]  ;;  %v2566_v60 = vld [vmem:[%s4917_s7 + $0x638] sm:$0xff]  ;;  %v2500_v61 = vld [vmem:[%s4917_s7 + $0x428] sm:$0xff] }
 0x398   :  { %2731 = vmatprep.mubr.f32.mxu1 %v2359_v4  ;;  %v2361_v5 = vld [vmem:[#allocation7 + $0x18] sm:$0xff]  ;;  %v2565_v45 = vld [vmem:[%s4917_s7 + $0x630] sm:$0xff]  ;;  %v2564_v22 = vld [vmem:[%s4917_s7 + $0x628] sm:$0xff] }
 0x399   :  { %2802 = vmatprep.mubr.f32.mxu0 %v2361_v5  ;;  %2732 = vmatmul.mubr.f32.vlgmr.msra.gmra.mxu1 %v2358_v3  ;;  %v2363_v30 = vld [vmem:[#allocation7 + $0x28] sm:$0xff]  ;;  %v2499_v24 = vld [vmem:[%s4917_s7 + $0x420] sm:$0xff]  ;;  %v2498_v55 = vld [vmem:[%s4917_s7 + $0x418] sm:$0xff] }
 0x39a   :  { %2803 = vmatmul.mubr.f32.vlgmr.msra.gmra.mxu0 %v2360_v47  ;;  %2810 = vmatpush1.msra.mxu1 %v2525_v48  ;;  %v2365_v28 = vld [vmem:[#allocation7 + $0x38] sm:$0xff]  ;;  %v2562_v62 = vld [vmem:[%s4917_s7 + $0x618] sm:$0xff]  ;;  %v2497_v63 = vld [vmem:[%s4917_s7 + $0x410] sm:$0xff] }
 0x39b   :  { %2881 = vmatpush1.msra.mxu0 %v2589_v25  ;;  %2811 = vmatprep.subr.mxu1 %v2524_v27  ;;  %v2563_v49 = vld [vmem:[%s4917_s7 + $0x620] sm:$0xff]  ;;  %v2561_v3 = vld [vmem:[%s4917_s7 + $0x610] sm:$0xff]  ;;  %v2496_v4 = vld [vmem:[%s4917_s7 + $0x408] sm:$0xff] }
 0x39c   :  { %2873 = vmatprep.mubr.f32.mxu1 %v2363_v30  ;;  %2882 = vmatprep.subr.mxu0 %v2588_v2  ;;  %v2560_v47 = vld [vmem:[%s4917_s7 + $0x608] sm:$0xff]  ;;  %v2495_v48 = vld [vmem:[%s4917_s7 + $0x400] sm:$0xff]  ;;  %v2558_v25 = vld [vmem:[%s4917_s7 + $0x5f8] sm:$0xff] }
 0x39d   :  { %2812 = vmatpush1.msra.mxu1 %v2523_v6  ;;  %2883 = vmatpush1.msra.mxu0 %v2587_v29  ;;  %v2559_v5 = vld [vmem:[%s4917_s7 + $0x600] sm:$0xff]  ;;  %v2622_v27 = vld [vmem:[%s4917_s7 + $0x7f8] sm:$0xff]  ;;  %v2557_v2 = vld [vmem:[%s4917_s7 + $0x5f0] sm:$0xff] }
 0x39e   :  { %2813 = vmatprep.subr.mxu1 %v2522_v7  ;;  %2884 = vmatprep.subr.mxu0 %v2586_v26  ;;  %v2621_v6 = vld [vmem:[%s4917_s7 + $0x7f0] sm:$0xff]  ;;  %v2556_v29 = vld [vmem:[%s4917_s7 + $0x5e8] sm:$0xff]  ;;  %v2555_v7 = vld [vmem:[%s4917_s7 + $0x5e0] sm:$0xff] }
 0x39f   :  { %2944 = vmatprep.mubr.f32.mxu0 %v2365_v28  ;;  %2814 = vmatpush1.msra.mxu1 %v2521_v9  ;;  %v2620_v30 = vld [vmem:[%s4917_s7 + $0x7e8] sm:$0xff]  ;;  %v2619_v26 = vld [vmem:[%s4917_s7 + $0x7e0] sm:$0xff]  ;;  %v2554_v28 = vld [vmem:[%s4917_s7 + $0x5d8] sm:$0xff] }
 0x3a0   :  { %2885 = vmatpush1.msra.mxu0 %v2585_v12  ;;  %2815 = vmatprep.subr.mxu1 %v2520_v32  ;;  %v2618_v9 = vld [vmem:[%s4917_s7 + $0x7d8] sm:$0xff]  ;;  %v2553_v12 = vld [vmem:[%s4917_s7 + $0x5d0] sm:$0xff] }
 0x3a1   :  { %2886 = vmatprep.subr.mxu0 %v2584_v34  ;;  %2816 = vmatpush1.msra.mxu1 %v2519_v51  ;;  %v2617_v32 = vld [vmem:[%s4917_s7 + $0x7d0] sm:$0xff]  ;;  %v2552_v34 = vld [vmem:[%s4917_s7 + $0x5c8] sm:$0xff] }
 0x3a2   :  { %2887 = vmatpush1.msra.mxu0 %v2583_v11  ;;  %2817 = vmatprep.subr.mxu1 %v2518_v31  ;;  %v2616_v51 = vld [vmem:[%s4917_s7 + $0x7c8] sm:$0xff]  ;;  %v2551_v11 = vld [vmem:[%s4917_s7 + $0x5c0] sm:$0xff] }
 0x3a3   :  { %2888 = vmatprep.subr.mxu0 %v2582_v33  ;;  %2818 = vmatpush1.msra.mxu1 %v2517_v13  ;;  %v2615_v31 = vld [vmem:[%s4917_s7 + $0x7c0] sm:$0xff]  ;;  %v2550_v33 = vld [vmem:[%s4917_s7 + $0x5b8] sm:$0xff] }
 0x3a4   :  { %2889 = vmatpush1.msra.mxu0 %v2581_v50  ;;  %2819 = vmatprep.subr.mxu1 %v2516_v53  ;;  %v2614_v13 = vld [vmem:[%s4917_s7 + $0x7b8] sm:$0xff]  ;;  %v2549_v50 = vld [vmem:[%s4917_s7 + $0x5b0] sm:$0xff] }
 0x3a5   :  { %2890 = vmatprep.subr.mxu0 %v2580_v14  ;;  %2820 = vmatpush1.msra.mxu1 %v2515_v16  ;;  %v2613_v53 = vld [vmem:[%s4917_s7 + $0x7b0] sm:$0xff]  ;;  %v2548_v14 = vld [vmem:[%s4917_s7 + $0x5a8] sm:$0xff] }
 0x3a6   :  { %2891 = vmatpush1.msra.mxu0 %v2579_v52  ;;  %2821 = vmatprep.subr.mxu1 %v2514_v35  ;;  %v2612_v16 = vld [vmem:[%s4917_s7 + $0x7a8] sm:$0xff]  ;;  %v2547_v52 = vld [vmem:[%s4917_s7 + $0x5a0] sm:$0xff] }
 0x3a7   :  { %2892 = vmatprep.subr.mxu0 %v2578_v37  ;;  %2822 = vmatpush1.msra.mxu1 %v2513_v36  ;;  %v2611_v35 = vld [vmem:[%s4917_s7 + $0x7a0] sm:$0xff]  ;;  %v2546_v37 = vld [vmem:[%s4917_s7 + $0x598] sm:$0xff] }
 0x3a8   :  { %2893 = vmatpush1.msra.mxu0 %v2577_v15  ;;  %2823 = vmatprep.subr.mxu1 %v2512_v17  ;;  %v2610_v36 = vld [vmem:[%s4917_s7 + $0x798] sm:$0xff]  ;;  %v2545_v15 = vld [vmem:[%s4917_s7 + $0x590] sm:$0xff] }
 0x3a9   :  { %2894 = vmatprep.subr.mxu0 %v2576_v39  ;;  %2824 = vmatpush1.msra.mxu1 %v2511_v41  ;;  %v2609_v17 = vld [vmem:[%s4917_s7 + $0x790] sm:$0xff]  ;;  %v2544_v39 = vld [vmem:[%s4917_s7 + $0x588] sm:$0xff] }
 0x3aa   :  { %2895 = vmatpush1.msra.mxu0 %v2575_v54  ;;  %2825 = vmatprep.subr.mxu1 %v2510_v59  ;;  %v2608_v41 = vld [vmem:[%s4917_s7 + $0x788] sm:$0xff]  ;;  %v2543_v54 = vld [vmem:[%s4917_s7 + $0x580] sm:$0xff] }
 0x3ab   :  { %2896 = vmatprep.subr.mxu0 %v2574_v8  ;;  %2826 = vmatpush1.msra.mxu1 %v2509_v38  ;;  %v2607_v59 = vld [vmem:[%s4917_s7 + $0x780] sm:$0xff]  ;;  %v2542_v8 = vld [vmem:[%s4917_s7 + $0x578] sm:$0xff] }
 0x3ac   :  { %2897 = vmatpush1.msra.mxu0 %v2573_v56  ;;  %2827 = vmatprep.subr.mxu1 %v2508_v21  ;;  %v2606_v38 = vld [vmem:[%s4917_s7 + $0x778] sm:$0xff]  ;;  %v2541_v56 = vld [vmem:[%s4917_s7 + $0x570] sm:$0xff] }
 0x3ad   :  { %2898 = vmatprep.subr.mxu0 %v2572_v0  ;;  %2828 = vmatpush1.msra.mxu1 %v2507_v18  ;;  %v2605_v21 = vld [vmem:[%s4917_s7 + $0x770] sm:$0xff]  ;;  %v2540_v0 = vld [vmem:[%s4917_s7 + $0x568] sm:$0xff] }
 0x3ae   :  { %2899 = vmatpush1.msra.mxu0 %v2571_v40  ;;  %2829 = vmatprep.subr.mxu1 %v2506_v1  ;;  %v2604_v18 = vld [vmem:[%s4917_s7 + $0x768] sm:$0xff]  ;;  %v2539_v40 = vld [vmem:[%s4917_s7 + $0x560] sm:$0xff] }
 0x3af   :  { %2900 = vmatprep.subr.mxu0 %v2570_v19  ;;  %2830 = vmatpush1.msra.mxu1 %v2505_v42  ;;  %v2603_v1 = vld [vmem:[%s4917_s7 + $0x760] sm:$0xff]  ;;  %v2538_v19 = vld [vmem:[%s4917_s7 + $0x558] sm:$0xff] }
 0x3b0   :  { %2901 = vmatpush1.msra.mxu0 %v2569_v44  ;;  %2831 = vmatprep.subr.mxu1 %v2504_v46  ;;  %v2602_v42 = vld [vmem:[%s4917_s7 + $0x758] sm:$0xff]  ;;  %v2537_v44 = vld [vmem:[%s4917_s7 + $0x550] sm:$0xff] }
 0x3b1   :  { %2902 = vmatprep.subr.mxu0 %v2568_v20  ;;  %2832 = vmatpush1.msra.mxu1 %v2503_v23  ;;  %v2601_v46 = vld [vmem:[%s4917_s7 + $0x750] sm:$0xff]  ;;  %v2536_v20 = vld [vmem:[%s4917_s7 + $0x548] sm:$0xff] }
 0x3b2   :  { %2903 = vmatpush1.msra.mxu0 %v2567_v57  ;;  %2833 = vmatprep.subr.mxu1 %v2502_v58  ;;  %v2600_v23 = vld [vmem:[%s4917_s7 + $0x748] sm:$0xff]  ;;  %v2535_v57 = vld [vmem:[%s4917_s7 + $0x540] sm:$0xff] }
 0x3b3   :  { %2904 = vmatprep.subr.mxu0 %v2566_v60  ;;  %2834 = vmatpush1.msra.mxu1 %v2501_v43  ;;  %v2599_v58 = vld [vmem:[%s4917_s7 + $0x740] sm:$0xff]  ;;  %v2534_v60 = vld [vmem:[%s4917_s7 + $0x538] sm:$0xff] }
 0x3b4   :  { %2905 = vmatpush1.msra.mxu0 %v2565_v45  ;;  %2835 = vmatprep.subr.mxu1 %v2500_v61  ;;  %v2598_v43 = vld [vmem:[%s4917_s7 + $0x738] sm:$0xff]  ;;  %v2533_v45 = vld [vmem:[%s4917_s7 + $0x530] sm:$0xff] }
 0x3b5   :  { %2906 = vmatprep.subr.mxu0 %v2564_v22  ;;  %2836 = vmatpush1.msra.mxu1 %v2499_v24  ;;  %v2597_v61 = vld [vmem:[%s4917_s7 + $0x730] sm:$0xff]  ;;  %v2532_v22 = vld [vmem:[%s4917_s7 + $0x528] sm:$0xff] }
 0x3b6   :  { %2907 = vmatpush1.msra.mxu0 %v2563_v49  ;;  %2837 = vmatprep.subr.mxu1 %v2498_v55  ;;  %v2596_v24 = vld [vmem:[%s4917_s7 + $0x728] sm:$0xff]  ;;  %v2531_v49 = vld [vmem:[%s4917_s7 + $0x520] sm:$0xff] }
 0x3b7   :  { %2908 = vmatprep.subr.mxu0 %v2562_v62  ;;  %2838 = vmatpush1.msra.mxu1 %v2497_v63  ;;  %v2595_v55 = vld [vmem:[%s4917_s7 + $0x720] sm:$0xff]  ;;  %v2530_v62 = vld [vmem:[%s4917_s7 + $0x518] sm:$0xff] }
 0x3b8   :  { %2909 = vmatpush1.msra.mxu0 %v2561_v3  ;;  %2839 = vmatprep.subr.mxu1 %v2496_v4  ;;  %v2594_v63 = vld [vmem:[%s4917_s7 + $0x718] sm:$0xff]  ;;  %v2529_v3 = vld [vmem:[%s4917_s7 + $0x510] sm:$0xff] }
 0x3b9   :  { %2910 = vmatprep.subr.mxu0 %v2560_v47  ;;  %2840 = vmatpush1.msra.mxu1 %v2495_v48  ;;  %v2593_v4 = vld [vmem:[%s4917_s7 + $0x710] sm:$0xff]  ;;  %v2528_v47 = vld [vmem:[%s4917_s7 + $0x508] sm:$0xff] }
 0x3ba   :  { %2911 = vmatpush1.msra.mxu0 %v2559_v5  ;;  %2841 = vmatprep.subr.mxu1 %v2558_v25  ;;  %v2592_v48 = vld [vmem:[%s4917_s7 + $0x708] sm:$0xff]  ;;  %v2527_v5 = vld [vmem:[%s4917_s7 + $0x500] sm:$0xff] }
 0x3bb   :  { %2912 = vmatprep.subr.mxu0 %v2622_v27  ;;  %2842 = vmatpush2.msra.mxu1 %v2557_v2  ;;  %v2591_v25 = vld [vmem:[%s4917_s7 + $0x700] sm:$0xff]  ;;  %v2654_v27 = vld [vmem:[%s4917_s7 + $0x8f8] sm:$0xff]  ;;  %v2362_v2 = vld [vmem:[#allocation7 + $0x20] sm:$0xff] }
 0x3bc   :  { %2913 = vmatpush2.msra.mxu0 %v2621_v6  ;;  %2843 = vmatprep.subr.mxu1 %v2556_v29  ;;  %v2653_v6 = vld [vmem:[%s4917_s7 + $0x8f0] sm:$0xff]  ;;  %v2364_v29 = vld [vmem:[#allocation7 + $0x30] sm:$0xff] }
 0x3bd   :  { %2914 = vmatprep.subr.mxu0 %v2620_v30  ;;  %2844 = vmatpush2.msra.mxu1 %v2555_v7  ;;  %v2652_v30 = vld [vmem:[%s4917_s7 + $0x8e8] sm:$0xff]  ;;  %v2651_v7 = vld [vmem:[%s4917_s7 + $0x8e0] sm:$0xff] }
 0x3be   :  { %2915 = vmatpush2.msra.mxu0 %v2619_v26  ;;  %2845 = vmatprep.subr.mxu1 %v2554_v28  ;;  %v2650_v26 = vld [vmem:[%s4917_s7 + $0x8d8] sm:$0xff]  ;;  %v2649_v28 = vld [vmem:[%s4917_s7 + $0x8d0] sm:$0xff] }
 0x3bf   :  { %2916 = vmatprep.subr.mxu0 %v2618_v9  ;;  %2846 = vmatpush2.msra.mxu1 %v2553_v12  ;;  %v2648_v9 = vld [vmem:[%s4917_s7 + $0x8c8] sm:$0xff]  ;;  %v2647_v12 = vld [vmem:[%s4917_s7 + $0x8c0] sm:$0xff] }
 0x3c0   :  { %2917 = vmatpush2.msra.mxu0 %v2617_v32  ;;  %2847 = vmatprep.subr.mxu1 %v2552_v34  ;;  %v2645_v32 = vld [vmem:[%s4917_s7 + $0x8b0] sm:$0xff]  ;;  %v2644_v34 = vld [vmem:[%s4917_s7 + $0x8a8] sm:$0xff] }
 0x3c1   :  { %2918 = vmatprep.subr.mxu0 %v2616_v51  ;;  %2848 = vmatpush2.msra.mxu1 %v2551_v11  ;;  %v2643_v51 = vld [vmem:[%s4917_s7 + $0x8a0] sm:$0xff]  ;;  %v2642_v11 = vld [vmem:[%s4917_s7 + $0x898] sm:$0xff] }
 0x3c2   :  { %2919 = vmatpush2.msra.mxu0 %v2615_v31  ;;  %2849 = vmatprep.subr.mxu1 %v2550_v33  ;;  %v2641_v31 = vld [vmem:[%s4917_s7 + $0x890] sm:$0xff]  ;;  %v2640_v33 = vld [vmem:[%s4917_s7 + $0x888] sm:$0xff] }
 0x3c3   :  { %2920 = vmatprep.subr.mxu0 %v2614_v13  ;;  %2850 = vmatpush2.msra.mxu1 %v2549_v50  ;;  %v2639_v13 = vld [vmem:[%s4917_s7 + $0x880] sm:$0xff]  ;;  %v2638_v50 = vld [vmem:[%s4917_s7 + $0x878] sm:$0xff] }
 0x3c4   :  { %2921 = vmatpush2.msra.mxu0 %v2613_v53  ;;  %2851 = vmatprep.subr.mxu1 %v2548_v14  ;;  %v2637_v53 = vld [vmem:[%s4917_s7 + $0x870] sm:$0xff]  ;;  %v2636_v14 = vld [vmem:[%s4917_s7 + $0x868] sm:$0xff] }
 0x3c5   :  { %2922 = vmatprep.subr.mxu0 %v2612_v16  ;;  %2852 = vmatpush2.msra.mxu1 %v2547_v52  ;;  %v2635_v16 = vld [vmem:[%s4917_s7 + $0x860] sm:$0xff]  ;;  %v2634_v52 = vld [vmem:[%s4917_s7 + $0x858] sm:$0xff] }
 0x3c6   :  { %2923 = vmatpush2.msra.mxu0 %v2611_v35  ;;  %2853 = vmatprep.subr.mxu1 %v2546_v37  ;;  %v2633_v35 = vld [vmem:[%s4917_s7 + $0x850] sm:$0xff]  ;;  %v2632_v37 = vld [vmem:[%s4917_s7 + $0x848] sm:$0xff] }
 0x3c7   :  { %2924 = vmatprep.subr.mxu0 %v2610_v36  ;;  %2854 = vmatpush2.msra.mxu1 %v2545_v15  ;;  %v2631_v36 = vld [vmem:[%s4917_s7 + $0x840] sm:$0xff]  ;;  %v2630_v15 = vld [vmem:[%s4917_s7 + $0x838] sm:$0xff] }
 0x3c8   :  { %2925 = vmatpush2.msra.mxu0 %v2609_v17  ;;  %2855 = vmatprep.subr.mxu1 %v2544_v39  ;;  %v2629_v17 = vld [vmem:[%s4917_s7 + $0x830] sm:$0xff]  ;;  %v2628_v39 = vld [vmem:[%s4917_s7 + $0x828] sm:$0xff] }
 0x3c9   :  { %2926 = vmatprep.subr.mxu0 %v2608_v41  ;;  %2856 = vmatpush2.msra.mxu1 %v2543_v54  ;;  %v2627_v41 = vld [vmem:[%s4917_s7 + $0x820] sm:$0xff]  ;;  %v2626_v54 = vld [vmem:[%s4917_s7 + $0x818] sm:$0xff] }
 0x3ca   :  { %2927 = vmatpush2.msra.mxu0 %v2607_v59  ;;  %2857 = vmatprep.subr.mxu1 %v2542_v8  ;;  %v2625_v59 = vld [vmem:[%s4917_s7 + $0x810] sm:$0xff]  ;;  %v2624_v8 = vld [vmem:[%s4917_s7 + $0x808] sm:$0xff] }
 0x3cb   :  { %2928 = vmatprep.subr.mxu0 %v2606_v38  ;;  %2858 = vmatpush2.msra.mxu1 %v2541_v56  ;;  %v2623_v38 = vld [vmem:[%s4917_s7 + $0x800] sm:$0xff]  ;;  %v2366_v56 = vld [vmem:[#allocation7 + $0x40] sm:$0xff] }
 0x3cc   :  { %2929 = vmatpush2.msra.mxu0 %v2605_v21  ;;  %2859 = vmatprep.subr.mxu1 %v2540_v0  ;;  %v2657_v21 = vlaneseq }
 0x3cd   :  { %2930 = vmatprep.subr.mxu0 %v2604_v18  ;;  %2860 = vmatpush2.msra.mxu1 %v2539_v40 }
 0x3ce   :  { %2931 = vmatpush2.msra.mxu0 %v2603_v1  ;;  %2861 = vmatprep.subr.mxu1 %v2538_v19  ;;  %v2658_v0 = vshrl.u32 %v2657_v21, 7  ;;  %v2655_v1 = vld [vmem:[%s4918_s8] sm:$0x3] }
 0x3cf   :  { %2932 = vmatprep.subr.mxu0 %v2602_v42  ;;  %2862 = vmatpush2.msra.mxu1 %v2537_v44 }
 0x3d0   :  { %2933 = vmatpush2.msra.mxu0 %v2601_v46  ;;  %2863 = vmatprep.subr.mxu1 %v2536_v20  ;;  %v2659_v18 = vsub.s32 0, %v2658_v0  ;;  %v2663_v40 = vsub.s32 1, %v2658_v0 }
 0x3d1   :  { %2934 = vmatprep.subr.mxu0 %v2600_v23  ;;  %2864 = vmatpush2.msra.mxu1 %v2535_v57 }
 0x3d2   :  { %2935 = vmatpush2.msra.mxu0 %v2599_v58  ;;  %2865 = vmatprep.subr.mxu1 %v2534_v60  ;;  %v2660_v42 = vrot.slane %v2655_v1, %v2659_v18  ;;  %v2664_v44 = vrot.slane %v2655_v1, %v2663_v40 }
 0x3d3   :  { %2936 = vmatprep.subr.mxu0 %v2598_v43  ;;  %2866 = vmatpush2.msra.mxu1 %v2533_v45 }
 0x3d4   :  { %2937 = vmatpush2.msra.mxu0 %v2597_v61  ;;  %2867 = vmatprep.subr.mxu1 %v2532_v22 }
 0x3d5   :  { %2938 = vmatprep.subr.mxu0 %v2596_v24  ;;  %2868 = vmatpush2.msra.mxu1 %v2531_v49 }
 0x3d6   :  { %2939 = vmatpush2.msra.mxu0 %v2595_v55  ;;  %2869 = vmatprep.subr.mxu1 %v2530_v62 }
 0x3d7   :  { %2940 = vmatprep.subr.mxu0 %v2594_v63  ;;  %2870 = vmatpush2.msra.mxu1 %v2529_v3 }
 0x3d8   :  { %2941 = vmatpush2.msra.mxu0 %v2593_v4  ;;  %2871 = vmatprep.subr.mxu1 %v2528_v47 }
 0x3d9   :  { %2942 = vmatprep.subr.mxu0 %v2592_v48  ;;  %2872 = vmatpush2.msra.mxu1 %v2527_v5 }
 0x3da   :  { %2943 = vmatpush2.msra.mxu0 %v2591_v25  ;;  %2874 = vmatmul.mubr.f32.vlgmr.msra.gmra.mxu1 %v2362_v2 }
 0x3db   :  { %2945 = vmatmul.mubr.f32.vlgmr.msra.gmra.mxu0 %v2364_v29  ;;  %2951 = vmatprep.subr.mxu1 %v2654_v27 }
 0x3dc   :  { %2952 = vmatpush1.msra.mxu1 %v2653_v6  ;;  %3015 = vmatprep.mubr.f32.mxu1 %v4922_v10  ;;  %v2646_v10 = vld [vmem:[%s4917_s7 + $0x8b8] sm:$0xff]  ;;  %s3722_s7 = smov [#allocation13]  }
 0x3dd   :  { %2953 = vmatprep.subr.mxu1 %v2652_v30  ;;  %s3040_s8 = sshll.u32 %s3722_s7, 4  ;;  %s3041_s8 = int_to_ptr.vmem [resolvable:$true] %s3040_s8 }
 0x3de   :  { %2954 = vmatpush1.msra.mxu1 %v2651_v7  ;;  %s3690_s30 = scalar_lea.vmem %s3041_s8, 64  ;;  %p3695_p11 = scmp.lt.s32.totalorder %s3041_s8, %s3041_s8 }
 0x3df   :  { %2955 = vmatprep.subr.mxu1 %v2650_v26  ;;  %p3691_p10 = scmp.ne.s32.totalorder %s3041_s8, %s3690_s30  ;;  %p3696_p12 = scmp.lt.s32.totalorder %s3690_s30, %s3690_s30 }
 0x3e0   :  { %2956 = vmatpush1.msra.mxu1 %v2649_v28 }
 0x3e1   :  { %2957 = vmatprep.subr.mxu1 %v2648_v9  ;;  %p3697_p13 = por %p3696_p12, %p3695_p11 }
 0x3e2   :  { %2958 = vmatpush1.msra.mxu1 %v2647_v12 }
 0x3e3   :  { %2959 = vmatprep.subr.mxu1 %v2646_v10  ;;  %p3698_p0 = pnand %p3697_p13, %p3691_p10 }
 0x3e4   :  { %2960 = vmatpush1.msra.mxu1 %v2645_v32 }
 0x3e5   :  { %2961 = vmatprep.subr.mxu1 %v2644_v34 }
 0x3e6   :  { %2962 = vmatpush1.msra.mxu1 %v2643_v51 }
 0x3e7   :  { %2963 = vmatprep.subr.mxu1 %v2642_v11 }
 0x3e8   :  { %2964 = vmatpush1.msra.mxu1 %v2641_v31 }
 0x3e9   :  { %2965 = vmatprep.subr.mxu1 %v2640_v33 }
 0x3ea   :  { %2966 = vmatpush1.msra.mxu1 %v2639_v13 }
 0x3eb   :  { %2967 = vmatprep.subr.mxu1 %v2638_v50 }
 0x3ec   :  { %2968 = vmatpush1.msra.mxu1 %v2637_v53 }
 0x3ed   :  { %2969 = vmatprep.subr.mxu1 %v2636_v14 }
 0x3ee   :  { %2970 = vmatpush1.msra.mxu1 %v2635_v16 }
 0x3ef   :  { %2971 = vmatprep.subr.mxu1 %v2634_v52 }
 0x3f0   :  { %2972 = vmatpush1.msra.mxu1 %v2633_v35 }
 0x3f1   :  { %2973 = vmatprep.subr.mxu1 %v2632_v37 }
 0x3f2   :  { %2974 = vmatpush1.msra.mxu1 %v2631_v36 }
 0x3f3   :  { %2975 = vmatprep.subr.mxu1 %v2630_v15 }
 0x3f4   :  { %2976 = vmatpush1.msra.mxu1 %v2629_v17 }
 0x3f5   :  { %2977 = vmatprep.subr.mxu1 %v2628_v39 }
 0x3f6   :  { %2978 = vmatpush1.msra.mxu1 %v2627_v41 }
 0x3f7   :  { %2979 = vmatprep.subr.mxu1 %v2626_v54 }
 0x3f8   :  { %2980 = vmatpush1.msra.mxu1 %v2625_v59 }
 0x3f9   :  { %2981 = vmatprep.subr.mxu1 %v2624_v8 }
 0x3fa   :  { %2982 = vmatpush1.msra.mxu1 %v2623_v38 }
 0x3fb   :  { %3016 = vmatmul.mubr.f32.vlgmr.msra.gmra.mxu1 %v2366_v56 }
 0x459   :  { %v2733_v19 = vpop.f32.mrf.mxu1 }
 0x45a   :  { %v2804_v20 = vpop.f32.mrf.mxu0  ;;  %v2734_v57 = vadd.f32 %v2733_v19, %v2660_v42 }
 0x45b   :  { %v2735_v46 = vpop.f32.mrf.mxu1 }
 0x45c   :  { %v2736_v58 = vadd.f32 %v2735_v46, %v2664_v44  ;;  %v2806_v60 = vpop.f32.mrf.mxu0  ;;  %v2805_v45 = vadd.f32 %v2804_v20, %v2734_v57 }
 0x45e   :  { %v2807_v61 = vadd.f32 %v2806_v60, %v2736_v58 }
 0x49a   :  { %v2875_v23 = vpop.f32.mrf.mxu1 }
 0x49b   :  { %v2946_v22 = vpop.f32.mrf.mxu0  ;;  %v2876_v24 = vadd.f32 %v2875_v23, %v2805_v45 }
 0x49c   :  { %v2877_v43 = vpop.f32.mrf.mxu1 }
 0x49d   :  { %v2878_v49 = vadd.f32 %v2877_v43, %v2807_v61  ;;  %v2948_v55 = vpop.f32.mrf.mxu0  ;;  %v2947_v63 = vadd.f32 %v2946_v22, %v2876_v24 }
 0x49f   :  { %v2949_v3 = vadd.f32 %v2948_v55, %v2878_v49 }
 0x4bb   :  { %v3017_v62 = vpop.f32.mrf.mxu1 }
 0x4bc   :  { %v3018_v47 = vadd.f32 %v3017_v62, %v2947_v63 }
 0x4bd   :  { %v3019_v4 = vpop.f32.mrf.mxu1 }
 0x4be   :  { %v3020_v48 = vadd.f32 %v3019_v4, %v2949_v3 }
 0x4c0   :  { %v3024_v5 = vcombine.low %v3018_v47, %v3020_v48 }
 0x4c2   :  { %3066 = vst.sshfl [vmem:[#allocation13] sm:$0x33 pattern:$0x76325410] %v3024_v5 }
 0x4c3   :  { %3701 = shalt.err (!%p3698_p0)
}
 0x4c4   :  { %3043 = dma.vmem_to_hbm [thread:$0]  %s3041_s8, 64, %s4919_s9, [#allocation10]  }
 0x4c5   :  { %3714 = dma.done.wait [#allocation10], 64  }
 0x4c6   :  { %3715 = vsyncadd [#allocation10], 4294967232 }
 0x4c7   :  { %3047 = vsyncpa [#allocation9], 1 }
 0x4c8   :  { %3048 = vsyncpa [#allocation12], 1 }
 0x4c9   :  { %3049 = vsyncpa [#allocation10], 1 }

</bundles_post_ra>
